<compile_context>
chip_gen: v6e
topology: v6e:2x2x1
jax: 0.10.0
libtpu: 0.0.40
codegen_flags: <defaults>
</compile_context>

<pallas_src>
import functools
import math

import jax
import jax.numpy as jnp
from jax import lax
from jax.experimental import pallas as pl
from jax.experimental.pallas import tpu as pltpu


_LANE = 128
_MAX_TR = 512          # rows per elementwise/reduction tile (>=85% of HBM roofline)
_MU = 500.0            # HDRLoss calls _mu_law(..., 500)

LAMBDA_DICT = {'hole': 6.0, 'prc': 1.0, 'style': 120}   # HDRLoss.LAMBDA_DICT

_IMAGENET_MEAN = jnp.array([0.485, 0.456, 0.406], jnp.float32).reshape(-1, 1, 1)
_IMAGENET_STD = jnp.array([0.229, 0.224, 0.225], jnp.float32).reshape(-1, 1, 1)


# ----------------------------------------------------------------------------
# Pallas kernels
# ----------------------------------------------------------------------------

def _kmax_kernel(gt_ref, k_ref):
    """k[b] = max over the batch element of clamp(gt, 0, 50), tiled over rows."""
    r = pl.program_id(1)
    gmax = jnp.max(jnp.clip(gt_ref[0], 0.0, 50.0))

    @pl.when(r == 0)
    def _():
        k_ref[...] = jnp.zeros_like(k_ref)          # gt_clamp >= 0 -> 0 is exact init

    k_ref[...] = jnp.maximum(k_ref[...], gmax)      # broadcast to all 128 lanes


def _compose_kernel(k_ref, mask_ref, out_ref, gt_ref,
                    comp_ref, gtmu_ref, hole_ref, *, inv_log_mu):
    """Fused: hole-L1 partial sum, mu-law tone mapping, out_comp composition."""
    r = pl.program_id(1)
    m = mask_ref[0]                                  # (TR, 128) f32
    mh = 1.0 - m                                     # mask_hole
    o = jnp.clip(out_ref[0], 0.0, 10.0)              # output = clamp(output, 0, 10)
    g = gt_ref[0]

    # hole = L1(mask_hole*output, mask_hole*log(gt+1))  (partial sum, per batch)
    hole_part = jnp.sum(jnp.abs(mh * (o - jnp.log(g + 1.0))))

    @pl.when(r == 0)
    def _():
        hole_ref[...] = jnp.zeros_like(hole_ref)

    hole_ref[...] += hole_part

    # 1/k on the EUP (approx reciprocal is a free slot next to the VPU work).
    kinv = pl.reciprocal(k_ref[0], approx=True)      # (1, 128), all lanes equal
    y_ = jnp.clip(jnp.exp(o) - 1.0, 0.0, 50.0) * kinv
    g_ = jnp.clip(g, 0.0, 50.0) * kinv
    out_mu = jnp.log(1.0 + _MU * jnp.maximum(y_, 0.0)) * inv_log_mu
    gt_mu = jnp.log(1.0 + _MU * jnp.maximum(g_, 0.0)) * inv_log_mu

    comp_ref[0] = m * gt_mu + mh * out_mu
    gtmu_ref[0] = gt_mu


def _conv3x3_kernel(x_ref, w_ref, o_ref, *, H, W, Z, relu):
    """3x3 conv (padding=1) + ReLU as 9 in-kernel shifted taps -> bf16 MXU matmuls.

    x_ref:  (1, Cin_p, L) bf16 row-padded flat image, L = H*W + 2*Z, Z = W + 1.
    w_ref:  (9, Cout, Cin_p) bf16, tap index t = dy*3 + dx.
    o_ref:  (1, Cout, H*W) bf16 (lane-dense: spatial on the lane axis).
    """
    HW = H * W
    cout = o_ref.shape[1]
    x = x_ref[0]                                     # (Cin_p, L)

    # Column masks (hoisted; reused by all taps that need them).
    col = lax.broadcasted_iota(jnp.int32, (1, HW), 1) % W
    not_left = col != 0
    not_right = col != (W - 1)

    acc = jnp.zeros((cout, HW), jnp.float32)
    for dy in range(3):
        for dx in range(3):
            p0 = Z + (dy - 1) * W + (dx - 1)         # static lane offset
            tap = x[:, p0:p0 + HW]                   # (Cin_p, HW)
            if dx == 0:
                tap = jnp.where(not_left, tap, jnp.zeros_like(tap))
            elif dx == 2:
                tap = jnp.where(not_right, tap, jnp.zeros_like(tap))
            acc = acc + jnp.dot(w_ref[dy * 3 + dx], tap,
                                preferred_element_type=jnp.float32)
    if relu:
        acc = jnp.maximum(acc, 0.0)
    o_ref[0] = acc.astype(o_ref.dtype)


def _prc_style_kernel(fo_ref, fg_ref, prc_ref, sty_ref, go_acc, gg_acc, *, inv_chw):
    """Fused perceptual L1 + style (gram) L1 for one feature level.

    fo_ref/fg_ref: (1, C, TK) bf16 K-tiles of feat_output / feat_gt.
    prc_ref/sty_ref: (1, 1, 128) f32 per-batch partial sums.
    go_acc/gg_acc: (C, C) f32 gram accumulators (VMEM scratch).
    """
    k = pl.program_id(1)
    fo = fo_ref[0]
    fg = fg_ref[0]

    @pl.when(k == 0)
    def _():
        go_acc[...] = jnp.zeros_like(go_acc)
        gg_acc[...] = jnp.zeros_like(gg_acc)
        prc_ref[...] = jnp.zeros_like(prc_ref)
        sty_ref[...] = jnp.zeros_like(sty_ref)       # guard against any early writeback

    nt = (((1,), (1,)), ((), ()))                    # f @ f^T, contract the K axis
    go_acc[...] += lax.dot_general(fo, fo, nt, preferred_element_type=jnp.float32)
    gg_acc[...] += lax.dot_general(fg, fg, nt, preferred_element_type=jnp.float32)
    prc_ref[...] += jnp.sum(jnp.abs(fo.astype(jnp.float32) - fg.astype(jnp.float32)))

    @pl.when(k == pl.num_programs(1) - 1)
    def _():
        sty = jnp.sum(jnp.abs(go_acc[...] - gg_acc[...])) * inv_chw
        sty_ref[...] = jnp.zeros_like(sty_ref) + sty


# ----------------------------------------------------------------------------
# Wrappers (glue: padding / reshapes / pallas_call plumbing)
# ----------------------------------------------------------------------------

def _tile_params(n):
    rows = -(-n // _LANE)
    tr = rows if rows <= _MAX_TR else _MAX_TR
    rows_p = -(-rows // tr) * tr
    return tr, rows_p


def _lane_tiles(x, rows_p):
    """(B, ...) -> (B, rows_p, 128) f32, zero-padded tail."""
    b = x.shape[0]
    flat = x.reshape(b, -1).astype(jnp.float32)
    pad = rows_p * _LANE - flat.shape[1]
    if pad:
        flat = jnp.pad(flat, ((0, 0), (0, pad)))
    return flat.reshape(b, rows_p, _LANE)


def hdr_preprocess(mask, output, gt):
    """Returns (out_comp, gt_mu, hole_l1_mean) — the tone-mapping front-end."""
    B = mask.shape[0]
    n = int(math.prod(mask.shape[1:]))
    TR, Rp = _tile_params(n)
    nr = Rp // TR

    m2 = _lane_tiles(mask, Rp)
    o2 = _lane_tiles(output, Rp)
    g2 = _lane_tiles(gt, Rp)

    tile_spec = pl.BlockSpec((1, TR, _LANE), lambda b, r: (b, r, 0))
    scal_spec = pl.BlockSpec((1, 1, _LANE), lambda b, r: (b, 0, 0))
    cparams = pltpu.CompilerParams(dimension_semantics=("parallel", "arbitrary"))

    # Pass 1: per-batch k = max(clamp(gt, 0, 50))
    kmax = pl.pallas_call(
        _kmax_kernel,
        grid=(B, nr),
        out_shape=jax.ShapeDtypeStruct((B, 1, _LANE), jnp.float32),
        in_specs=[tile_spec],
        out_specs=scal_spec,
        compiler_params=cparams,
    )(g2)

    # Pass 2: fused hole-L1 + mu-law + composition
    comp2, gtmu2, hole_p = pl.pallas_call(
        functools.partial(_compose_kernel, inv_log_mu=1.0 / math.log(1.0 + _MU)),
        grid=(B, nr),
        out_shape=(jax.ShapeDtypeStruct((B, Rp, _LANE), jnp.float32),
                   jax.ShapeDtypeStruct((B, Rp, _LANE), jnp.float32),
                   jax.ShapeDtypeStruct((B, 1, _LANE), jnp.float32)),
        in_specs=[scal_spec, tile_spec, tile_spec, tile_spec],
        out_specs=(tile_spec, tile_spec, scal_spec),
        compiler_params=cparams,
    )(kmax, m2, o2, g2)

    out_comp = comp2.reshape(B, -1)[:, :n].reshape(mask.shape)
    gt_mu = gtmu2.reshape(B, -1)[:, :n].reshape(mask.shape)
    hole = jnp.sum(hole_p[:, 0, 0]) / (B * n)
    return out_comp, gt_mu, hole


def normalize_batch(batch):
    """ImageNet normalization (tiny fused XLA glue; hot paths are Pallas)."""
    return (batch - _IMAGENET_MEAN) / _IMAGENET_STD


def conv3x3_relu(x, w, relu=True):
    """Conv2d(Cin, Cout, 3, padding=1, bias=False) + ReLU, no HBM im2col."""
    B, Cin, H, W = x.shape
    Cout = w.shape[0]
    Cin_p = -(-Cin // 8) * 8
    HW = H * W
    Z = W + 1
    L = HW + 2 * Z

    xf = x.reshape(B, Cin, HW).astype(jnp.bfloat16)
    xf = jnp.pad(xf, ((0, 0), (0, Cin_p - Cin), (Z, Z)))        # channel + row pad
    wt = w.transpose(2, 3, 0, 1).reshape(9, Cout, Cin)          # (tap, Cout, Cin)
    wt = jnp.pad(wt, ((0, 0), (0, 0), (0, Cin_p - Cin))).astype(jnp.bfloat16)

    y = pl.pallas_call(
        functools.partial(_conv3x3_kernel, H=H, W=W, Z=Z, relu=relu),
        grid=(B,),
        out_shape=jax.ShapeDtypeStruct((B, Cout, HW), jnp.bfloat16),
        in_specs=[pl.BlockSpec((1, Cin_p, L), lambda b: (b, 0, 0)),
                  pl.BlockSpec((9, Cout, Cin_p), lambda b: (0, 0, 0))],
        out_specs=pl.BlockSpec((1, Cout, HW), lambda b: (b, 0, 0)),
        compiler_params=pltpu.CompilerParams(dimension_semantics=("parallel",)),
    )(xf, wt)
    return y.reshape(B, Cout, H, W)


def avg_pool2(x):
    B, C, H, W = x.shape
    return x.reshape(B, C, H // 2, 2, W // 2, 2).mean(axis=(3, 5))


def make_extractor_params(key):
    """Synthetic deterministic feature extractor weights (VGG-like, 3 stages)."""
    k1, k2, k3 = jax.random.split(key, 3)
    w1 = jax.random.normal(k1, (8, 3, 3, 3), jnp.float32) * 0.1
    w2 = jax.random.normal(k2, (16, 8, 3, 3), jnp.float32) * 0.1
    w3 = jax.random.normal(k3, (32, 16, 3, 3), jnp.float32) * 0.1
    return (w1, w2, w3)


def extractor(x, params):
    """3 feature maps at decreasing resolution (stand-in for the VGG extractor)."""
    w1, w2, w3 = params
    f1 = conv3x3_relu(x, w1)                  # (B,  8, H,   W)   bf16
    f2 = conv3x3_relu(avg_pool2(f1), w2)      # (B, 16, H/2, W/2) bf16
    f3 = conv3x3_relu(avg_pool2(f2), w3)      # (B, 32, H/4, W/4) bf16
    return [f1, f2, f3]


def prc_style_level(f_out, f_gt):
    """Fused perceptual-L1 and style (gram) L1 for one feature level."""
    B, C, H, W = f_out.shape
    HW = H * W
    TK = HW if HW <= 4096 else 4096
    pad = (-HW) % TK

    fo = f_out.reshape(B, C, HW)
    fg = f_gt.reshape(B, C, HW)
    if pad:
        fo = jnp.pad(fo, ((0, 0), (0, 0), (0, pad)))
        fg = jnp.pad(fg, ((0, 0), (0, 0), (0, pad)))
    nk = (HW + pad) // TK

    feat_spec = pl.BlockSpec((1, C, TK), lambda b, k: (b, 0, k))
    scal_spec = pl.BlockSpec((1, 1, _LANE), lambda b, k: (b, 0, 0))

    prc_p, sty_p = pl.pallas_call(
        functools.partial(_prc_style_kernel, inv_chw=1.0 / (C * HW)),
        grid=(B, nk),
        out_shape=(jax.ShapeDtypeStruct((B, 1, _LANE), jnp.float32),
                   jax.ShapeDtypeStruct((B, 1, _LANE), jnp.float32)),
        in_specs=[feat_spec, feat_spec],
        out_specs=(scal_spec, scal_spec),
        scratch_shapes=[pltpu.VMEM((C, C), jnp.float32),
                        pltpu.VMEM((C, C), jnp.float32)],
        compiler_params=pltpu.CompilerParams(
            dimension_semantics=("parallel", "arbitrary")),
    )(fo, fg)

    prc = jnp.sum(prc_p[:, 0, 0]) / (B * C * HW)     # nn.L1Loss mean over features
    style = jnp.sum(sty_p[:, 0, 0]) / (B * C * C)    # nn.L1Loss mean over grams
    return prc, style


# ----------------------------------------------------------------------------
# HDRLoss.forward
# ----------------------------------------------------------------------------

def hdr_loss(inp, mask, output, gt, extractor_params):
    del inp  # `input` is unused by HDRLoss.forward (kept for signature parity)
    loss_dict = {}
    C = output.shape[1]

    out_comp, gt_mu, hole = hdr_preprocess(mask, output, gt)
    loss_dict['hole'] = hole

    if C == 3:
        x_out = normalize_batch(out_comp)
        x_gt = normalize_batch(gt_mu)
    elif C == 1:
        # TODO(synk): faithful to the reference (broadcast-normalize then cat x3),
        # which a 3-channel extractor rejects exactly like the PyTorch original.
        x_out = jnp.concatenate([normalize_batch(out_comp)] * 3, 1)
        x_gt = jnp.concatenate([normalize_batch(gt_mu)] * 3, 1)
    else:
        raise ValueError('Data format error.')

    feat_output = extractor(x_out, extractor_params)
    feat_gt = extractor(x_gt, extractor_params)

    prc = 0.0
    style = 0.0
    for i in range(3):
        p_i, s_i = prc_style_level(feat_output[i], feat_gt[i])
        prc = prc + p_i
        style = style + s_i
    loss_dict['prc'] = prc
    loss_dict['style'] = style

    # 'tv' is not in HDRLoss.LAMBDA_DICT, so the total-variation term is skipped,
    # exactly as in the reference forward.
    return loss_dict


# ----------------------------------------------------------------------------
# Main
# ----------------------------------------------------------------------------

if __name__ == "__main__":
    key = jax.random.PRNGKey(0)
    k_in, k_out, k_gt, k_mask, k_w = jax.random.split(key, 5)

    B, C, H, W = 2, 3, 16, 16
    inp = jax.random.normal(k_in, (B, C, H, W), jnp.float32)
    output = jax.random.normal(k_out, (B, C, H, W), jnp.float32)
    gt = jax.random.uniform(k_gt, (B, C, H, W), jnp.float32, 0.0, 8.0)   # HDR-ish, >= 0
    mask = (jax.random.uniform(k_mask, (B, C, H, W)) > 0.5).astype(jnp.float32)

    params = make_extractor_params(k_w)

    losses = jax.jit(hdr_loss)(inp, mask, output, gt, params)
    for name in sorted(losses):
        jax.block_until_ready(losses[name])

    print("KERNEL_OK")
</pallas_src>

<mosaic_0001>
module attributes {stable_mosaic.version = 11 : i64} {
  func.func @_kmax_kernel(%arg0: i32, %arg1: i32, %arg2: memref<1x6x128xf32, #tpu.memory_space<vmem>>, %arg3: memref<1x1x128xf32, #tpu.memory_space<vmem>>) attributes {dimension_semantics = [#tpu.dimension_semantics<parallel>, #tpu.dimension_semantics<arbitrary>], iteration_bounds = array<i64: 2, 1>, scalar_prefetch = 0 : i64, scratch_operands = 0 : i64, tpu.core_type = #tpu.core_type<tc>, window_params = [{transform_indices = @transform_0, window_bounds = array<i64: 1, 6, 128>}, {transform_indices = @transform_1, window_bounds = array<i64: 1, 1, 128>}]} {
    %c0 = arith.constant 0 : index
    %c0_0 = arith.constant 0 : index
    %c0_1 = arith.constant 0 : index
    %0 = vector.load %arg2[%c0, %c0_0, %c0_1] : memref<1x6x128xf32, #tpu.memory_space<vmem>>, vector<1x6x128xf32>
    %1 = vector.shape_cast %0 : vector<1x6x128xf32> to vector<6x128xf32>
    %cst = arith.constant 0.000000e+00 : f32
    %cst_2 = arith.constant 5.000000e+01 : f32
    %2 = vector.broadcast %cst : f32 to vector<6x128xf32>
    %3 = arith.maximumf %2, %1 : vector<6x128xf32>
    %4 = vector.broadcast %cst_2 : f32 to vector<6x128xf32>
    %5 = arith.minimumf %4, %3 : vector<6x128xf32>
    %6 = vector.shape_cast %5 : vector<6x128xf32> to vector<1x6x128xf32>
    %cst_3 = arith.constant dense<0xFF800000> : vector<1xf32>
    %7 = vector.multi_reduction <maximumf>, %6, %cst_3 [1, 2] : vector<1x6x128xf32> to vector<1xf32>
    %8 = vector.shape_cast %7 : vector<1xf32> to vector<1x1x1xf32>
    %9 = vector.extract %8[0, 0, 0] : f32 from vector<1x1x1xf32>
    %c0_i32 = arith.constant 0 : i32
    %10 = arith.cmpi eq, %arg1, %c0_i32 : i32
    %11 = arith.extui %10 : i1 to i32
    %c0_i32_4 = arith.constant 0 : i32
    %12 = arith.cmpi ne, %11, %c0_i32_4 : i32
    scf.if %12 {
      %cst_11 = arith.constant 0.000000e+00 : f32
      %17 = vector.broadcast %cst_11 : f32 to vector<1x1x128xf32>
      %c0_12 = arith.constant 0 : index
      %c0_13 = arith.constant 0 : index
      %c0_14 = arith.constant 0 : index
      %18 = vector.load %arg3[%c0_12, %c0_13, %c0_14] : memref<1x1x128xf32, #tpu.memory_space<vmem>>, vector<1x1x128xf32>
      tpu.vector_store %arg3[%c0_12, %c0_13, %c0_14], %17 {strides = array<i32>} : memref<1x1x128xf32, #tpu.memory_space<vmem>>, vector<1x1x128xf32>,
    } else {
    }
    %c0_5 = arith.constant 0 : index
    %c0_6 = arith.constant 0 : index
    %c0_7 = arith.constant 0 : index
    %13 = vector.load %arg3[%c0_5, %c0_6, %c0_7] : memref<1x1x128xf32, #tpu.memory_space<vmem>>, vector<1x1x128xf32>
    %14 = vector.broadcast %9 : f32 to vector<1x1x128xf32>
    %15 = arith.maximumf %13, %14 : vector<1x1x128xf32>
    %c0_8 = arith.constant 0 : index
    %c0_9 = arith.constant 0 : index
    %c0_10 = arith.constant 0 : index
    %16 = vector.load %arg3[%c0_8, %c0_9, %c0_10] : memref<1x1x128xf32, #tpu.memory_space<vmem>>, vector<1x1x128xf32>
    tpu.vector_store %arg3[%c0_8, %c0_9, %c0_10], %15 {strides = array<i32>} : memref<1x1x128xf32, #tpu.memory_space<vmem>>, vector<1x1x128xf32>,
    return
  }
  func.func @transform_0(%arg0: i32, %arg1: i32) -> (i32, i32, i32) {
    %c0_i32 = arith.constant 0 : i32
    %c0_i32_0 = arith.constant 0 : i32
    return %arg0, %arg1, %c0_i32 : i32, i32, i32
  }
  func.func @transform_1(%arg0: i32, %arg1: i32) -> (i32, i32, i32) {
    %c0_i32 = arith.constant 0 : i32
    %c0_i32_0 = arith.constant 0 : i32
    %c0_i32_1 = arith.constant 0 : i32
    return %arg0, %c0_i32, %c0_i32_0 : i32, i32, i32
  }
}

module attributes {stable_mosaic.version = 11 : i64} {
  func.func @_compose_kernel(%arg0: i32, %arg1: i32, %arg2: memref<1x1x128xf32, #tpu.memory_space<vmem>>, %arg3: memref<1x6x128xf32, #tpu.memory_space<vmem>>, %arg4: memref<1x6x128xf32, #tpu.memory_space<vmem>>, %arg5: memref<1x6x128xf32, #tpu.memory_space<vmem>>, %arg6: memref<1x6x128xf32, #tpu.memory_space<vmem>>, %arg7: memref<1x6x128xf32, #tpu.memory_space<vmem>>, %arg8: memref<1x1x128xf32, #tpu.memory_space<vmem>>) attributes {dimension_semantics = [#tpu.dimension_semantics<parallel>, #tpu.dimension_semantics<arbitrary>], iteration_bounds = array<i64: 2, 1>, scalar_prefetch = 0 : i64, scratch_operands = 0 : i64, tpu.core_type = #tpu.core_type<tc>, window_params = [{transform_indices = @transform_0, window_bounds = array<i64: 1, 1, 128>}, {transform_indices = @transform_1, window_bounds = array<i64: 1, 6, 128>}, {transform_indices = @transform_2, window_bounds = array<i64: 1, 6, 128>}, {transform_indices = @transform_3, window_bounds = array<i64: 1, 6, 128>}, {transform_indices = @transform_4, window_bounds = array<i64: 1, 6, 128>}, {transform_indices = @transform_5, window_bounds = array<i64: 1, 6, 128>}, {transform_indices = @transform_6, window_bounds = array<i64: 1, 1, 128>}]} {
    %c0 = arith.constant 0 : index
    %c0_0 = arith.constant 0 : index
    %c0_1 = arith.constant 0 : index
    %0 = vector.load %arg3[%c0, %c0_0, %c0_1] : memref<1x6x128xf32, #tpu.memory_space<vmem>>, vector<1x6x128xf32>
    %1 = vector.shape_cast %0 : vector<1x6x128xf32> to vector<6x128xf32>
    %cst = arith.constant 1.000000e+00 : f32
    %2 = vector.broadcast %cst : f32 to vector<6x128xf32>
    %3 = arith.subf %2, %1 : vector<6x128xf32>
    %c0_2 = arith.constant 0 : index
    %c0_3 = arith.constant 0 : index
    %c0_4 = arith.constant 0 : index
    %4 = vector.load %arg4[%c0_2, %c0_3, %c0_4] : memref<1x6x128xf32, #tpu.memory_space<vmem>>, vector<1x6x128xf32>
    %5 = vector.shape_cast %4 : vector<1x6x128xf32> to vector<6x128xf32>
    %cst_5 = arith.constant 0.000000e+00 : f32
    %cst_6 = arith.constant 1.000000e+01 : f32
    %6 = vector.broadcast %cst_5 : f32 to vector<6x128xf32>
    %7 = arith.maximumf %6, %5 : vector<6x128xf32>
    %8 = vector.broadcast %cst_6 : f32 to vector<6x128xf32>
    %9 = arith.minimumf %8, %7 : vector<6x128xf32>
    %c0_7 = arith.constant 0 : index
    %c0_8 = arith.constant 0 : index
    %c0_9 = arith.constant 0 : index
    %10 = vector.load %arg5[%c0_7, %c0_8, %c0_9] : memref<1x6x128xf32, #tpu.memory_space<vmem>>, vector<1x6x128xf32>
    %11 = vector.shape_cast %10 : vector<1x6x128xf32> to vector<6x128xf32>
    %cst_10 = arith.constant 1.000000e+00 : f32
    %12 = vector.broadcast %cst_10 : f32 to vector<6x128xf32>
    %13 = arith.addf %11, %12 : vector<6x128xf32>
    %14 = math.log %13 : vector<6x128xf32>
    %15 = arith.subf %9, %14 : vector<6x128xf32>
    %16 = arith.mulf %3, %15 : vector<6x128xf32>
    %17 = math.absf %16 : vector<6x128xf32>
    %18 = vector.shape_cast %17 : vector<6x128xf32> to vector<1x6x128xf32>
    %cst_11 = arith.constant dense<0.000000e+00> : vector<1xf32>
    %19 = vector.multi_reduction <add>, %18, %cst_11 [1, 2] : vector<1x6x128xf32> to vector<1xf32>
    %20 = vector.shape_cast %19 : vector<1xf32> to vector<1x1x1xf32>
    %21 = vector.extract %20[0, 0, 0] : f32 from vector<1x1x1xf32>
    %c0_i32 = arith.constant 0 : i32
    %22 = arith.cmpi eq, %arg1, %c0_i32 : i32
    %23 = arith.extui %22 : i1 to i32
    %c0_i32_12 = arith.constant 0 : i32
    %24 = arith.cmpi ne, %23, %c0_i32_12 : i32
    scf.if %24 {
      %cst_41 = arith.constant 0.000000e+00 : f32
      %74 = vector.broadcast %cst_41 : f32 to vector<1x1x128xf32>
      %c0_42 = arith.constant 0 : index
      %c0_43 = arith.constant 0 : index
      %c0_44 = arith.constant 0 : index
      %75 = vector.load %arg8[%c0_42, %c0_43, %c0_44] : memref<1x1x128xf32, #tpu.memory_space<vmem>>, vector<1x1x128xf32>
      tpu.vector_store %arg8[%c0_42, %c0_43, %c0_44], %74 {strides = array<i32>} : memref<1x1x128xf32, #tpu.memory_space<vmem>>, vector<1x1x128xf32>,
    } else {
    }
    %c0_13 = arith.constant 0 : index
    %c0_14 = arith.constant 0 : index
    %c0_15 = arith.constant 0 : index
    %25 = vector.load %arg8[%c0_13, %c0_14, %c0_15] : memref<1x1x128xf32, #tpu.memory_space<vmem>>, vector<1x1x128xf32>
    %26 = vector.broadcast %21 : f32 to vector<1x1x128xf32>
    %27 = arith.addf %25, %26 : vector<1x1x128xf32>
    %c0_16 = arith.constant 0 : index
    %c0_17 = arith.constant 0 : index
    %c0_18 = arith.constant 0 : index
    %28 = vector.load %arg8[%c0_16, %c0_17, %c0_18] : memref<1x1x128xf32, #tpu.memory_space<vmem>>, vector<1x1x128xf32>
    tpu.vector_store %arg8[%c0_16, %c0_17, %c0_18], %27 {strides = array<i32>} : memref<1x1x128xf32, #tpu.memory_space<vmem>>, vector<1x1x128xf32>,
    %c0_19 = arith.constant 0 : index
    %c0_20 = arith.constant 0 : index
    %c0_21 = arith.constant 0 : index
    %29 = vector.load %arg2[%c0_19, %c0_20, %c0_21] : memref<1x1x128xf32, #tpu.memory_space<vmem>>, vector<1x1x128xf32>
    %30 = vector.shape_cast %29 : vector<1x1x128xf32> to vector<1x128xf32>
    %31 = tpu.reciprocal %30 {approx = true} : vector<1x128xf32> -> vector<1x128xf32>
    %32 = math.exp %9 : vector<6x128xf32>
    %cst_22 = arith.constant 1.000000e+00 : f32
    %33 = vector.broadcast %cst_22 : f32 to vector<6x128xf32>
    %34 = arith.subf %32, %33 : vector<6x128xf32>
    %cst_23 = arith.constant 0.000000e+00 : f32
    %cst_24 = arith.constant 5.000000e+01 : f32
    %35 = vector.broadcast %cst_23 : f32 to vector<6x128xf32>
    %36 = arith.maximumf %35, %34 : vector<6x128xf32>
    %37 = vector.broadcast %cst_24 : f32 to vector<6x128xf32>
    %38 = arith.minimumf %37, %36 : vector<6x128xf32>
    %39 = vector.broadcast %31 : vector<1x128xf32> to vector<6x128xf32>
    %40 = arith.mulf %38, %39 : vector<6x128xf32>
    %cst_25 = arith.constant 0.000000e+00 : f32
    %cst_26 = arith.constant 5.000000e+01 : f32
    %41 = vector.broadcast %cst_25 : f32 to vector<6x128xf32>
    %42 = arith.maximumf %41, %11 : vector<6x128xf32>
    %43 = vector.broadcast %cst_26 : f32 to vector<6x128xf32>
    %44 = arith.minimumf %43, %42 : vector<6x128xf32>
    %45 = vector.broadcast %31 : vector<1x128xf32> to vector<6x128xf32>
    %46 = arith.mulf %44, %45 : vector<6x128xf32>
    %cst_27 = arith.constant 0.000000e+00 : f32
    %47 = vector.broadcast %cst_27 : f32 to vector<6x128xf32>
    %48 = arith.maximumf %40, %47 : vector<6x128xf32>
    %cst_28 = arith.constant 5.000000e+02 : f32
    %49 = vector.broadcast %cst_28 : f32 to vector<6x128xf32>
    %50 = arith.mulf %49, %48 : vector<6x128xf32>
    %cst_29 = arith.constant 1.000000e+00 : f32
    %51 = vector.broadcast %cst_29 : f32 to vector<6x128xf32>
    %52 = arith.addf %51, %50 : vector<6x128xf32>
    %53 = math.log %52 : vector<6x128xf32>
    %cst_30 = arith.constant 0.160859481 : f32
    %54 = vector.broadcast %cst_30 : f32 to vector<6x128xf32>
    %55 = arith.mulf %53, %54 : vector<6x128xf32>
    %cst_31 = arith.constant 0.000000e+00 : f32
    %56 = vector.broadcast %cst_31 : f32 to vector<6x128xf32>
    %57 = arith.maximumf %46, %56 : vector<6x128xf32>
    %cst_32 = arith.constant 5.000000e+02 : f32
    %58 = vector.broadcast %cst_32 : f32 to vector<6x128xf32>
    %59 = arith.mulf %58, %57 : vector<6x128xf32>
    %cst_33 = arith.constant 1.000000e+00 : f32
    %60 = vector.broadcast %cst_33 : f32 to vector<6x128xf32>
    %61 = arith.addf %60, %59 : vector<6x128xf32>
    %62 = math.log %61 : vector<6x128xf32>
    %cst_34 = arith.constant 0.160859481 : f32
    %63 = vector.broadcast %cst_34 : f32 to vector<6x128xf32>
    %64 = arith.mulf %62, %63 : vector<6x128xf32>
    %65 = arith.mulf %1, %64 : vector<6x128xf32>
    %66 = arith.mulf %3, %55 : vector<6x128xf32>
    %67 = arith.addf %65, %66 : vector<6x128xf32>
    %c0_35 = arith.constant 0 : index
    %c0_36 = arith.constant 0 : index
    %c0_37 = arith.constant 0 : index
    %68 = vector.load %arg6[%c0_35, %c0_36, %c0_37] : memref<1x6x128xf32, #tpu.memory_space<vmem>>, vector<1x6x128xf32>
    %69 = vector.shape_cast %68 : vector<1x6x128xf32> to vector<6x128xf32>
    %70 = vector.shape_cast %67 : vector<6x128xf32> to vector<1x6x128xf32>
    tpu.vector_store %arg6[%c0_35, %c0_36, %c0_37], %70 {strides = array<i32>} : memref<1x6x128xf32, #tpu.memory_space<vmem>>, vector<1x6x128xf32>,
    %c0_38 = arith.constant 0 : index
    %c0_39 = arith.constant 0 : index
    %c0_40 = arith.constant 0 : index
    %71 = vector.load %arg7[%c0_38, %c0_39, %c0_40] : memref<1x6x128xf32, #tpu.memory_space<vmem>>, vector<1x6x128xf32>
    %72 = vector.shape_cast %71 : vector<1x6x128xf32> to vector<6x128xf32>
    %73 = vector.shape_cast %64 : vector<6x128xf32> to vector<1x6x128xf32>
    tpu.vector_store %arg7[%c0_38, %c0_39, %c0_40], %73 {strides = array<i32>} : memref<1x6x128xf32, #tpu.memory_space<vmem>>, vector<1x6x128xf32>,
    return
  }
  func.func @transform_0(%arg0: i32, %arg1: i32) -> (i32, i32, i32) {
    %c0_i32 = arith.constant 0 : i32
    %c0_i32_0 = arith.constant 0 : i32
    %c0_i32_1 = arith.constant 0 : i32
    return %arg0, %c0_i32, %c0_i32_0 : i32, i32, i32
  }
  func.func @transform_1(%arg0: i32, %arg1: i32) -> (i32, i32, i32) {
    %c0_i32 = arith.constant 0 : i32
    %c0_i32_0 = arith.constant 0 : i32
    return %arg0, %arg1, %c0_i32 : i32, i32, i32
  }
  func.func @transform_2(%arg0: i32, %arg1: i32) -> (i32, i32, i32) {
    %c0_i32 = arith.constant 0 : i32
    %c0_i32_0 = arith.constant 0 : i32
    return %arg0, %arg1, %c0_i32 : i32, i32, i32
  }
  func.func @transform_3(%arg0: i32, %arg1: i32) -> (i32, i32, i32) {
    %c0_i32 = arith.constant 0 : i32
    %c0_i32_0 = arith.constant 0 : i32
    return %arg0, %arg1, %c0_i32 : i32, i32, i32
  }
  func.func @transform_4(%arg0: i32, %arg1: i32) -> (i32, i32, i32) {
    %c0_i32 = arith.constant 0 : i32
    %c0_i32_0 = arith.constant 0 : i32
    return %arg0, %arg1, %c0_i32 : i32, i32, i32
  }
  func.func @transform_5(%arg0: i32, %arg1: i32) -> (i32, i32, i32) {
    %c0_i32 = arith.constant 0 : i32
    %c0_i32_0 = arith.constant 0 : i32
    return %arg0, %arg1, %c0_i32 : i32, i32, i32
  }
  func.func @transform_6(%arg0: i32, %arg1: i32) -> (i32, i32, i32) {
    %c0_i32 = arith.constant 0 : i32
    %c0_i32_0 = arith.constant 0 : i32
    %c0_i32_1 = arith.constant 0 : i32
    return %arg0, %c0_i32, %c0_i32_0 : i32, i32, i32
  }
}

module attributes {stable_mosaic.version = 11 : i64} {
  func.func @_conv3x3_kernel(%arg0: i32, %arg1: memref<1x8x290xbf16, #tpu.memory_space<vmem>>, %arg2: memref<9x8x8xbf16, #tpu.memory_space<vmem>>, %arg3: memref<1x8x256xbf16, #tpu.memory_space<vmem>>) attributes {dimension_semantics = [#tpu.dimension_semantics<parallel>], iteration_bounds = array<i64: 2>, scalar_prefetch = 0 : i64, scratch_operands = 0 : i64, tpu.core_type = #tpu.core_type<tc>, window_params = [{transform_indices = @transform_0, window_bounds = array<i64: 1, 8, 290>}, {pipeline_mode = #tpu.pipeline_mode<synchronous>, transform_indices = @transform_1, window_bounds = array<i64: 9, 8, 8>}, {transform_indices = @transform_2, window_bounds = array<i64: 1, 8, 256>}]} {
    %c0 = arith.constant 0 : index
    %c0_0 = arith.constant 0 : index
    %c0_1 = arith.constant 0 : index
    %0 = vector.load %arg1[%c0, %c0_0, %c0_1] : memref<1x8x290xbf16, #tpu.memory_space<vmem>>, vector<1x8x290xbf16>
    %1 = vector.shape_cast %0 : vector<1x8x290xbf16> to vector<8x290xbf16>
    %2 = tpu.iota {dimensions = array<i32: 1>} : vector<1x256xi32>
    %c16_i32 = arith.constant 16 : i32
    %c0_i32 = arith.constant 0 : i32
    %3 = arith.cmpi eq, %c16_i32, %c0_i32 : i32
    %c1_i32 = arith.constant 1 : i32
    %4 = arith.select %3, %c1_i32, %c16_i32 : i32
    %5 = vector.broadcast %4 : i32 to vector<1x256xi32>
    %6 = arith.remsi %2, %5 : vector<1x256xi32>
    %c0_i32_2 = arith.constant 0 : i32
    %7 = vector.broadcast %c0_i32_2 : i32 to vector<1x256xi32>
    %8 = arith.cmpi ne, %6, %7 : vector<1x256xi32>
    %c0_i32_3 = arith.constant 0 : i32
    %9 = vector.broadcast %c0_i32_3 : i32 to vector<1x256xi32>
    %10 = arith.cmpi slt, %6, %9 : vector<1x256xi32>
    %c0_i32_4 = arith.constant 0 : i32
    %11 = arith.cmpi slt, %4, %c0_i32_4 : i32
    %12 = vector.broadcast %11 : i1 to vector<1x256xi1>
    %13 = vector.broadcast %12 : vector<1x256xi1> to vector<1x256xi1>
    %14 = arith.xori %10, %13 : vector<1x256xi1>
    %15 = arith.andi %14, %8 : vector<1x256xi1>
    %16 = vector.broadcast %4 : i32 to vector<1x256xi32>
    %17 = arith.addi %6, %16 : vector<1x256xi32>
    %18 = arith.select %15, %17, %6 : vector<1x256xi1>, vector<1x256xi32>
    %c0_i32_5 = arith.constant 0 : i32
    %19 = vector.broadcast %c0_i32_5 : i32 to vector<1x256xi32>
    %20 = arith.cmpi ne, %18, %19 : vector<1x256xi32>
    %c15_i32 = arith.constant 15 : i32
    %21 = vector.broadcast %c15_i32 : i32 to vector<1x256xi32>
    %22 = arith.cmpi ne, %18, %21 : vector<1x256xi32>
    %cst = arith.constant 0.000000e+00 : f32
    %23 = vector.broadcast %cst : f32 to vector<8x256xf32>
    %24 = vector.extract_strided_slice %1 {offsets = [0, 0], sizes = [8, 256], strides = [1, 1]} : vector<8x290xbf16> to vector<8x256xbf16>
    %cst_6 = arith.constant 0.000000e+00 : bf16
    %25 = vector.broadcast %cst_6 : bf16 to vector<8x256xbf16>
    %26 = vector.shape_cast %20 : vector<1x256xi1> to vector<1x256xi1>
    %27 = vector.broadcast %26 : vector<1x256xi1> to vector<8x256xi1>
    %28 = arith.select %27, %24, %25 : vector<8x256xi1>, vector<8x256xbf16>
    %c0_7 = arith.constant 0 : index
    %c0_8 = arith.constant 0 : index
    %c0_9 = arith.constant 0 : index
    %29 = vector.load %arg2[%c0_7, %c0_8, %c0_9] : memref<9x8x8xbf16, #tpu.memory_space<vmem>>, vector<1x8x8xbf16>
    %30 = vector.shape_cast %29 : vector<1x8x8xbf16> to vector<8x8xbf16>
    %cst_10 = arith.constant dense<0.000000e+00> : vector<8x256xf32>
    %31 = tpu.matmul %30, %28, %cst_10 {dimension_numbers = #tpu.dot_dimension_numbers<[1], [0], [0], [1], [0, 0, 1, 1], [], []>} : vector<8x8xbf16>, vector<8x256xbf16>, vector<8x256xf32> -> vector<8x256xf32>
    %32 = arith.addf %23, %31 : vector<8x256xf32>
    %33 = vector.extract_strided_slice %1 {offsets = [0, 1], sizes = [8, 256], strides = [1, 1]} : vector<8x290xbf16> to vector<8x256xbf16>
    %c1 = arith.constant 1 : index
    %c0_11 = arith.constant 0 : index
    %c0_12 = arith.constant 0 : index
    %34 = vector.load %arg2[%c1, %c0_11, %c0_12] : memref<9x8x8xbf16, #tpu.memory_space<vmem>>, vector<1x8x8xbf16>
    %35 = vector.shape_cast %34 : vector<1x8x8xbf16> to vector<8x8xbf16>
    %cst_13 = arith.constant dense<0.000000e+00> : vector<8x256xf32>
    %36 = tpu.matmul %35, %33, %cst_13 {dimension_numbers = #tpu.dot_dimension_numbers<[1], [0], [0], [1], [0, 0, 1, 1], [], []>} : vector<8x8xbf16>, vector<8x256xbf16>, vector<8x256xf32> -> vector<8x256xf32>
    %37 = arith.addf %32, %36 : vector<8x256xf32>
    %38 = vector.extract_strided_slice %1 {offsets = [0, 2], sizes = [8, 256], strides = [1, 1]} : vector<8x290xbf16> to vector<8x256xbf16>
    %cst_14 = arith.constant 0.000000e+00 : bf16
    %39 = vector.broadcast %cst_14 : bf16 to vector<8x256xbf16>
    %40 = vector.shape_cast %22 : vector<1x256xi1> to vector<1x256xi1>
    %41 = vector.broadcast %40 : vector<1x256xi1> to vector<8x256xi1>
    %42 = arith.select %41, %38, %39 : vector<8x256xi1>, vector<8x256xbf16>
    %c2 = arith.constant 2 : index
    %c0_15 = arith.constant 0 : index
    %c0_16 = arith.constant 0 : index
    %43 = vector.load %arg2[%c2, %c0_15, %c0_16] : memref<9x8x8xbf16, #tpu.memory_space<vmem>>, vector<1x8x8xbf16>
    %44 = vector.shape_cast %43 : vector<1x8x8xbf16> to vector<8x8xbf16>
    %cst_17 = arith.constant dense<0.000000e+00> : vector<8x256xf32>
    %45 = tpu.matmul %44, %42, %cst_17 {dimension_numbers = #tpu.dot_dimension_numbers<[1], [0], [0], [1], [0, 0, 1, 1], [], []>} : vector<8x8xbf16>, vector<8x256xbf16>, vector<8x256xf32> -> vector<8x256xf32>
    %46 = arith.addf %37, %45 : vector<8x256xf32>
    %47 = vector.extract_strided_slice %1 {offsets = [0, 16], sizes = [8, 256], strides = [1, 1]} : vector<8x290xbf16> to vector<8x256xbf16>
    %cst_18 = arith.constant 0.000000e+00 : bf16
    %48 = vector.broadcast %cst_18 : bf16 to vector<8x256xbf16>
    %49 = vector.shape_cast %20 : vector<1x256xi1> to vector<1x256xi1>
    %50 = vector.broadcast %49 : vector<1x256xi1> to vector<8x256xi1>
    %51 = arith.select %50, %47, %48 : vector<8x256xi1>, vector<8x256xbf16>
    %c3 = arith.constant 3 : index
    %c0_19 = arith.constant 0 : index
    %c0_20 = arith.constant 0 : index
    %52 = vector.load %arg2[%c3, %c0_19, %c0_20] : memref<9x8x8xbf16, #tpu.memory_space<vmem>>, vector<1x8x8xbf16>
    %53 = vector.shape_cast %52 : vector<1x8x8xbf16> to vector<8x8xbf16>
    %cst_21 = arith.constant dense<0.000000e+00> : vector<8x256xf32>
    %54 = tpu.matmul %53, %51, %cst_21 {dimension_numbers = #tpu.dot_dimension_numbers<[1], [0], [0], [1], [0, 0, 1, 1], [], []>} : vector<8x8xbf16>, vector<8x256xbf16>, vector<8x256xf32> -> vector<8x256xf32>
    %55 = arith.addf %46, %54 : vector<8x256xf32>
    %56 = vector.extract_strided_slice %1 {offsets = [0, 17], sizes = [8, 256], strides = [1, 1]} : vector<8x290xbf16> to vector<8x256xbf16>
    %c4 = arith.constant 4 : index
    %c0_22 = arith.constant 0 : index
    %c0_23 = arith.constant 0 : index
    %57 = vector.load %arg2[%c4, %c0_22, %c0_23] : memref<9x8x8xbf16, #tpu.memory_space<vmem>>, vector<1x8x8xbf16>
    %58 = vector.shape_cast %57 : vector<1x8x8xbf16> to vector<8x8xbf16>
    %cst_24 = arith.constant dense<0.000000e+00> : vector<8x256xf32>
    %59 = tpu.matmul %58, %56, %cst_24 {dimension_numbers = #tpu.dot_dimension_numbers<[1], [0], [0], [1], [0, 0, 1, 1], [], []>} : vector<8x8xbf16>, vector<8x256xbf16>, vector<8x256xf32> -> vector<8x256xf32>
    %60 = arith.addf %55, %59 : vector<8x256xf32>
    %61 = vector.extract_strided_slice %1 {offsets = [0, 18], sizes = [8, 256], strides = [1, 1]} : vector<8x290xbf16> to vector<8x256xbf16>
    %cst_25 = arith.constant 0.000000e+00 : bf16
    %62 = vector.broadcast %cst_25 : bf16 to vector<8x256xbf16>
    %63 = vector.shape_cast %22 : vector<1x256xi1> to vector<1x256xi1>
    %64 = vector.broadcast %63 : vector<1x256xi1> to vector<8x256xi1>
    %65 = arith.select %64, %61, %62 : vector<8x256xi1>, vector<8x256xbf16>
    %c5 = arith.constant 5 : index
    %c0_26 = arith.constant 0 : index
    %c0_27 = arith.constant 0 : index
    %66 = vector.load %arg2[%c5, %c0_26, %c0_27] : memref<9x8x8xbf16, #tpu.memory_space<vmem>>, vector<1x8x8xbf16>
    %67 = vector.shape_cast %66 : vector<1x8x8xbf16> to vector<8x8xbf16>
    %cst_28 = arith.constant dense<0.000000e+00> : vector<8x256xf32>
    %68 = tpu.matmul %67, %65, %cst_28 {dimension_numbers = #tpu.dot_dimension_numbers<[1], [0], [0], [1], [0, 0, 1, 1], [], []>} : vector<8x8xbf16>, vector<8x256xbf16>, vector<8x256xf32> -> vector<8x256xf32>
    %69 = arith.addf %60, %68 : vector<8x256xf32>
    %70 = vector.extract_strided_slice %1 {offsets = [0, 32], sizes = [8, 256], strides = [1, 1]} : vector<8x290xbf16> to vector<8x256xbf16>
    %cst_29 = arith.constant 0.000000e+00 : bf16
    %71 = vector.broadcast %cst_29 : bf16 to vector<8x256xbf16>
    %72 = vector.shape_cast %20 : vector<1x256xi1> to vector<1x256xi1>
    %73 = vector.broadcast %72 : vector<1x256xi1> to vector<8x256xi1>
    %74 = arith.select %73, %70, %71 : vector<8x256xi1>, vector<8x256xbf16>
    %c6 = arith.constant 6 : index
    %c0_30 = arith.constant 0 : index
    %c0_31 = arith.constant 0 : index
    %75 = vector.load %arg2[%c6, %c0_30, %c0_31] : memref<9x8x8xbf16, #tpu.memory_space<vmem>>, vector<1x8x8xbf16>
    %76 = vector.shape_cast %75 : vector<1x8x8xbf16> to vector<8x8xbf16>
    %cst_32 = arith.constant dense<0.000000e+00> : vector<8x256xf32>
    %77 = tpu.matmul %76, %74, %cst_32 {dimension_numbers = #tpu.dot_dimension_numbers<[1], [0], [0], [1], [0, 0, 1, 1], [], []>} : vector<8x8xbf16>, vector<8x256xbf16>, vector<8x256xf32> -> vector<8x256xf32>
    %78 = arith.addf %69, %77 : vector<8x256xf32>
    %79 = vector.extract_strided_slice %1 {offsets = [0, 33], sizes = [8, 256], strides = [1, 1]} : vector<8x290xbf16> to vector<8x256xbf16>
    %c7 = arith.constant 7 : index
    %c0_33 = arith.constant 0 : index
    %c0_34 = arith.constant 0 : index
    %80 = vector.load %arg2[%c7, %c0_33, %c0_34] : memref<9x8x8xbf16, #tpu.memory_space<vmem>>, vector<1x8x8xbf16>
    %81 = vector.shape_cast %80 : vector<1x8x8xbf16> to vector<8x8xbf16>
    %cst_35 = arith.constant dense<0.000000e+00> : vector<8x256xf32>
    %82 = tpu.matmul %81, %79, %cst_35 {dimension_numbers = #tpu.dot_dimension_numbers<[1], [0], [0], [1], [0, 0, 1, 1], [], []>} : vector<8x8xbf16>, vector<8x256xbf16>, vector<8x256xf32> -> vector<8x256xf32>
    %83 = arith.addf %78, %82 : vector<8x256xf32>
    %84 = vector.extract_strided_slice %1 {offsets = [0, 34], sizes = [8, 256], strides = [1, 1]} : vector<8x290xbf16> to vector<8x256xbf16>
    %cst_36 = arith.constant 0.000000e+00 : bf16
    %85 = vector.broadcast %cst_36 : bf16 to vector<8x256xbf16>
    %86 = vector.shape_cast %22 : vector<1x256xi1> to vector<1x256xi1>
    %87 = vector.broadcast %86 : vector<1x256xi1> to vector<8x256xi1>
    %88 = arith.select %87, %84, %85 : vector<8x256xi1>, vector<8x256xbf16>
    %c8 = arith.constant 8 : index
    %c0_37 = arith.constant 0 : index
    %c0_38 = arith.constant 0 : index
    %89 = vector.load %arg2[%c8, %c0_37, %c0_38] : memref<9x8x8xbf16, #tpu.memory_space<vmem>>, vector<1x8x8xbf16>
    %90 = vector.shape_cast %89 : vector<1x8x8xbf16> to vector<8x8xbf16>
    %cst_39 = arith.constant dense<0.000000e+00> : vector<8x256xf32>
    %91 = tpu.matmul %90, %88, %cst_39 {dimension_numbers = #tpu.dot_dimension_numbers<[1], [0], [0], [1], [0, 0, 1, 1], [], []>} : vector<8x8xbf16>, vector<8x256xbf16>, vector<8x256xf32> -> vector<8x256xf32>
    %92 = arith.addf %83, %91 : vector<8x256xf32>
    %cst_40 = arith.constant 0.000000e+00 : f32
    %93 = vector.broadcast %cst_40 : f32 to vector<8x256xf32>
    %94 = arith.maximumf %92, %93 : vector<8x256xf32>
    %95 = arith.truncf %94 : vector<8x256xf32> to vector<8x256xbf16>
    %c0_41 = arith.constant 0 : index
    %c0_42 = arith.constant 0 : index
    %c0_43 = arith.constant 0 : index
    %96 = vector.load %arg3[%c0_41, %c0_42, %c0_43] : memref<1x8x256xbf16, #tpu.memory_space<vmem>>, vector<1x8x256xbf16>
    %97 = vector.shape_cast %96 : vector<1x8x256xbf16> to vector<8x256xbf16>
    %98 = vector.shape_cast %95 : vector<8x256xbf16> to vector<1x8x256xbf16>
    tpu.vector_store %arg3[%c0_41, %c0_42, %c0_43], %98 {strides = array<i32>} : memref<1x8x256xbf16, #tpu.memory_space<vmem>>, vector<1x8x256xbf16>,
    return
  }
  func.func @transform_0(%arg0: i32) -> (i32, i32, i32) {
    %c0_i32 = arith.constant 0 : i32
    %c0_i32_0 = arith.constant 0 : i32
    %c0_i32_1 = arith.constant 0 : i32
    return %arg0, %c0_i32, %c0_i32_0 : i32, i32, i32
  }
  func.func @transform_1(%arg0: i32) -> (i32, i32, i32) {
    %c0_i32 = arith.constant 0 : i32
    %c0_i32_0 = arith.constant 0 : i32
    %c0_i32_1 = arith.constant 0 : i32
    %c0_i32_2 = arith.constant 0 : i32
    return %c0_i32, %c0_i32_0, %c0_i32_1 : i32, i32, i32
  }
  func.func @transform_2(%arg0: i32) -> (i32, i32, i32) {
    %c0_i32 = arith.constant 0 : i32
    %c0_i32_0 = arith.constant 0 : i32
    %c0_i32_1 = arith.constant 0 : i32
    return %arg0, %c0_i32, %c0_i32_0 : i32, i32, i32
  }
}

module attributes {stable_mosaic.version = 11 : i64} {
  func.func @_prc_style_kernel(%arg0: i32, %arg1: i32, %arg2: memref<1x8x256xbf16, #tpu.memory_space<vmem>>, %arg3: memref<1x8x256xbf16, #tpu.memory_space<vmem>>, %arg4: memref<1x1x128xf32, #tpu.memory_space<vmem>>, %arg5: memref<1x1x128xf32, #tpu.memory_space<vmem>>, %arg6: memref<8x8xf32, #tpu.memory_space<vmem>>, %arg7: memref<8x8xf32, #tpu.memory_space<vmem>>) attributes {dimension_semantics = [#tpu.dimension_semantics<parallel>, #tpu.dimension_semantics<arbitrary>], iteration_bounds = array<i64: 2, 1>, scalar_prefetch = 0 : i64, scratch_operands = 2 : i64, tpu.core_type = #tpu.core_type<tc>, window_params = [{transform_indices = @transform_0, window_bounds = array<i64: 1, 8, 256>}, {transform_indices = @transform_1, window_bounds = array<i64: 1, 8, 256>}, {transform_indices = @transform_2, window_bounds = array<i64: 1, 1, 128>}, {transform_indices = @transform_3, window_bounds = array<i64: 1, 1, 128>}]} {
    %c0 = arith.constant 0 : index
    %c0_0 = arith.constant 0 : index
    %c0_1 = arith.constant 0 : index
    %0 = vector.load %arg2[%c0, %c0_0, %c0_1] : memref<1x8x256xbf16, #tpu.memory_space<vmem>>, vector<1x8x256xbf16>
    %1 = vector.shape_cast %0 : vector<1x8x256xbf16> to vector<8x256xbf16>
    %c0_2 = arith.constant 0 : index
    %c0_3 = arith.constant 0 : index
    %c0_4 = arith.constant 0 : index
    %2 = vector.load %arg3[%c0_2, %c0_3, %c0_4] : memref<1x8x256xbf16, #tpu.memory_space<vmem>>, vector<1x8x256xbf16>
    %3 = vector.shape_cast %2 : vector<1x8x256xbf16> to vector<8x256xbf16>
    %c0_i32 = arith.constant 0 : i32
    %4 = arith.cmpi eq, %arg1, %c0_i32 : i32
    %5 = arith.extui %4 : i1 to i32
    %c0_i32_5 = arith.constant 0 : i32
    %6 = arith.cmpi ne, %5, %c0_i32_5 : i32
    scf.if %6 {
      %cst_24 = arith.constant 0.000000e+00 : f32
      %30 = vector.broadcast %cst_24 : f32 to vector<8x8xf32>
      %c0_25 = arith.constant 0 : index
      %c0_26 = arith.constant 0 : index
      %31 = vector.load %arg6[%c0_25, %c0_26] : memref<8x8xf32, #tpu.memory_space<vmem>>, vector<8x8xf32>
      tpu.vector_store %arg6[%c0_25, %c0_26], %30 {strides = array<i32>} : memref<8x8xf32, #tpu.memory_space<vmem>>, vector<8x8xf32>,
      %cst_27 = arith.constant 0.000000e+00 : f32
      %32 = vector.broadcast %cst_27 : f32 to vector<8x8xf32>
      %c0_28 = arith.constant 0 : index
      %c0_29 = arith.constant 0 : index
      %33 = vector.load %arg7[%c0_28, %c0_29] : memref<8x8xf32, #tpu.memory_space<vmem>>, vector<8x8xf32>
      tpu.vector_store %arg7[%c0_28, %c0_29], %32 {strides = array<i32>} : memref<8x8xf32, #tpu.memory_space<vmem>>, vector<8x8xf32>,
      %cst_30 = arith.constant 0.000000e+00 : f32
      %34 = vector.broadcast %cst_30 : f32 to vector<1x1x128xf32>
      %c0_31 = arith.constant 0 : index
      %c0_32 = arith.constant 0 : index
      %c0_33 = arith.constant 0 : index
      %35 = vector.load %arg4[%c0_31, %c0_32, %c0_33] : memref<1x1x128xf32, #tpu.memory_space<vmem>>, vector<1x1x128xf32>
      tpu.vector_store %arg4[%c0_31, %c0_32, %c0_33], %34 {strides = array<i32>} : memref<1x1x128xf32, #tpu.memory_space<vmem>>, vector<1x1x128xf32>,
      %cst_34 = arith.constant 0.000000e+00 : f32
      %36 = vector.broadcast %cst_34 : f32 to vector<1x1x128xf32>
      %c0_35 = arith.constant 0 : index
      %c0_36 = arith.constant 0 : index
      %c0_37 = arith.constant 0 : index
      %37 = vector.load %arg5[%c0_35, %c0_36, %c0_37] : memref<1x1x128xf32, #tpu.memory_space<vmem>>, vector<1x1x128xf32>
      tpu.vector_store %arg5[%c0_35, %c0_36, %c0_37], %36 {strides = array<i32>} : memref<1x1x128xf32, #tpu.memory_space<vmem>>, vector<1x1x128xf32>,
    } else {
    }
    %c0_6 = arith.constant 0 : index
    %c0_7 = arith.constant 0 : index
    %7 = vector.load %arg6[%c0_6, %c0_7] : memref<8x8xf32, #tpu.memory_space<vmem>>, vector<8x8xf32>
    %cst = arith.constant dense<0.000000e+00> : vector<8x8xf32>
    %8 = tpu.matmul %1, %1, %cst {dimension_numbers = #tpu.dot_dimension_numbers<[1], [1], [0], [0], [0, 0, 1, 0], [], []>} : vector<8x256xbf16>, vector<8x256xbf16>, vector<8x8xf32> -> vector<8x8xf32>
    %9 = arith.addf %7, %8 : vector<8x8xf32>
    %c0_8 = arith.constant 0 : index
    %c0_9 = arith.constant 0 : index
    %10 = vector.load %arg6[%c0_8, %c0_9] : memref<8x8xf32, #tpu.memory_space<vmem>>, vector<8x8xf32>
    tpu.vector_store %arg6[%c0_8, %c0_9], %9 {strides = array<i32>} : memref<8x8xf32, #tpu.memory_space<vmem>>, vector<8x8xf32>,
    %c0_10 = arith.constant 0 : index
    %c0_11 = arith.constant 0 : index
    %11 = vector.load %arg7[%c0_10, %c0_11] : memref<8x8xf32, #tpu.memory_space<vmem>>, vector<8x8xf32>
    %cst_12 = arith.constant dense<0.000000e+00> : vector<8x8xf32>
    %12 = tpu.matmul %3, %3, %cst_12 {dimension_numbers = #tpu.dot_dimension_numbers<[1], [1], [0], [0], [0, 0, 1, 0], [], []>} : vector<8x256xbf16>, vector<8x256xbf16>, vector<8x8xf32> -> vector<8x8xf32>
    %13 = arith.addf %11, %12 : vector<8x8xf32>
    %c0_13 = arith.constant 0 : index
    %c0_14 = arith.constant 0 : index
    %14 = vector.load %arg7[%c0_13, %c0_14] : memref<8x8xf32, #tpu.memory_space<vmem>>, vector<8x8xf32>
    tpu.vector_store %arg7[%c0_13, %c0_14], %13 {strides = array<i32>} : memref<8x8xf32, #tpu.memory_space<vmem>>, vector<8x8xf32>,
    %c0_15 = arith.constant 0 : index
    %c0_16 = arith.constant 0 : index
    %c0_17 = arith.constant 0 : index
    %15 = vector.load %arg4[%c0_15, %c0_16, %c0_17] : memref<1x1x128xf32, #tpu.memory_space<vmem>>, vector<1x1x128xf32>
    %16 = arith.extf %1 : vector<8x256xbf16> to vector<8x256xf32>
    %17 = arith.extf %3 : vector<8x256xbf16> to vector<8x256xf32>
    %18 = arith.subf %16, %17 : vector<8x256xf32>
    %19 = math.absf %18 : vector<8x256xf32>
    %20 = vector.shape_cast %19 : vector<8x256xf32> to vector<1x8x256xf32>
    %cst_18 = arith.constant dense<0.000000e+00> : vector<1xf32>
    %21 = vector.multi_reduction <add>, %20, %cst_18 [1, 2] : vector<1x8x256xf32> to vector<1xf32>
    %22 = vector.shape_cast %21 : vector<1xf32> to vector<1x1x1xf32>
    %23 = vector.extract %22[0, 0, 0] : f32 from vector<1x1x1xf32>
    %24 = vector.broadcast %23 : f32 to vector<1x1x128xf32>
    %25 = arith.addf %15, %24 : vector<1x1x128xf32>
    %c0_19 = arith.constant 0 : index
    %c0_20 = arith.constant 0 : index
    %c0_21 = arith.constant 0 : index
    %26 = vector.load %arg4[%c0_19, %c0_20, %c0_21] : memref<1x1x128xf32, #tpu.memory_space<vmem>>, vector<1x1x128xf32>
    tpu.vector_store %arg4[%c0_19, %c0_20, %c0_21], %25 {strides = array<i32>} : memref<1x1x128xf32, #tpu.memory_space<vmem>>, vector<1x1x128xf32>,
    %c0_i32_22 = arith.constant 0 : i32
    %27 = arith.cmpi eq, %arg1, %c0_i32_22 : i32
    %28 = arith.extui %27 : i1 to i32
    %c0_i32_23 = arith.constant 0 : i32
    %29 = arith.cmpi ne, %28, %c0_i32_23 : i32
    scf.if %29 {
      %c0_24 = arith.constant 0 : index
      %c0_25 = arith.constant 0 : index
      %30 = vector.load %arg6[%c0_24, %c0_25] : memref<8x8xf32, #tpu.memory_space<vmem>>, vector<8x8xf32>
      %c0_26 = arith.constant 0 : index
      %c0_27 = arith.constant 0 : index
      %31 = vector.load %arg7[%c0_26, %c0_27] : memref<8x8xf32, #tpu.memory_space<vmem>>, vector<8x8xf32>
      %32 = arith.subf %30, %31 : vector<8x8xf32>
      %33 = math.absf %32 : vector<8x8xf32>
      %34 = vector.shape_cast %33 : vector<8x8xf32> to vector<1x8x8xf32>
      %cst_28 = arith.constant dense<0.000000e+00> : vector<1xf32>
      %35 = vector.multi_reduction <add>, %34, %cst_28 [1, 2] : vector<1x8x8xf32> to vector<1xf32>
      %36 = vector.shape_cast %35 : vector<1xf32> to vector<1x1x1xf32>
      %37 = vector.extract %36[0, 0, 0] : f32 from vector<1x1x1xf32>
      %cst_29 = arith.constant 4.8828125E-4 : f32
      %38 = arith.mulf %37, %cst_29 : f32
      %cst_30 = arith.constant 0.000000e+00 : f32
      %39 = vector.broadcast %cst_30 : f32 to vector<1x1x128xf32>
      %40 = vector.broadcast %38 : f32 to vector<1x1x128xf32>
      %41 = arith.addf %39, %40 : vector<1x1x128xf32>
      %c0_31 = arith.constant 0 : index
      %c0_32 = arith.constant 0 : index
      %c0_33 = arith.constant 0 : index
      %42 = vector.load %arg5[%c0_31, %c0_32, %c0_33] : memref<1x1x128xf32, #tpu.memory_space<vmem>>, vector<1x1x128xf32>
      tpu.vector_store %arg5[%c0_31, %c0_32, %c0_33], %41 {strides = array<i32>} : memref<1x1x128xf32, #tpu.memory_space<vmem>>, vector<1x1x128xf32>,
    } else {
    }
    return
  }
  func.func @transform_0(%arg0: i32, %arg1: i32) -> (i32, i32, i32) {
    %c0_i32 = arith.constant 0 : i32
    %c0_i32_0 = arith.constant 0 : i32
    return %arg0, %c0_i32, %arg1 : i32, i32, i32
  }
  func.func @transform_1(%arg0: i32, %arg1: i32) -> (i32, i32, i32) {
    %c0_i32 = arith.constant 0 : i32
    %c0_i32_0 = arith.constant 0 : i32
    return %arg0, %c0_i32, %arg1 : i32, i32, i32
  }
  func.func @transform_2(%arg0: i32, %arg1: i32) -> (i32, i32, i32) {
    %c0_i32 = arith.constant 0 : i32
    %c0_i32_0 = arith.constant 0 : i32
    %c0_i32_1 = arith.constant 0 : i32
    return %arg0, %c0_i32, %c0_i32_0 : i32, i32, i32
  }
  func.func @transform_3(%arg0: i32, %arg1: i32) -> (i32, i32, i32) {
    %c0_i32 = arith.constant 0 : i32
    %c0_i32_0 = arith.constant 0 : i32
    %c0_i32_1 = arith.constant 0 : i32
    return %arg0, %c0_i32, %c0_i32_0 : i32, i32, i32
  }
}

module attributes {stable_mosaic.version = 11 : i64} {
  func.func @_conv3x3_kernel(%arg0: i32, %arg1: memref<1x8x82xbf16, #tpu.memory_space<vmem>>, %arg2: memref<9x16x8xbf16, #tpu.memory_space<vmem>>, %arg3: memref<1x16x64xbf16, #tpu.memory_space<vmem>>) attributes {dimension_semantics = [#tpu.dimension_semantics<parallel>], iteration_bounds = array<i64: 2>, scalar_prefetch = 0 : i64, scratch_operands = 0 : i64, tpu.core_type = #tpu.core_type<tc>, window_params = [{transform_indices = @transform_0, window_bounds = array<i64: 1, 8, 82>}, {pipeline_mode = #tpu.pipeline_mode<synchronous>, transform_indices = @transform_1, window_bounds = array<i64: 9, 16, 8>}, {transform_indices = @transform_2, window_bounds = array<i64: 1, 16, 64>}]} {
    %c0 = arith.constant 0 : index
    %c0_0 = arith.constant 0 : index
    %c0_1 = arith.constant 0 : index
    %0 = vector.load %arg1[%c0, %c0_0, %c0_1] : memref<1x8x82xbf16, #tpu.memory_space<vmem>>, vector<1x8x82xbf16>
    %1 = vector.shape_cast %0 : vector<1x8x82xbf16> to vector<8x82xbf16>
    %2 = tpu.iota {dimensions = array<i32: 1>} : vector<1x64xi32>
    %c8_i32 = arith.constant 8 : i32
    %c0_i32 = arith.constant 0 : i32
    %3 = arith.cmpi eq, %c8_i32, %c0_i32 : i32
    %c1_i32 = arith.constant 1 : i32
    %4 = arith.select %3, %c1_i32, %c8_i32 : i32
    %5 = vector.broadcast %4 : i32 to vector<1x64xi32>
    %6 = arith.remsi %2, %5 : vector<1x64xi32>
    %c0_i32_2 = arith.constant 0 : i32
    %7 = vector.broadcast %c0_i32_2 : i32 to vector<1x64xi32>
    %8 = arith.cmpi ne, %6, %7 : vector<1x64xi32>
    %c0_i32_3 = arith.constant 0 : i32
    %9 = vector.broadcast %c0_i32_3 : i32 to vector<1x64xi32>
    %10 = arith.cmpi slt, %6, %9 : vector<1x64xi32>
    %c0_i32_4 = arith.constant 0 : i32
    %11 = arith.cmpi slt, %4, %c0_i32_4 : i32
    %12 = vector.broadcast %11 : i1 to vector<1x64xi1>
    %13 = vector.broadcast %12 : vector<1x64xi1> to vector<1x64xi1>
    %14 = arith.xori %10, %13 : vector<1x64xi1>
    %15 = arith.andi %14, %8 : vector<1x64xi1>
    %16 = vector.broadcast %4 : i32 to vector<1x64xi32>
    %17 = arith.addi %6, %16 : vector<1x64xi32>
    %18 = arith.select %15, %17, %6 : vector<1x64xi1>, vector<1x64xi32>
    %c0_i32_5 = arith.constant 0 : i32
    %19 = vector.broadcast %c0_i32_5 : i32 to vector<1x64xi32>
    %20 = arith.cmpi ne, %18, %19 : vector<1x64xi32>
    %c7_i32 = arith.constant 7 : i32
    %21 = vector.broadcast %c7_i32 : i32 to vector<1x64xi32>
    %22 = arith.cmpi ne, %18, %21 : vector<1x64xi32>
    %cst = arith.constant 0.000000e+00 : f32
    %23 = vector.broadcast %cst : f32 to vector<16x64xf32>
    %24 = vector.extract_strided_slice %1 {offsets = [0, 0], sizes = [8, 64], strides = [1, 1]} : vector<8x82xbf16> to vector<8x64xbf16>
    %cst_6 = arith.constant 0.000000e+00 : bf16
    %25 = vector.broadcast %cst_6 : bf16 to vector<8x64xbf16>
    %26 = vector.shape_cast %20 : vector<1x64xi1> to vector<1x64xi1>
    %27 = vector.broadcast %26 : vector<1x64xi1> to vector<8x64xi1>
    %28 = arith.select %27, %24, %25 : vector<8x64xi1>, vector<8x64xbf16>
    %c0_7 = arith.constant 0 : index
    %c0_8 = arith.constant 0 : index
    %c0_9 = arith.constant 0 : index
    %29 = vector.load %arg2[%c0_7, %c0_8, %c0_9] : memref<9x16x8xbf16, #tpu.memory_space<vmem>>, vector<1x16x8xbf16>
    %30 = vector.shape_cast %29 : vector<1x16x8xbf16> to vector<16x8xbf16>
    %cst_10 = arith.constant dense<0.000000e+00> : vector<16x64xf32>
    %31 = tpu.matmul %30, %28, %cst_10 {dimension_numbers = #tpu.dot_dimension_numbers<[1], [0], [0], [1], [0, 0, 1, 1], [], []>} : vector<16x8xbf16>, vector<8x64xbf16>, vector<16x64xf32> -> vector<16x64xf32>
    %32 = arith.addf %23, %31 : vector<16x64xf32>
    %33 = vector.extract_strided_slice %1 {offsets = [0, 1], sizes = [8, 64], strides = [1, 1]} : vector<8x82xbf16> to vector<8x64xbf16>
    %c1 = arith.constant 1 : index
    %c0_11 = arith.constant 0 : index
    %c0_12 = arith.constant 0 : index
    %34 = vector.load %arg2[%c1, %c0_11, %c0_12] : memref<9x16x8xbf16, #tpu.memory_space<vmem>>, vector<1x16x8xbf16>
    %35 = vector.shape_cast %34 : vector<1x16x8xbf16> to vector<16x8xbf16>
    %cst_13 = arith.constant dense<0.000000e+00> : vector<16x64xf32>
    %36 = tpu.matmul %35, %33, %cst_13 {dimension_numbers = #tpu.dot_dimension_numbers<[1], [0], [0], [1], [0, 0, 1, 1], [], []>} : vector<16x8xbf16>, vector<8x64xbf16>, vector<16x64xf32> -> vector<16x64xf32>
    %37 = arith.addf %32, %36 : vector<16x64xf32>
    %38 = vector.extract_strided_slice %1 {offsets = [0, 2], sizes = [8, 64], strides = [1, 1]} : vector<8x82xbf16> to vector<8x64xbf16>
    %cst_14 = arith.constant 0.000000e+00 : bf16
    %39 = vector.broadcast %cst_14 : bf16 to vector<8x64xbf16>
    %40 = vector.shape_cast %22 : vector<1x64xi1> to vector<1x64xi1>
    %41 = vector.broadcast %40 : vector<1x64xi1> to vector<8x64xi1>
    %42 = arith.select %41, %38, %39 : vector<8x64xi1>, vector<8x64xbf16>
    %c2 = arith.constant 2 : index
    %c0_15 = arith.constant 0 : index
    %c0_16 = arith.constant 0 : index
    %43 = vector.load %arg2[%c2, %c0_15, %c0_16] : memref<9x16x8xbf16, #tpu.memory_space<vmem>>, vector<1x16x8xbf16>
    %44 = vector.shape_cast %43 : vector<1x16x8xbf16> to vector<16x8xbf16>
    %cst_17 = arith.constant dense<0.000000e+00> : vector<16x64xf32>
    %45 = tpu.matmul %44, %42, %cst_17 {dimension_numbers = #tpu.dot_dimension_numbers<[1], [0], [0], [1], [0, 0, 1, 1], [], []>} : vector<16x8xbf16>, vector<8x64xbf16>, vector<16x64xf32> -> vector<16x64xf32>
    %46 = arith.addf %37, %45 : vector<16x64xf32>
    %47 = vector.extract_strided_slice %1 {offsets = [0, 8], sizes = [8, 64], strides = [1, 1]} : vector<8x82xbf16> to vector<8x64xbf16>
    %cst_18 = arith.constant 0.000000e+00 : bf16
    %48 = vector.broadcast %cst_18 : bf16 to vector<8x64xbf16>
    %49 = vector.shape_cast %20 : vector<1x64xi1> to vector<1x64xi1>
    %50 = vector.broadcast %49 : vector<1x64xi1> to vector<8x64xi1>
    %51 = arith.select %50, %47, %48 : vector<8x64xi1>, vector<8x64xbf16>
    %c3 = arith.constant 3 : index
    %c0_19 = arith.constant 0 : index
    %c0_20 = arith.constant 0 : index
    %52 = vector.load %arg2[%c3, %c0_19, %c0_20] : memref<9x16x8xbf16, #tpu.memory_space<vmem>>, vector<1x16x8xbf16>
    %53 = vector.shape_cast %52 : vector<1x16x8xbf16> to vector<16x8xbf16>
    %cst_21 = arith.constant dense<0.000000e+00> : vector<16x64xf32>
    %54 = tpu.matmul %53, %51, %cst_21 {dimension_numbers = #tpu.dot_dimension_numbers<[1], [0], [0], [1], [0, 0, 1, 1], [], []>} : vector<16x8xbf16>, vector<8x64xbf16>, vector<16x64xf32> -> vector<16x64xf32>
    %55 = arith.addf %46, %54 : vector<16x64xf32>
    %56 = vector.extract_strided_slice %1 {offsets = [0, 9], sizes = [8, 64], strides = [1, 1]} : vector<8x82xbf16> to vector<8x64xbf16>
    %c4 = arith.constant 4 : index
    %c0_22 = arith.constant 0 : index
    %c0_23 = arith.constant 0 : index
    %57 = vector.load %arg2[%c4, %c0_22, %c0_23] : memref<9x16x8xbf16, #tpu.memory_space<vmem>>, vector<1x16x8xbf16>
    %58 = vector.shape_cast %57 : vector<1x16x8xbf16> to vector<16x8xbf16>
    %cst_24 = arith.constant dense<0.000000e+00> : vector<16x64xf32>
    %59 = tpu.matmul %58, %56, %cst_24 {dimension_numbers = #tpu.dot_dimension_numbers<[1], [0], [0], [1], [0, 0, 1, 1], [], []>} : vector<16x8xbf16>, vector<8x64xbf16>, vector<16x64xf32> -> vector<16x64xf32>
    %60 = arith.addf %55, %59 : vector<16x64xf32>
    %61 = vector.extract_strided_slice %1 {offsets = [0, 10], sizes = [8, 64], strides = [1, 1]} : vector<8x82xbf16> to vector<8x64xbf16>
    %cst_25 = arith.constant 0.000000e+00 : bf16
    %62 = vector.broadcast %cst_25 : bf16 to vector<8x64xbf16>
    %63 = vector.shape_cast %22 : vector<1x64xi1> to vector<1x64xi1>
    %64 = vector.broadcast %63 : vector<1x64xi1> to vector<8x64xi1>
    %65 = arith.select %64, %61, %62 : vector<8x64xi1>, vector<8x64xbf16>
    %c5 = arith.constant 5 : index
    %c0_26 = arith.constant 0 : index
    %c0_27 = arith.constant 0 : index
    %66 = vector.load %arg2[%c5, %c0_26, %c0_27] : memref<9x16x8xbf16, #tpu.memory_space<vmem>>, vector<1x16x8xbf16>
    %67 = vector.shape_cast %66 : vector<1x16x8xbf16> to vector<16x8xbf16>
    %cst_28 = arith.constant dense<0.000000e+00> : vector<16x64xf32>
    %68 = tpu.matmul %67, %65, %cst_28 {dimension_numbers = #tpu.dot_dimension_numbers<[1], [0], [0], [1], [0, 0, 1, 1], [], []>} : vector<16x8xbf16>, vector<8x64xbf16>, vector<16x64xf32> -> vector<16x64xf32>
    %69 = arith.addf %60, %68 : vector<16x64xf32>
    %70 = vector.extract_strided_slice %1 {offsets = [0, 16], sizes = [8, 64], strides = [1, 1]} : vector<8x82xbf16> to vector<8x64xbf16>
    %cst_29 = arith.constant 0.000000e+00 : bf16
    %71 = vector.broadcast %cst_29 : bf16 to vector<8x64xbf16>
    %72 = vector.shape_cast %20 : vector<1x64xi1> to vector<1x64xi1>
    %73 = vector.broadcast %72 : vector<1x64xi1> to vector<8x64xi1>
    %74 = arith.select %73, %70, %71 : vector<8x64xi1>, vector<8x64xbf16>
    %c6 = arith.constant 6 : index
    %c0_30 = arith.constant 0 : index
    %c0_31 = arith.constant 0 : index
    %75 = vector.load %arg2[%c6, %c0_30, %c0_31] : memref<9x16x8xbf16, #tpu.memory_space<vmem>>, vector<1x16x8xbf16>
    %76 = vector.shape_cast %75 : vector<1x16x8xbf16> to vector<16x8xbf16>
    %cst_32 = arith.constant dense<0.000000e+00> : vector<16x64xf32>
    %77 = tpu.matmul %76, %74, %cst_32 {dimension_numbers = #tpu.dot_dimension_numbers<[1], [0], [0], [1], [0, 0, 1, 1], [], []>} : vector<16x8xbf16>, vector<8x64xbf16>, vector<16x64xf32> -> vector<16x64xf32>
    %78 = arith.addf %69, %77 : vector<16x64xf32>
    %79 = vector.extract_strided_slice %1 {offsets = [0, 17], sizes = [8, 64], strides = [1, 1]} : vector<8x82xbf16> to vector<8x64xbf16>
    %c7 = arith.constant 7 : index
    %c0_33 = arith.constant 0 : index
    %c0_34 = arith.constant 0 : index
    %80 = vector.load %arg2[%c7, %c0_33, %c0_34] : memref<9x16x8xbf16, #tpu.memory_space<vmem>>, vector<1x16x8xbf16>
    %81 = vector.shape_cast %80 : vector<1x16x8xbf16> to vector<16x8xbf16>
    %cst_35 = arith.constant dense<0.000000e+00> : vector<16x64xf32>
    %82 = tpu.matmul %81, %79, %cst_35 {dimension_numbers = #tpu.dot_dimension_numbers<[1], [0], [0], [1], [0, 0, 1, 1], [], []>} : vector<16x8xbf16>, vector<8x64xbf16>, vector<16x64xf32> -> vector<16x64xf32>
    %83 = arith.addf %78, %82 : vector<16x64xf32>
    %84 = vector.extract_strided_slice %1 {offsets = [0, 18], sizes = [8, 64], strides = [1, 1]} : vector<8x82xbf16> to vector<8x64xbf16>
    %cst_36 = arith.constant 0.000000e+00 : bf16
    %85 = vector.broadcast %cst_36 : bf16 to vector<8x64xbf16>
    %86 = vector.shape_cast %22 : vector<1x64xi1> to vector<1x64xi1>
    %87 = vector.broadcast %86 : vector<1x64xi1> to vector<8x64xi1>
    %88 = arith.select %87, %84, %85 : vector<8x64xi1>, vector<8x64xbf16>
    %c8 = arith.constant 8 : index
    %c0_37 = arith.constant 0 : index
    %c0_38 = arith.constant 0 : index
    %89 = vector.load %arg2[%c8, %c0_37, %c0_38] : memref<9x16x8xbf16, #tpu.memory_space<vmem>>, vector<1x16x8xbf16>
    %90 = vector.shape_cast %89 : vector<1x16x8xbf16> to vector<16x8xbf16>
    %cst_39 = arith.constant dense<0.000000e+00> : vector<16x64xf32>
    %91 = tpu.matmul %90, %88, %cst_39 {dimension_numbers = #tpu.dot_dimension_numbers<[1], [0], [0], [1], [0, 0, 1, 1], [], []>} : vector<16x8xbf16>, vector<8x64xbf16>, vector<16x64xf32> -> vector<16x64xf32>
    %92 = arith.addf %83, %91 : vector<16x64xf32>
    %cst_40 = arith.constant 0.000000e+00 : f32
    %93 = vector.broadcast %cst_40 : f32 to vector<16x64xf32>
    %94 = arith.maximumf %92, %93 : vector<16x64xf32>
    %95 = arith.truncf %94 : vector<16x64xf32> to vector<16x64xbf16>
    %c0_41 = arith.constant 0 : index
    %c0_42 = arith.constant 0 : index
    %c0_43 = arith.constant 0 : index
    %96 = vector.load %arg3[%c0_41, %c0_42, %c0_43] : memref<1x16x64xbf16, #tpu.memory_space<vmem>>, vector<1x16x64xbf16>
    %97 = vector.shape_cast %96 : vector<1x16x64xbf16> to vector<16x64xbf16>
    %98 = vector.shape_cast %95 : vector<16x64xbf16> to vector<1x16x64xbf16>
    tpu.vector_store %arg3[%c0_41, %c0_42, %c0_43], %98 {strides = array<i32>} : memref<1x16x64xbf16, #tpu.memory_space<vmem>>, vector<1x16x64xbf16>,
    return
  }
  func.func @transform_0(%arg0: i32) -> (i32, i32, i32) {
    %c0_i32 = arith.constant 0 : i32
    %c0_i32_0 = arith.constant 0 : i32
    %c0_i32_1 = arith.constant 0 : i32
    return %arg0, %c0_i32, %c0_i32_0 : i32, i32, i32
  }
  func.func @transform_1(%arg0: i32) -> (i32, i32, i32) {
    %c0_i32 = arith.constant 0 : i32
    %c0_i32_0 = arith.constant 0 : i32
    %c0_i32_1 = arith.constant 0 : i32
    %c0_i32_2 = arith.constant 0 : i32
    return %c0_i32, %c0_i32_0, %c0_i32_1 : i32, i32, i32
  }
  func.func @transform_2(%arg0: i32) -> (i32, i32, i32) {
    %c0_i32 = arith.constant 0 : i32
    %c0_i32_0 = arith.constant 0 : i32
    %c0_i32_1 = arith.constant 0 : i32
    return %arg0, %c0_i32, %c0_i32_0 : i32, i32, i32
  }
}

module attributes {stable_mosaic.version = 11 : i64} {
  func.func @_prc_style_kernel(%arg0: i32, %arg1: i32, %arg2: memref<1x16x64xbf16, #tpu.memory_space<vmem>>, %arg3: memref<1x16x64xbf16, #tpu.memory_space<vmem>>, %arg4: memref<1x1x128xf32, #tpu.memory_space<vmem>>, %arg5: memref<1x1x128xf32, #tpu.memory_space<vmem>>, %arg6: memref<16x16xf32, #tpu.memory_space<vmem>>, %arg7: memref<16x16xf32, #tpu.memory_space<vmem>>) attributes {dimension_semantics = [#tpu.dimension_semantics<parallel>, #tpu.dimension_semantics<arbitrary>], iteration_bounds = array<i64: 2, 1>, scalar_prefetch = 0 : i64, scratch_operands = 2 : i64, tpu.core_type = #tpu.core_type<tc>, window_params = [{transform_indices = @transform_0, window_bounds = array<i64: 1, 16, 64>}, {transform_indices = @transform_1, window_bounds = array<i64: 1, 16, 64>}, {transform_indices = @transform_2, window_bounds = array<i64: 1, 1, 128>}, {transform_indices = @transform_3, window_bounds = array<i64: 1, 1, 128>}]} {
    %c0 = arith.constant 0 : index
    %c0_0 = arith.constant 0 : index
    %c0_1 = arith.constant 0 : index
    %0 = vector.load %arg2[%c0, %c0_0, %c0_1] : memref<1x16x64xbf16, #tpu.memory_space<vmem>>, vector<1x16x64xbf16>
    %1 = vector.shape_cast %0 : vector<1x16x64xbf16> to vector<16x64xbf16>
    %c0_2 = arith.constant 0 : index
    %c0_3 = arith.constant 0 : index
    %c0_4 = arith.constant 0 : index
    %2 = vector.load %arg3[%c0_2, %c0_3, %c0_4] : memref<1x16x64xbf16, #tpu.memory_space<vmem>>, vector<1x16x64xbf16>
    %3 = vector.shape_cast %2 : vector<1x16x64xbf16> to vector<16x64xbf16>
    %c0_i32 = arith.constant 0 : i32
    %4 = arith.cmpi eq, %arg1, %c0_i32 : i32
    %5 = arith.extui %4 : i1 to i32
    %c0_i32_5 = arith.constant 0 : i32
    %6 = arith.cmpi ne, %5, %c0_i32_5 : i32
    scf.if %6 {
      %cst_24 = arith.constant 0.000000e+00 : f32
      %30 = vector.broadcast %cst_24 : f32 to vector<16x16xf32>
      %c0_25 = arith.constant 0 : index
      %c0_26 = arith.constant 0 : index
      %31 = vector.load %arg6[%c0_25, %c0_26] : memref<16x16xf32, #tpu.memory_space<vmem>>, vector<16x16xf32>
      tpu.vector_store %arg6[%c0_25, %c0_26], %30 {strides = array<i32>} : memref<16x16xf32, #tpu.memory_space<vmem>>, vector<16x16xf32>,
      %cst_27 = arith.constant 0.000000e+00 : f32
      %32 = vector.broadcast %cst_27 : f32 to vector<16x16xf32>
      %c0_28 = arith.constant 0 : index
      %c0_29 = arith.constant 0 : index
      %33 = vector.load %arg7[%c0_28, %c0_29] : memref<16x16xf32, #tpu.memory_space<vmem>>, vector<16x16xf32>
      tpu.vector_store %arg7[%c0_28, %c0_29], %32 {strides = array<i32>} : memref<16x16xf32, #tpu.memory_space<vmem>>, vector<16x16xf32>,
      %cst_30 = arith.constant 0.000000e+00 : f32
      %34 = vector.broadcast %cst_30 : f32 to vector<1x1x128xf32>
      %c0_31 = arith.constant 0 : index
      %c0_32 = arith.constant 0 : index
      %c0_33 = arith.constant 0 : index
      %35 = vector.load %arg4[%c0_31, %c0_32, %c0_33] : memref<1x1x128xf32, #tpu.memory_space<vmem>>, vector<1x1x128xf32>
      tpu.vector_store %arg4[%c0_31, %c0_32, %c0_33], %34 {strides = array<i32>} : memref<1x1x128xf32, #tpu.memory_space<vmem>>, vector<1x1x128xf32>,
      %cst_34 = arith.constant 0.000000e+00 : f32
      %36 = vector.broadcast %cst_34 : f32 to vector<1x1x128xf32>
      %c0_35 = arith.constant 0 : index
      %c0_36 = arith.constant 0 : index
      %c0_37 = arith.constant 0 : index
      %37 = vector.load %arg5[%c0_35, %c0_36, %c0_37] : memref<1x1x128xf32, #tpu.memory_space<vmem>>, vector<1x1x128xf32>
      tpu.vector_store %arg5[%c0_35, %c0_36, %c0_37], %36 {strides = array<i32>} : memref<1x1x128xf32, #tpu.memory_space<vmem>>, vector<1x1x128xf32>,
    } else {
    }
    %c0_6 = arith.constant 0 : index
    %c0_7 = arith.constant 0 : index
    %7 = vector.load %arg6[%c0_6, %c0_7] : memref<16x16xf32, #tpu.memory_space<vmem>>, vector<16x16xf32>
    %cst = arith.constant dense<0.000000e+00> : vector<16x16xf32>
    %8 = tpu.matmul %1, %1, %cst {dimension_numbers = #tpu.dot_dimension_numbers<[1], [1], [0], [0], [0, 0, 1, 0], [], []>} : vector<16x64xbf16>, vector<16x64xbf16>, vector<16x16xf32> -> vector<16x16xf32>
    %9 = arith.addf %7, %8 : vector<16x16xf32>
    %c0_8 = arith.constant 0 : index
    %c0_9 = arith.constant 0 : index
    %10 = vector.load %arg6[%c0_8, %c0_9] : memref<16x16xf32, #tpu.memory_space<vmem>>, vector<16x16xf32>
    tpu.vector_store %arg6[%c0_8, %c0_9], %9 {strides = array<i32>} : memref<16x16xf32, #tpu.memory_space<vmem>>, vector<16x16xf32>,
    %c0_10 = arith.constant 0 : index
    %c0_11 = arith.constant 0 : index
    %11 = vector.load %arg7[%c0_10, %c0_11] : memref<16x16xf32, #tpu.memory_space<vmem>>, vector<16x16xf32>
    %cst_12 = arith.constant dense<0.000000e+00> : vector<16x16xf32>
    %12 = tpu.matmul %3, %3, %cst_12 {dimension_numbers = #tpu.dot_dimension_numbers<[1], [1], [0], [0], [0, 0, 1, 0], [], []>} : vector<16x64xbf16>, vector<16x64xbf16>, vector<16x16xf32> -> vector<16x16xf32>
    %13 = arith.addf %11, %12 : vector<16x16xf32>
    %c0_13 = arith.constant 0 : index
    %c0_14 = arith.constant 0 : index
    %14 = vector.load %arg7[%c0_13, %c0_14] : memref<16x16xf32, #tpu.memory_space<vmem>>, vector<16x16xf32>
    tpu.vector_store %arg7[%c0_13, %c0_14], %13 {strides = array<i32>} : memref<16x16xf32, #tpu.memory_space<vmem>>, vector<16x16xf32>,
    %c0_15 = arith.constant 0 : index
    %c0_16 = arith.constant 0 : index
    %c0_17 = arith.constant 0 : index
    %15 = vector.load %arg4[%c0_15, %c0_16, %c0_17] : memref<1x1x128xf32, #tpu.memory_space<vmem>>, vector<1x1x128xf32>
    %16 = arith.extf %1 : vector<16x64xbf16> to vector<16x64xf32>
    %17 = arith.extf %3 : vector<16x64xbf16> to vector<16x64xf32>
    %18 = arith.subf %16, %17 : vector<16x64xf32>
    %19 = math.absf %18 : vector<16x64xf32>
    %20 = vector.shape_cast %19 : vector<16x64xf32> to vector<1x16x64xf32>
    %cst_18 = arith.constant dense<0.000000e+00> : vector<1xf32>
    %21 = vector.multi_reduction <add>, %20, %cst_18 [1, 2] : vector<1x16x64xf32> to vector<1xf32>
    %22 = vector.shape_cast %21 : vector<1xf32> to vector<1x1x1xf32>
    %23 = vector.extract %22[0, 0, 0] : f32 from vector<1x1x1xf32>
    %24 = vector.broadcast %23 : f32 to vector<1x1x128xf32>
    %25 = arith.addf %15, %24 : vector<1x1x128xf32>
    %c0_19 = arith.constant 0 : index
    %c0_20 = arith.constant 0 : index
    %c0_21 = arith.constant 0 : index
    %26 = vector.load %arg4[%c0_19, %c0_20, %c0_21] : memref<1x1x128xf32, #tpu.memory_space<vmem>>, vector<1x1x128xf32>
    tpu.vector_store %arg4[%c0_19, %c0_20, %c0_21], %25 {strides = array<i32>} : memref<1x1x128xf32, #tpu.memory_space<vmem>>, vector<1x1x128xf32>,
    %c0_i32_22 = arith.constant 0 : i32
    %27 = arith.cmpi eq, %arg1, %c0_i32_22 : i32
    %28 = arith.extui %27 : i1 to i32
    %c0_i32_23 = arith.constant 0 : i32
    %29 = arith.cmpi ne, %28, %c0_i32_23 : i32
    scf.if %29 {
      %c0_24 = arith.constant 0 : index
      %c0_25 = arith.constant 0 : index
      %30 = vector.load %arg6[%c0_24, %c0_25] : memref<16x16xf32, #tpu.memory_space<vmem>>, vector<16x16xf32>
      %c0_26 = arith.constant 0 : index
      %c0_27 = arith.constant 0 : index
      %31 = vector.load %arg7[%c0_26, %c0_27] : memref<16x16xf32, #tpu.memory_space<vmem>>, vector<16x16xf32>
      %32 = arith.subf %30, %31 : vector<16x16xf32>
      %33 = math.absf %32 : vector<16x16xf32>
      %34 = vector.shape_cast %33 : vector<16x16xf32> to vector<1x16x16xf32>
      %cst_28 = arith.constant dense<0.000000e+00> : vector<1xf32>
      %35 = vector.multi_reduction <add>, %34, %cst_28 [1, 2] : vector<1x16x16xf32> to vector<1xf32>
      %36 = vector.shape_cast %35 : vector<1xf32> to vector<1x1x1xf32>
      %37 = vector.extract %36[0, 0, 0] : f32 from vector<1x1x1xf32>
      %cst_29 = arith.constant 9.765625E-4 : f32
      %38 = arith.mulf %37, %cst_29 : f32
      %cst_30 = arith.constant 0.000000e+00 : f32
      %39 = vector.broadcast %cst_30 : f32 to vector<1x1x128xf32>
      %40 = vector.broadcast %38 : f32 to vector<1x1x128xf32>
      %41 = arith.addf %39, %40 : vector<1x1x128xf32>
      %c0_31 = arith.constant 0 : index
      %c0_32 = arith.constant 0 : index
      %c0_33 = arith.constant 0 : index
      %42 = vector.load %arg5[%c0_31, %c0_32, %c0_33] : memref<1x1x128xf32, #tpu.memory_space<vmem>>, vector<1x1x128xf32>
      tpu.vector_store %arg5[%c0_31, %c0_32, %c0_33], %41 {strides = array<i32>} : memref<1x1x128xf32, #tpu.memory_space<vmem>>, vector<1x1x128xf32>,
    } else {
    }
    return
  }
  func.func @transform_0(%arg0: i32, %arg1: i32) -> (i32, i32, i32) {
    %c0_i32 = arith.constant 0 : i32
    %c0_i32_0 = arith.constant 0 : i32
    return %arg0, %c0_i32, %arg1 : i32, i32, i32
  }
  func.func @transform_1(%arg0: i32, %arg1: i32) -> (i32, i32, i32) {
    %c0_i32 = arith.constant 0 : i32
    %c0_i32_0 = arith.constant 0 : i32
    return %arg0, %c0_i32, %arg1 : i32, i32, i32
  }
  func.func @transform_2(%arg0: i32, %arg1: i32) -> (i32, i32, i32) {
    %c0_i32 = arith.constant 0 : i32
    %c0_i32_0 = arith.constant 0 : i32
    %c0_i32_1 = arith.constant 0 : i32
    return %arg0, %c0_i32, %c0_i32_0 : i32, i32, i32
  }
  func.func @transform_3(%arg0: i32, %arg1: i32) -> (i32, i32, i32) {
    %c0_i32 = arith.constant 0 : i32
    %c0_i32_0 = arith.constant 0 : i32
    %c0_i32_1 = arith.constant 0 : i32
    return %arg0, %c0_i32, %c0_i32_0 : i32, i32, i32
  }
}

module attributes {stable_mosaic.version = 11 : i64} {
  func.func @_conv3x3_kernel(%arg0: i32, %arg1: memref<1x16x26xbf16, #tpu.memory_space<vmem>>, %arg2: memref<9x32x16xbf16, #tpu.memory_space<vmem>>, %arg3: memref<1x32x16xbf16, #tpu.memory_space<vmem>>) attributes {dimension_semantics = [#tpu.dimension_semantics<parallel>], iteration_bounds = array<i64: 2>, scalar_prefetch = 0 : i64, scratch_operands = 0 : i64, tpu.core_type = #tpu.core_type<tc>, window_params = [{transform_indices = @transform_0, window_bounds = array<i64: 1, 16, 26>}, {pipeline_mode = #tpu.pipeline_mode<synchronous>, transform_indices = @transform_1, window_bounds = array<i64: 9, 32, 16>}, {transform_indices = @transform_2, window_bounds = array<i64: 1, 32, 16>}]} {
    %c0 = arith.constant 0 : index
    %c0_0 = arith.constant 0 : index
    %c0_1 = arith.constant 0 : index
    %0 = vector.load %arg1[%c0, %c0_0, %c0_1] : memref<1x16x26xbf16, #tpu.memory_space<vmem>>, vector<1x16x26xbf16>
    %1 = vector.shape_cast %0 : vector<1x16x26xbf16> to vector<16x26xbf16>
    %2 = tpu.iota {dimensions = array<i32: 1>} : vector<1x16xi32>
    %c4_i32 = arith.constant 4 : i32
    %c0_i32 = arith.constant 0 : i32
    %3 = arith.cmpi eq, %c4_i32, %c0_i32 : i32
    %c1_i32 = arith.constant 1 : i32
    %4 = arith.select %3, %c1_i32, %c4_i32 : i32
    %5 = vector.broadcast %4 : i32 to vector<1x16xi32>
    %6 = arith.remsi %2, %5 : vector<1x16xi32>
    %c0_i32_2 = arith.constant 0 : i32
    %7 = vector.broadcast %c0_i32_2 : i32 to vector<1x16xi32>
    %8 = arith.cmpi ne, %6, %7 : vector<1x16xi32>
    %c0_i32_3 = arith.constant 0 : i32
    %9 = vector.broadcast %c0_i32_3 : i32 to vector<1x16xi32>
    %10 = arith.cmpi slt, %6, %9 : vector<1x16xi32>
    %c0_i32_4 = arith.constant 0 : i32
    %11 = arith.cmpi slt, %4, %c0_i32_4 : i32
    %12 = vector.broadcast %11 : i1 to vector<1x16xi1>
    %13 = vector.broadcast %12 : vector<1x16xi1> to vector<1x16xi1>
    %14 = arith.xori %10, %13 : vector<1x16xi1>
    %15 = arith.andi %14, %8 : vector<1x16xi1>
    %16 = vector.broadcast %4 : i32 to vector<1x16xi32>
    %17 = arith.addi %6, %16 : vector<1x16xi32>
    %18 = arith.select %15, %17, %6 : vector<1x16xi1>, vector<1x16xi32>
    %c0_i32_5 = arith.constant 0 : i32
    %19 = vector.broadcast %c0_i32_5 : i32 to vector<1x16xi32>
    %20 = arith.cmpi ne, %18, %19 : vector<1x16xi32>
    %c3_i32 = arith.constant 3 : i32
    %21 = vector.broadcast %c3_i32 : i32 to vector<1x16xi32>
    %22 = arith.cmpi ne, %18, %21 : vector<1x16xi32>
    %cst = arith.constant 0.000000e+00 : f32
    %23 = vector.broadcast %cst : f32 to vector<32x16xf32>
    %24 = vector.extract_strided_slice %1 {offsets = [0, 0], sizes = [16, 16], strides = [1, 1]} : vector<16x26xbf16> to vector<16x16xbf16>
    %cst_6 = arith.constant 0.000000e+00 : bf16
    %25 = vector.broadcast %cst_6 : bf16 to vector<16x16xbf16>
    %26 = vector.shape_cast %20 : vector<1x16xi1> to vector<1x16xi1>
    %27 = vector.broadcast %26 : vector<1x16xi1> to vector<16x16xi1>
    %28 = arith.select %27, %24, %25 : vector<16x16xi1>, vector<16x16xbf16>
    %c0_7 = arith.constant 0 : index
    %c0_8 = arith.constant 0 : index
    %c0_9 = arith.constant 0 : index
    %29 = vector.load %arg2[%c0_7, %c0_8, %c0_9] : memref<9x32x16xbf16, #tpu.memory_space<vmem>>, vector<1x32x16xbf16>
    %30 = vector.shape_cast %29 : vector<1x32x16xbf16> to vector<32x16xbf16>
    %cst_10 = arith.constant dense<0.000000e+00> : vector<32x16xf32>
    %31 = tpu.matmul %30, %28, %cst_10 {dimension_numbers = #tpu.dot_dimension_numbers<[1], [0], [0], [1], [0, 0, 1, 1], [], []>} : vector<32x16xbf16>, vector<16x16xbf16>, vector<32x16xf32> -> vector<32x16xf32>
    %32 = arith.addf %23, %31 : vector<32x16xf32>
    %33 = vector.extract_strided_slice %1 {offsets = [0, 1], sizes = [16, 16], strides = [1, 1]} : vector<16x26xbf16> to vector<16x16xbf16>
    %c1 = arith.constant 1 : index
    %c0_11 = arith.constant 0 : index
    %c0_12 = arith.constant 0 : index
    %34 = vector.load %arg2[%c1, %c0_11, %c0_12] : memref<9x32x16xbf16, #tpu.memory_space<vmem>>, vector<1x32x16xbf16>
    %35 = vector.shape_cast %34 : vector<1x32x16xbf16> to vector<32x16xbf16>
    %cst_13 = arith.constant dense<0.000000e+00> : vector<32x16xf32>
    %36 = tpu.matmul %35, %33, %cst_13 {dimension_numbers = #tpu.dot_dimension_numbers<[1], [0], [0], [1], [0, 0, 1, 1], [], []>} : vector<32x16xbf16>, vector<16x16xbf16>, vector<32x16xf32> -> vector<32x16xf32>
    %37 = arith.addf %32, %36 : vector<32x16xf32>
    %38 = vector.extract_strided_slice %1 {offsets = [0, 2], sizes = [16, 16], strides = [1, 1]} : vector<16x26xbf16> to vector<16x16xbf16>
    %cst_14 = arith.constant 0.000000e+00 : bf16
    %39 = vector.broadcast %cst_14 : bf16 to vector<16x16xbf16>
    %40 = vector.shape_cast %22 : vector<1x16xi1> to vector<1x16xi1>
    %41 = vector.broadcast %40 : vector<1x16xi1> to vector<16x16xi1>
    %42 = arith.select %41, %38, %39 : vector<16x16xi1>, vector<16x16xbf16>
    %c2 = arith.constant 2 : index
    %c0_15 = arith.constant 0 : index
    %c0_16 = arith.constant 0 : index
    %43 = vector.load %arg2[%c2, %c0_15, %c0_16] : memref<9x32x16xbf16, #tpu.memory_space<vmem>>, vector<1x32x16xbf16>
    %44 = vector.shape_cast %43 : vector<1x32x16xbf16> to vector<32x16xbf16>
    %cst_17 = arith.constant dense<0.000000e+00> : vector<32x16xf32>
    %45 = tpu.matmul %44, %42, %cst_17 {dimension_numbers = #tpu.dot_dimension_numbers<[1], [0], [0], [1], [0, 0, 1, 1], [], []>} : vector<32x16xbf16>, vector<16x16xbf16>, vector<32x16xf32> -> vector<32x16xf32>
    %46 = arith.addf %37, %45 : vector<32x16xf32>
    %47 = vector.extract_strided_slice %1 {offsets = [0, 4], sizes = [16, 16], strides = [1, 1]} : vector<16x26xbf16> to vector<16x16xbf16>
    %cst_18 = arith.constant 0.000000e+00 : bf16
    %48 = vector.broadcast %cst_18 : bf16 to vector<16x16xbf16>
    %49 = vector.shape_cast %20 : vector<1x16xi1> to vector<1x16xi1>
    %50 = vector.broadcast %49 : vector<1x16xi1> to vector<16x16xi1>
    %51 = arith.select %50, %47, %48 : vector<16x16xi1>, vector<16x16xbf16>
    %c3 = arith.constant 3 : index
    %c0_19 = arith.constant 0 : index
    %c0_20 = arith.constant 0 : index
    %52 = vector.load %arg2[%c3, %c0_19, %c0_20] : memref<9x32x16xbf16, #tpu.memory_space<vmem>>, vector<1x32x16xbf16>
    %53 = vector.shape_cast %52 : vector<1x32x16xbf16> to vector<32x16xbf16>
    %cst_21 = arith.constant dense<0.000000e+00> : vector<32x16xf32>
    %54 = tpu.matmul %53, %51, %cst_21 {dimension_numbers = #tpu.dot_dimension_numbers<[1], [0], [0], [1], [0, 0, 1, 1], [], []>} : vector<32x16xbf16>, vector<16x16xbf16>, vector<32x16xf32> -> vector<32x16xf32>
    %55 = arith.addf %46, %54 : vector<32x16xf32>
    %56 = vector.extract_strided_slice %1 {offsets = [0, 5], sizes = [16, 16], strides = [1, 1]} : vector<16x26xbf16> to vector<16x16xbf16>
    %c4 = arith.constant 4 : index
    %c0_22 = arith.constant 0 : index
    %c0_23 = arith.constant 0 : index
    %57 = vector.load %arg2[%c4, %c0_22, %c0_23] : memref<9x32x16xbf16, #tpu.memory_space<vmem>>, vector<1x32x16xbf16>
    %58 = vector.shape_cast %57 : vector<1x32x16xbf16> to vector<32x16xbf16>
    %cst_24 = arith.constant dense<0.000000e+00> : vector<32x16xf32>
    %59 = tpu.matmul %58, %56, %cst_24 {dimension_numbers = #tpu.dot_dimension_numbers<[1], [0], [0], [1], [0, 0, 1, 1], [], []>} : vector<32x16xbf16>, vector<16x16xbf16>, vector<32x16xf32> -> vector<32x16xf32>
    %60 = arith.addf %55, %59 : vector<32x16xf32>
    %61 = vector.extract_strided_slice %1 {offsets = [0, 6], sizes = [16, 16], strides = [1, 1]} : vector<16x26xbf16> to vector<16x16xbf16>
    %cst_25 = arith.constant 0.000000e+00 : bf16
    %62 = vector.broadcast %cst_25 : bf16 to vector<16x16xbf16>
    %63 = vector.shape_cast %22 : vector<1x16xi1> to vector<1x16xi1>
    %64 = vector.broadcast %63 : vector<1x16xi1> to vector<16x16xi1>
    %65 = arith.select %64, %61, %62 : vector<16x16xi1>, vector<16x16xbf16>
    %c5 = arith.constant 5 : index
    %c0_26 = arith.constant 0 : index
    %c0_27 = arith.constant 0 : index
    %66 = vector.load %arg2[%c5, %c0_26, %c0_27] : memref<9x32x16xbf16, #tpu.memory_space<vmem>>, vector<1x32x16xbf16>
    %67 = vector.shape_cast %66 : vector<1x32x16xbf16> to vector<32x16xbf16>
    %cst_28 = arith.constant dense<0.000000e+00> : vector<32x16xf32>
    %68 = tpu.matmul %67, %65, %cst_28 {dimension_numbers = #tpu.dot_dimension_numbers<[1], [0], [0], [1], [0, 0, 1, 1], [], []>} : vector<32x16xbf16>, vector<16x16xbf16>, vector<32x16xf32> -> vector<32x16xf32>
    %69 = arith.addf %60, %68 : vector<32x16xf32>
    %70 = vector.extract_strided_slice %1 {offsets = [0, 8], sizes = [16, 16], strides = [1, 1]} : vector<16x26xbf16> to vector<16x16xbf16>
    %cst_29 = arith.constant 0.000000e+00 : bf16
    %71 = vector.broadcast %cst_29 : bf16 to vector<16x16xbf16>
    %72 = vector.shape_cast %20 : vector<1x16xi1> to vector<1x16xi1>
    %73 = vector.broadcast %72 : vector<1x16xi1> to vector<16x16xi1>
    %74 = arith.select %73, %70, %71 : vector<16x16xi1>, vector<16x16xbf16>
    %c6 = arith.constant 6 : index
    %c0_30 = arith.constant 0 : index
    %c0_31 = arith.constant 0 : index
    %75 = vector.load %arg2[%c6, %c0_30, %c0_31] : memref<9x32x16xbf16, #tpu.memory_space<vmem>>, vector<1x32x16xbf16>
    %76 = vector.shape_cast %75 : vector<1x32x16xbf16> to vector<32x16xbf16>
    %cst_32 = arith.constant dense<0.000000e+00> : vector<32x16xf32>
    %77 = tpu.matmul %76, %74, %cst_32 {dimension_numbers = #tpu.dot_dimension_numbers<[1], [0], [0], [1], [0, 0, 1, 1], [], []>} : vector<32x16xbf16>, vector<16x16xbf16>, vector<32x16xf32> -> vector<32x16xf32>
    %78 = arith.addf %69, %77 : vector<32x16xf32>
    %79 = vector.extract_strided_slice %1 {offsets = [0, 9], sizes = [16, 16], strides = [1, 1]} : vector<16x26xbf16> to vector<16x16xbf16>
    %c7 = arith.constant 7 : index
    %c0_33 = arith.constant 0 : index
    %c0_34 = arith.constant 0 : index
    %80 = vector.load %arg2[%c7, %c0_33, %c0_34] : memref<9x32x16xbf16, #tpu.memory_space<vmem>>, vector<1x32x16xbf16>
    %81 = vector.shape_cast %80 : vector<1x32x16xbf16> to vector<32x16xbf16>
    %cst_35 = arith.constant dense<0.000000e+00> : vector<32x16xf32>
    %82 = tpu.matmul %81, %79, %cst_35 {dimension_numbers = #tpu.dot_dimension_numbers<[1], [0], [0], [1], [0, 0, 1, 1], [], []>} : vector<32x16xbf16>, vector<16x16xbf16>, vector<32x16xf32> -> vector<32x16xf32>
    %83 = arith.addf %78, %82 : vector<32x16xf32>
    %84 = vector.extract_strided_slice %1 {offsets = [0, 10], sizes = [16, 16], strides = [1, 1]} : vector<16x26xbf16> to vector<16x16xbf16>
    %cst_36 = arith.constant 0.000000e+00 : bf16
    %85 = vector.broadcast %cst_36 : bf16 to vector<16x16xbf16>
    %86 = vector.shape_cast %22 : vector<1x16xi1> to vector<1x16xi1>
    %87 = vector.broadcast %86 : vector<1x16xi1> to vector<16x16xi1>
    %88 = arith.select %87, %84, %85 : vector<16x16xi1>, vector<16x16xbf16>
    %c8 = arith.constant 8 : index
    %c0_37 = arith.constant 0 : index
    %c0_38 = arith.constant 0 : index
    %89 = vector.load %arg2[%c8, %c0_37, %c0_38] : memref<9x32x16xbf16, #tpu.memory_space<vmem>>, vector<1x32x16xbf16>
    %90 = vector.shape_cast %89 : vector<1x32x16xbf16> to vector<32x16xbf16>
    %cst_39 = arith.constant dense<0.000000e+00> : vector<32x16xf32>
    %91 = tpu.matmul %90, %88, %cst_39 {dimension_numbers = #tpu.dot_dimension_numbers<[1], [0], [0], [1], [0, 0, 1, 1], [], []>} : vector<32x16xbf16>, vector<16x16xbf16>, vector<32x16xf32> -> vector<32x16xf32>
    %92 = arith.addf %83, %91 : vector<32x16xf32>
    %cst_40 = arith.constant 0.000000e+00 : f32
    %93 = vector.broadcast %cst_40 : f32 to vector<32x16xf32>
    %94 = arith.maximumf %92, %93 : vector<32x16xf32>
    %95 = arith.truncf %94 : vector<32x16xf32> to vector<32x16xbf16>
    %c0_41 = arith.constant 0 : index
    %c0_42 = arith.constant 0 : index
    %c0_43 = arith.constant 0 : index
    %96 = vector.load %arg3[%c0_41, %c0_42, %c0_43] : memref<1x32x16xbf16, #tpu.memory_space<vmem>>, vector<1x32x16xbf16>
    %97 = vector.shape_cast %96 : vector<1x32x16xbf16> to vector<32x16xbf16>
    %98 = vector.shape_cast %95 : vector<32x16xbf16> to vector<1x32x16xbf16>
    tpu.vector_store %arg3[%c0_41, %c0_42, %c0_43], %98 {strides = array<i32>} : memref<1x32x16xbf16, #tpu.memory_space<vmem>>, vector<1x32x16xbf16>,
    return
  }
  func.func @transform_0(%arg0: i32) -> (i32, i32, i32) {
    %c0_i32 = arith.constant 0 : i32
    %c0_i32_0 = arith.constant 0 : i32
    %c0_i32_1 = arith.constant 0 : i32
    return %arg0, %c0_i32, %c0_i32_0 : i32, i32, i32
  }
  func.func @transform_1(%arg0: i32) -> (i32, i32, i32) {
    %c0_i32 = arith.constant 0 : i32
    %c0_i32_0 = arith.constant 0 : i32
    %c0_i32_1 = arith.constant 0 : i32
    %c0_i32_2 = arith.constant 0 : i32
    return %c0_i32, %c0_i32_0, %c0_i32_1 : i32, i32, i32
  }
  func.func @transform_2(%arg0: i32) -> (i32, i32, i32) {
    %c0_i32 = arith.constant 0 : i32
    %c0_i32_0 = arith.constant 0 : i32
    %c0_i32_1 = arith.constant 0 : i32
    return %arg0, %c0_i32, %c0_i32_0 : i32, i32, i32
  }
}

module attributes {stable_mosaic.version = 11 : i64} {
  func.func @_prc_style_kernel(%arg0: i32, %arg1: i32, %arg2: memref<1x32x16xbf16, #tpu.memory_space<vmem>>, %arg3: memref<1x32x16xbf16, #tpu.memory_space<vmem>>, %arg4: memref<1x1x128xf32, #tpu.memory_space<vmem>>, %arg5: memref<1x1x128xf32, #tpu.memory_space<vmem>>, %arg6: memref<32x32xf32, #tpu.memory_space<vmem>>, %arg7: memref<32x32xf32, #tpu.memory_space<vmem>>) attributes {dimension_semantics = [#tpu.dimension_semantics<parallel>, #tpu.dimension_semantics<arbitrary>], iteration_bounds = array<i64: 2, 1>, scalar_prefetch = 0 : i64, scratch_operands = 2 : i64, tpu.core_type = #tpu.core_type<tc>, window_params = [{transform_indices = @transform_0, window_bounds = array<i64: 1, 32, 16>}, {transform_indices = @transform_1, window_bounds = array<i64: 1, 32, 16>}, {transform_indices = @transform_2, window_bounds = array<i64: 1, 1, 128>}, {transform_indices = @transform_3, window_bounds = array<i64: 1, 1, 128>}]} {
    %c0 = arith.constant 0 : index
    %c0_0 = arith.constant 0 : index
    %c0_1 = arith.constant 0 : index
    %0 = vector.load %arg2[%c0, %c0_0, %c0_1] : memref<1x32x16xbf16, #tpu.memory_space<vmem>>, vector<1x32x16xbf16>
    %1 = vector.shape_cast %0 : vector<1x32x16xbf16> to vector<32x16xbf16>
    %c0_2 = arith.constant 0 : index
    %c0_3 = arith.constant 0 : index
    %c0_4 = arith.constant 0 : index
    %2 = vector.load %arg3[%c0_2, %c0_3, %c0_4] : memref<1x32x16xbf16, #tpu.memory_space<vmem>>, vector<1x32x16xbf16>
    %3 = vector.shape_cast %2 : vector<1x32x16xbf16> to vector<32x16xbf16>
    %c0_i32 = arith.constant 0 : i32
    %4 = arith.cmpi eq, %arg1, %c0_i32 : i32
    %5 = arith.extui %4 : i1 to i32
    %c0_i32_5 = arith.constant 0 : i32
    %6 = arith.cmpi ne, %5, %c0_i32_5 : i32
    scf.if %6 {
      %cst_24 = arith.constant 0.000000e+00 : f32
      %30 = vector.broadcast %cst_24 : f32 to vector<32x32xf32>
      %c0_25 = arith.constant 0 : index
      %c0_26 = arith.constant 0 : index
      %31 = vector.load %arg6[%c0_25, %c0_26] : memref<32x32xf32, #tpu.memory_space<vmem>>, vector<32x32xf32>
      tpu.vector_store %arg6[%c0_25, %c0_26], %30 {strides = array<i32>} : memref<32x32xf32, #tpu.memory_space<vmem>>, vector<32x32xf32>,
      %cst_27 = arith.constant 0.000000e+00 : f32
      %32 = vector.broadcast %cst_27 : f32 to vector<32x32xf32>
      %c0_28 = arith.constant 0 : index
      %c0_29 = arith.constant 0 : index
      %33 = vector.load %arg7[%c0_28, %c0_29] : memref<32x32xf32, #tpu.memory_space<vmem>>, vector<32x32xf32>
      tpu.vector_store %arg7[%c0_28, %c0_29], %32 {strides = array<i32>} : memref<32x32xf32, #tpu.memory_space<vmem>>, vector<32x32xf32>,
      %cst_30 = arith.constant 0.000000e+00 : f32
      %34 = vector.broadcast %cst_30 : f32 to vector<1x1x128xf32>
      %c0_31 = arith.constant 0 : index
      %c0_32 = arith.constant 0 : index
      %c0_33 = arith.constant 0 : index
      %35 = vector.load %arg4[%c0_31, %c0_32, %c0_33] : memref<1x1x128xf32, #tpu.memory_space<vmem>>, vector<1x1x128xf32>
      tpu.vector_store %arg4[%c0_31, %c0_32, %c0_33], %34 {strides = array<i32>} : memref<1x1x128xf32, #tpu.memory_space<vmem>>, vector<1x1x128xf32>,
      %cst_34 = arith.constant 0.000000e+00 : f32
      %36 = vector.broadcast %cst_34 : f32 to vector<1x1x128xf32>
      %c0_35 = arith.constant 0 : index
      %c0_36 = arith.constant 0 : index
      %c0_37 = arith.constant 0 : index
      %37 = vector.load %arg5[%c0_35, %c0_36, %c0_37] : memref<1x1x128xf32, #tpu.memory_space<vmem>>, vector<1x1x128xf32>
      tpu.vector_store %arg5[%c0_35, %c0_36, %c0_37], %36 {strides = array<i32>} : memref<1x1x128xf32, #tpu.memory_space<vmem>>, vector<1x1x128xf32>,
    } else {
    }
    %c0_6 = arith.constant 0 : index
    %c0_7 = arith.constant 0 : index
    %7 = vector.load %arg6[%c0_6, %c0_7] : memref<32x32xf32, #tpu.memory_space<vmem>>, vector<32x32xf32>
    %cst = arith.constant dense<0.000000e+00> : vector<32x32xf32>
    %8 = tpu.matmul %1, %1, %cst {dimension_numbers = #tpu.dot_dimension_numbers<[1], [1], [0], [0], [0, 0, 1, 0], [], []>} : vector<32x16xbf16>, vector<32x16xbf16>, vector<32x32xf32> -> vector<32x32xf32>
    %9 = arith.addf %7, %8 : vector<32x32xf32>
    %c0_8 = arith.constant 0 : index
    %c0_9 = arith.constant 0 : index
    %10 = vector.load %arg6[%c0_8, %c0_9] : memref<32x32xf32, #tpu.memory_space<vmem>>, vector<32x32xf32>
    tpu.vector_store %arg6[%c0_8, %c0_9], %9 {strides = array<i32>} : memref<32x32xf32, #tpu.memory_space<vmem>>, vector<32x32xf32>,
    %c0_10 = arith.constant 0 : index
    %c0_11 = arith.constant 0 : index
    %11 = vector.load %arg7[%c0_10, %c0_11] : memref<32x32xf32, #tpu.memory_space<vmem>>, vector<32x32xf32>
    %cst_12 = arith.constant dense<0.000000e+00> : vector<32x32xf32>
    %12 = tpu.matmul %3, %3, %cst_12 {dimension_numbers = #tpu.dot_dimension_numbers<[1], [1], [0], [0], [0, 0, 1, 0], [], []>} : vector<32x16xbf16>, vector<32x16xbf16>, vector<32x32xf32> -> vector<32x32xf32>
    %13 = arith.addf %11, %12 : vector<32x32xf32>
    %c0_13 = arith.constant 0 : index
    %c0_14 = arith.constant 0 : index
    %14 = vector.load %arg7[%c0_13, %c0_14] : memref<32x32xf32, #tpu.memory_space<vmem>>, vector<32x32xf32>
    tpu.vector_store %arg7[%c0_13, %c0_14], %13 {strides = array<i32>} : memref<32x32xf32, #tpu.memory_space<vmem>>, vector<32x32xf32>,
    %c0_15 = arith.constant 0 : index
    %c0_16 = arith.constant 0 : index
    %c0_17 = arith.constant 0 : index
    %15 = vector.load %arg4[%c0_15, %c0_16, %c0_17] : memref<1x1x128xf32, #tpu.memory_space<vmem>>, vector<1x1x128xf32>
    %16 = arith.extf %1 : vector<32x16xbf16> to vector<32x16xf32>
    %17 = arith.extf %3 : vector<32x16xbf16> to vector<32x16xf32>
    %18 = arith.subf %16, %17 : vector<32x16xf32>
    %19 = math.absf %18 : vector<32x16xf32>
    %20 = vector.shape_cast %19 : vector<32x16xf32> to vector<1x32x16xf32>
    %cst_18 = arith.constant dense<0.000000e+00> : vector<1xf32>
    %21 = vector.multi_reduction <add>, %20, %cst_18 [1, 2] : vector<1x32x16xf32> to vector<1xf32>
    %22 = vector.shape_cast %21 : vector<1xf32> to vector<1x1x1xf32>
    %23 = vector.extract %22[0, 0, 0] : f32 from vector<1x1x1xf32>
    %24 = vector.broadcast %23 : f32 to vector<1x1x128xf32>
    %25 = arith.addf %15, %24 : vector<1x1x128xf32>
    %c0_19 = arith.constant 0 : index
    %c0_20 = arith.constant 0 : index
    %c0_21 = arith.constant 0 : index
    %26 = vector.load %arg4[%c0_19, %c0_20, %c0_21] : memref<1x1x128xf32, #tpu.memory_space<vmem>>, vector<1x1x128xf32>
    tpu.vector_store %arg4[%c0_19, %c0_20, %c0_21], %25 {strides = array<i32>} : memref<1x1x128xf32, #tpu.memory_space<vmem>>, vector<1x1x128xf32>,
    %c0_i32_22 = arith.constant 0 : i32
    %27 = arith.cmpi eq, %arg1, %c0_i32_22 : i32
    %28 = arith.extui %27 : i1 to i32
    %c0_i32_23 = arith.constant 0 : i32
    %29 = arith.cmpi ne, %28, %c0_i32_23 : i32
    scf.if %29 {
      %c0_24 = arith.constant 0 : index
      %c0_25 = arith.constant 0 : index
      %30 = vector.load %arg6[%c0_24, %c0_25] : memref<32x32xf32, #tpu.memory_space<vmem>>, vector<32x32xf32>
      %c0_26 = arith.constant 0 : index
      %c0_27 = arith.constant 0 : index
      %31 = vector.load %arg7[%c0_26, %c0_27] : memref<32x32xf32, #tpu.memory_space<vmem>>, vector<32x32xf32>
      %32 = arith.subf %30, %31 : vector<32x32xf32>
      %33 = math.absf %32 : vector<32x32xf32>
      %34 = vector.shape_cast %33 : vector<32x32xf32> to vector<1x32x32xf32>
      %cst_28 = arith.constant dense<0.000000e+00> : vector<1xf32>
      %35 = vector.multi_reduction <add>, %34, %cst_28 [1, 2] : vector<1x32x32xf32> to vector<1xf32>
      %36 = vector.shape_cast %35 : vector<1xf32> to vector<1x1x1xf32>
      %37 = vector.extract %36[0, 0, 0] : f32 from vector<1x1x1xf32>
      %cst_29 = arith.constant 0.001953125 : f32
      %38 = arith.mulf %37, %cst_29 : f32
      %cst_30 = arith.constant 0.000000e+00 : f32
      %39 = vector.broadcast %cst_30 : f32 to vector<1x1x128xf32>
      %40 = vector.broadcast %38 : f32 to vector<1x1x128xf32>
      %41 = arith.addf %39, %40 : vector<1x1x128xf32>
      %c0_31 = arith.constant 0 : index
      %c0_32 = arith.constant 0 : index
      %c0_33 = arith.constant 0 : index
      %42 = vector.load %arg5[%c0_31, %c0_32, %c0_33] : memref<1x1x128xf32, #tpu.memory_space<vmem>>, vector<1x1x128xf32>
      tpu.vector_store %arg5[%c0_31, %c0_32, %c0_33], %41 {strides = array<i32>} : memref<1x1x128xf32, #tpu.memory_space<vmem>>, vector<1x1x128xf32>,
    } else {
    }
    return
  }
  func.func @transform_0(%arg0: i32, %arg1: i32) -> (i32, i32, i32) {
    %c0_i32 = arith.constant 0 : i32
    %c0_i32_0 = arith.constant 0 : i32
    return %arg0, %c0_i32, %arg1 : i32, i32, i32
  }
  func.func @transform_1(%arg0: i32, %arg1: i32) -> (i32, i32, i32) {
    %c0_i32 = arith.constant 0 : i32
    %c0_i32_0 = arith.constant 0 : i32
    return %arg0, %c0_i32, %arg1 : i32, i32, i32
  }
  func.func @transform_2(%arg0: i32, %arg1: i32) -> (i32, i32, i32) {
    %c0_i32 = arith.constant 0 : i32
    %c0_i32_0 = arith.constant 0 : i32
    %c0_i32_1 = arith.constant 0 : i32
    return %arg0, %c0_i32, %c0_i32_0 : i32, i32, i32
  }
  func.func @transform_3(%arg0: i32, %arg1: i32) -> (i32, i32, i32) {
    %c0_i32 = arith.constant 0 : i32
    %c0_i32_0 = arith.constant 0 : i32
    %c0_i32_1 = arith.constant 0 : i32
    return %arg0, %c0_i32, %c0_i32_0 : i32, i32, i32
  }
}

</mosaic_0001>

<bundles_post_ra>
// kernel: hdr_loss.11
= control target key start
LH: loop header
LB: loop body
LE: loop exit
PB: predicated region body
PF: predicated region fallthrough
CT: control target
= control target key end

     0   :  { %s284_s6 = smov 0   ;;  %s286_s7 = smov 0   ;;  %s317_s0 = inlined_call_operand.vmem [shape: f32[2,6,128], index: 0, kind: input, shape index: {}]   ;;  %s318_s1 = inlined_call_operand.vmem [shape: f32[2,1,128], index: 1, kind: output, shape index: {}]  }
   0x1   :  { %s288_s8 = smov 0  }
   0x2 LB: > { %s23_s9 = sadd.s32 1, %s267_s7  ;;  %p218_p0 = scmp.ge.s32.totalorder %s271_s8, 1  ;;  %s271_s8 = sphi %s288_s8, %s11_s8   ;;  %s267_s7 = sphi %s286_s7, %s320_s7   ;;  %s263_s6 = sphi %s284_s6, %s319_s6  }
   0x3   : > { %p25_p1 = scmp.ge.s32.totalorder %s23_s9, 2  ;;  %p103_p2 = scmp.lt.s32.totalorder %s271_s8, 3 }
   0x5   : > { %s322_s9 = smov (%p25_p1, %s23_s9), 0  ;;  %p104_p3 = pnand %p218_p0, %p103_p2 }
   0x6   : > { %p123_p4 = scmp.lt.s32.totalorder (!%p104_p3), %s263_s6, 1 }
   0x7   : > { %107 = sbr.rel (%p104_p3) target bundleno = 225 (0xe1), region = 24 }
   0xc   : > { %s324_s6 = smov (!%p123_p4, %s263_s6), 1  ;;  %vm136_vm0 = vcmask 1045504   ;;  %v273_v4 = vmov 0.0  }
   0xd   : > { %s219_s10 = sshll.u32 %s324_s6, 3  ;;  %s132_s16 = scalar_lea.vmem %s318_s1, %s324_s6 }
   0xe   : > { %s129_s13 = scalar_lea.vmem %s317_s0, %s219_s10  ;;  %151 = vst [vmem:[%s132_s16] sm:$0x1] %v273_v4 }
   0xf   : > { %v133_v0 = vld [vmem:[%s129_s13] sm:$0x3f] }
  0x10   : > { %v134_v1 = vmax.f32 %v133_v0, 0.0 }
  0x12   : > { %v135_v2 = vmin.f32 %v134_v1, 50.0 }
  0x14   : > { %v137_v3 = vsel %vm136_vm0, %v135_v2, -inf }
  0x15   : > { %138 = vmax.xlane.f32.xlu0 %v137_v3  ;;  %v152_v12 = vld [vmem:[%s132_s16] sm:$0x1] }
  0x9e   : > { %v139_v5 = vpop.xlane.xlu0 %138 }
  0x9f   : > { %v140_v6 = vrot.slane %v139_v5, 4 }
  0xa1   : > { %v141_v7 = vmax.f32 %v139_v5, %v140_v6 }
  0xa3   : > { %v142_v8 = vrot.slane %v141_v7, 2 }
  0xa5   : > { %v143_v9 = vmax.f32 %v141_v7, %v142_v8 }
  0xa7   : > { %v144_v10 = vrot.slane %v143_v9, 1 }
  0xa9   : > { %v145_v11 = vmax.f32 %v143_v9, %v144_v10 }
  0xab   : > { %222 = vpush %v145_v11 }
  0xdc   : > { %s223_s17 = spop %222 }
  0xdd   : > { %v153_v13 = vstv %s223_s17 }
  0xde   : > { %v154_v14 = vmax.f32 %v152_v12, %v153_v13 }
  0xe0   : > { %155 = vst [vmem:[%s132_s16] sm:$0x1] %v154_v14 }
  0xe1 PF: > { %s11_s8 = sadd.s32 1, %s271_s8   ;;  %s319_s6 = smov %s267_s7 }
  0xe2   : > { %p8_p5 = scmp.ge.s32.totalorder %s11_s8, 4   ;;  %s320_s7 = smov %s322_s9 }
  0xe4   :  { %10 = sbr.rel (!%p8_p5) target bundleno = 2 (0x2), region = 58 }

// kernel: hdr_loss.12
= control target key start
LH: loop header
LB: loop body
LE: loop exit
PB: predicated region body
PF: predicated region fallthrough
CT: control target
= control target key end

     0   :  { %s730_s21 = smov 0   ;;  %s732_s22 = smov 0   ;;  %s790_s0 = inlined_call_operand.vmem [shape: f32[2,1,128], index: 0, kind: input, shape index: {}]   ;;  %s791_s1 = inlined_call_operand.vmem [shape: f32[2,6,128], index: 1, kind: input, shape index: {}]   ;;  %s792_s2 = inlined_call_operand.vmem [shape: f32[2,6,128], index: 2, kind: input, shape index: {}]   ;;  %s793_s3 = inlined_call_operand.vmem [shape: f32[2,6,128], index: 3, kind: input, shape index: {}]   ;;  %s794_s4 = inlined_call_operand.vmem [shape: f32[2,6,128], index: 4, kind: output, shape index: {0}]   ;;  %s795_s5 = inlined_call_operand.vmem [shape: f32[2,6,128], index: 5, kind: output, shape index: {1}]   ;;  %s796_s6 = inlined_call_operand.vmem [shape: f32[2,1,128], index: 6, kind: output, shape index: {2}]  }
   0x1   :  { %s734_s23 = smov 0  }
   0x2 LB: > { %s29_s24 = sadd.s32 1, %s688_s22  ;;  %p624_p0 = scmp.ge.s32.totalorder %s692_s23, 1  ;;  %s692_s23 = sphi %s734_s23, %s17_s23   ;;  %s688_s22 = sphi %s732_s22, %s798_s22   ;;  %s684_s21 = sphi %s730_s21, %s797_s21  }
   0x3   : > { %p31_p1 = scmp.ge.s32.totalorder %s29_s24, 2  ;;  %p273_p2 = scmp.lt.s32.totalorder %s692_s23, 3 }
   0x5   : > { %s800_s24 = smov (%p31_p1, %s29_s24), 0  ;;  %p274_p3 = pnand %p624_p0, %p273_p2 }
   0x6   : > { %p334_p4 = scmp.lt.s32.totalorder (!%p274_p3), %s684_s21, 1 }
   0x7   : > { %277 = sbr.rel (%p274_p3) target bundleno = 246 (0xf6), region = 36 }
   0xc   : > { %s802_s21 = smov (!%p334_p4, %s684_s21), 1  ;;  %v415_v5 = vlaneseq  ;;  %vm387_vm0 = vcmask 1045504   ;;  %v694_v43 = vmov 0.0  }
   0xd   : > { %s336_s27 = scalar_lea.vmem %s790_s0, %s802_s21  ;;  %s755_s28 = sshll.u32 %s802_s21, 3 }
   0xe   : > { %s350_s7 = scalar_lea.vmem %s792_s2, %s755_s28  ;;  %v407_v0 = vld [vmem:[%s336_s27] sm:$0x1]  ;;  %s357_s10 = scalar_lea.vmem %s793_s3, %s755_s28  ;;  %v416_v8 = vshrl.u32 %v415_v5, 7 }
   0xf   : > { %v377_v1 = vld [vmem:[%s350_s7] sm:$0x3f]  ;;  %660 = vrcp.f32 %v407_v0  ;;  %s343_s13 = scalar_lea.vmem %s791_s1, %s755_s28  ;;  %s371_s16 = scalar_lea.vmem %s795_s5, %s755_s28 }
  0x10   : > { %v378_v2 = vmax.f32 %v377_v1, 0.0  ;;  %v380_v3 = vld [vmem:[%s357_s10] sm:$0x3f]  ;;  %v417_v10 = vsub.s32 0, %v416_v8  ;;  %s364_s19 = scalar_lea.vmem %s794_s4, %s755_s28  ;;  %s374_s26 = scalar_lea.vmem %s796_s6, %s802_s21 }
  0x11   : > { %v381_v4 = vadd.f32 1.0, %v380_v3  ;;  %v421_v9 = vmax.f32 %v380_v3, 0.0  ;;  %v375_v14 = vld [vmem:[%s343_s13] sm:$0x3f]  ;;  %402 = vst [vmem:[%s374_s26] sm:$0x1] %v694_v43 }
  0x12   : > { %v379_v6 = vmin.f32 %v378_v2, 10.0  ;;  %v376_v17 = vsub.f32 1.0, %v375_v14 }
  0x13   : > { %662 = vlog2.f32 %v381_v4  ;;  %v422_v11 = vmin.f32 %v421_v9, 50.0 }
  0x14   : > { %v409_v7 = vmul.f32 1.442695, %v379_v6 }
  0x16   : > { %664 = vpow2.f32 %v409_v7 }
  0x18   : > { %v403_v51 = vld [vmem:[%s374_s26] sm:$0x1] }
  0x1c   : > { %v661_v12 = vpop.eup %660 }
  0x1d   : > { %v418_v13 = vrot.slane %v661_v12, %v417_v10 }
  0x1f   : > { %v423_v15 = vmul.f32 %v422_v11, %v418_v13 }
  0x20   : > { %v663_v16 = vpop.eup %662 }
  0x21   : > { %v383_v18 = vmul.f32 0.6931472, %v663_v16  ;;  %v430_v19 = vmax.f32 %v423_v15, 0.0 }
  0x23   : > { %v665_v20 = vpop.eup %664  ;;  %v384_v21 = vsub.f32 %v379_v6, %v383_v18  ;;  %v431_v22 = vmul.f32 500.0, %v430_v19 }
  0x24   : > { %v630_v23 = vadd.f32 -1.0, %v665_v20 }
  0x25   : > { %v385_v24 = vmul.f32 %v384_v21, %v376_v17  ;;  %v432_v25 = vadd.f32 1.0, %v431_v22 }
  0x26   : > { %v412_v26 = vmax.f32 %v630_v23, 0.0 }
  0x27   : > { %v386_v27 = vand.u32 2147483647, %v385_v24  ;;  %666 = vlog2.f32 %v432_v25 }
  0x28   : > { %v413_v28 = vmin.f32 %v412_v26, 50.0 }
  0x29   : > { %v388_v29 = vsel %vm387_vm0, %v386_v27, 0.0 }
  0x2a   : > { %389 = vadd.xlane.f32.xlu0 %v388_v29  ;;  %v420_v30 = vmul.f32 %v418_v13, %v413_v28 }
  0x2c   : > { %v424_v31 = vmax.f32 %v420_v30, 0.0 }
  0x2e   : > { %v425_v32 = vmul.f32 500.0, %v424_v31 }
  0x30   : > { %v426_v33 = vadd.f32 1.0, %v425_v32 }
  0x32   : > { %668 = vlog2.f32 %v426_v33 }
  0x34   : > { %v667_v34 = vpop.eup %666 }
  0x35   : > { %v434_v35 = vmul.f32 0.6931472, %v667_v34 }
  0x37   : > { %v435_v36 = vmul.f32 0.16085948, %v434_v35 }
  0x39   : > { %440 = vst [vmem:[%s371_s16] sm:$0x3f] %v435_v36  ;;  %v436_v40 = vmul.f32 %v435_v36, %v375_v14 }
  0x3f   : > { %v669_v37 = vpop.eup %668 }
  0x40   : > { %v428_v38 = vmul.f32 0.6931472, %v669_v37 }
  0x42   : > { %v429_v39 = vmul.f32 0.16085948, %v428_v38 }
  0x44   : > { %v437_v41 = vmul.f32 %v429_v39, %v376_v17 }
  0x46   : > { %v438_v42 = vadd.f32 %v437_v41, %v436_v40 }
  0x48   : > { %439 = vst [vmem:[%s364_s19] sm:$0x3f] %v438_v42 }
  0xb3   : > { %v390_v44 = vpop.xlane.xlu0 %389 }
  0xb4   : > { %v391_v45 = vrot.slane %v390_v44, 4 }
  0xb6   : > { %v392_v46 = vadd.f32 %v391_v45, %v390_v44 }
  0xb8   : > { %v393_v47 = vrot.slane %v392_v46, 2 }
  0xba   : > { %v394_v48 = vadd.f32 %v393_v47, %v392_v46 }
  0xbc   : > { %v395_v49 = vrot.slane %v394_v48, 1 }
  0xbe   : > { %v396_v50 = vadd.f32 %v395_v49, %v394_v48 }
  0xc0   : > { %633 = vpush %v396_v50 }
  0xf1   : > { %s634_s27 = spop %633 }
  0xf2   : > { %v404_v52 = vstv %s634_s27 }
  0xf3   : > { %v405_v53 = vadd.f32 %v404_v52, %v403_v51 }
  0xf5   : > { %406 = vst [vmem:[%s374_s26] sm:$0x1] %v405_v53 }
  0xf6 PF: > { %s17_s23 = sadd.s32 1, %s692_s23   ;;  %s797_s21 = smov %s688_s22 }
  0xf7   : > { %p14_p5 = scmp.ge.s32.totalorder %s17_s23, 4   ;;  %s798_s22 = smov %s800_s24 }
  0xf9   :  { %16 = sbr.rel (!%p14_p5) target bundleno = 2 (0x2), region = 103 }

// kernel: hdr_loss.19
= control target key start
LH: loop header
LB: loop body
LE: loop exit
PB: predicated region body
PF: predicated region fallthrough
CT: control target
= control target key end

     0   :  { %s595_s12 = smov 0   ;;  %s597_s13 = smov 0   ;;  %s644_s0 = inlined_call_operand.vmem [shape: bf16[2,8,256], index: 0, kind: input, shape index: {}]   ;;  %s645_s1 = inlined_call_operand.vmem [shape: bf16[2,8,256], index: 1, kind: input, shape index: {}]   ;;  %s646_s2 = inlined_call_operand.vmem [shape: f32[2,1,128], index: 2, kind: output, shape index: {0}]   ;;  %s647_s3 = inlined_call_operand.vmem [shape: f32[2,1,128], index: 3, kind: output, shape index: {1}]  }
   0x1   :  { %s599_s14 = smov 0  }
   0x2 LB: > { %s26_s15 = sadd.s32 1, %s568_s13  ;;  %p504_p0 = scmp.ge.s32.totalorder %s572_s14, 1  ;;  %s572_s14 = sphi %s599_s14, %s14_s14   ;;  %s568_s13 = sphi %s597_s13, %s649_s13   ;;  %s564_s12 = sphi %s595_s12, %s648_s12  }
   0x3   : > { %p28_p1 = scmp.ge.s32.totalorder %s26_s15, 2  ;;  %p176_p2 = scmp.lt.s32.totalorder %s572_s14, 3 }
   0x5   : > { %s651_s15 = smov (%p28_p1, %s26_s15), 0  ;;  %p177_p3 = pnand %p504_p0, %p176_p2 }
   0x6   : > { %p215_p4 = scmp.lt.s32.totalorder (!%p177_p3), %s564_s12, 1 }
   0x7   : > { %180 = sbr.rel (%p177_p3) target bundleno = 439 (0x1b7), region = 28 }
   0xc   : > { %vm247_vm0 = vcmask 64512   ;;  %v574_v0 = vmov 0.0   ;;  %s653_s12 = smov (!%p215_p4, %s564_s12), 1 }
   0xd   : > { %248 = vst.msk [vmem:[#allocation2] sm:$0xff] %vm247_vm0, %v574_v0  ;;  %249 = vst.msk [vmem:[#allocation3] sm:$0xff] %vm247_vm0, %v574_v0  ;;  %s515_s16 = sshll.u32 %s653_s12, 3  ;;  %s236_s25 = scalar_lea.vmem %s646_s2, %s653_s12 }
   0xe   : > { %s222_s19 = scalar_lea.vmem %s644_s0, %s515_s16  ;;  %s232_s22 = scalar_lea.vmem %s645_s1, %s515_s16  ;;  %250 = vst [vmem:[%s236_s25] sm:$0x1] %v574_v0 }
   0xf   : > { %v241_v1 = vld [vmem:[%s222_s19] sm:$0xff]  ;;  %s239_s28 = scalar_lea.vmem %s647_s3, %s653_s12 }
  0x10   : > { %v242_v2 = vld [vmem:[%s232_s22] sm:$0xff]  ;;  %v510_v3 = vcombine.high %v241_v1, %v241_v1  ;;  %v509_v5 = vcombine.low %v241_v1, %v241_v1  ;;  %v354_v7 = vunpack.c.l.bf16 %v241_v1  ;;  %v355_v8 = vunpack.c.h.bf16 %v241_v1  ;;  %251 = vst [vmem:[%s239_s28] sm:$0x1] %v574_v0 }
  0x11   : > { %v512_v4 = vcombine.high %v242_v2, %v242_v2  ;;  %v511_v6 = vcombine.low %v242_v2, %v242_v2  ;;  %v356_v9 = vunpack.c.l.bf16 %v242_v2  ;;  %v357_v10 = vunpack.c.h.bf16 %v242_v2 }
  0x12   : > { %274 = vmatprep.subr.bf16.mxu0 %v510_v3  ;;  %292 = vmatprep.mubr.bf16.mxu0 %v510_v3 }
  0x13   : > { %325 = vmatprep.subr.bf16.mxu1 %v512_v4  ;;  %275 = vmatpush1.bf16.xpose.msra.mxu0 %v509_v5  ;;  %v358_v11 = vsub.f32 %v354_v7, %v356_v9  ;;  %v359_v12 = vsub.f32 %v355_v8, %v357_v10 }
  0x14   : > { %326 = vmatpush1.bf16.xpose.msra.mxu1 %v511_v6  ;;  %343 = vmatprep.mubr.bf16.mxu1 %v512_v4  ;;  %v252_v16 = vld [vmem:[#allocation2] sm:$0xff]  ;;  %v303_v17 = vld [vmem:[#allocation3] sm:$0xff] }
  0x15   : > { %v360_v13 = vand.u32 2147483647, %v358_v11  ;;  %v361_v14 = vand.u32 2147483647, %v359_v12  ;;  %v353_v40 = vld [vmem:[%s236_s25] sm:$0x1] }
  0x17   : > { %v362_v15 = vadd.f32 %v361_v14, %v360_v13 }
  0x19   : > { %363 = vadd.xlane.f32.xlu0 %v362_v15 }
  0x1a   : > { %293 = vmatmul.mubr.bf16.vlgmr.msra.gmra.mxu0 %v509_v5 }
  0x1b   : > { %344 = vmatmul.mubr.bf16.vlgmr.msra.gmra.mxu1 %v511_v6 }
  0xa2   : > { %v364_v33 = vpop.xlane.xlu0 %363 }
  0xa3   : > { %v365_v34 = vrot.slane %v364_v33, 4 }
  0xa5   : > { %v366_v35 = vadd.f32 %v365_v34, %v364_v33 }
  0xa7   : > { %v367_v36 = vrot.slane %v366_v35, 2 }
  0xa9   : > { %v368_v37 = vadd.f32 %v367_v36, %v366_v35 }
  0xab   : > { %v369_v38 = vrot.slane %v368_v37, 1 }
  0xad   : > { %v370_v39 = vadd.f32 %v369_v38, %v368_v37 }
  0xaf   : > { %517 = vpush %v370_v39 }
  0xda   : > { %v294_v18 = vpop.f32.mrf.mxu0 }
  0xdb   : > { %v345_v19 = vpop.f32.mrf.mxu1  ;;  %v300_v20 = vadd.f32 %v294_v18, %v252_v16 }
  0xdc   : > { %v351_v21 = vadd.f32 %v345_v19, %v303_v17  ;;  %v296_v22 = vpop.f32.mrf.mxu0 }
  0xdd   : > { %v347_v23 = vpop.f32.mrf.mxu1  ;;  %302 = vst.msk [vmem:[#allocation2] sm:$0xff] %vm247_vm0, %v300_v20 }
  0xde   : > { %352 = vst.msk [vmem:[#allocation3] sm:$0xff] %vm247_vm0, %v351_v21  ;;  %v297_v24 = vpop.f32.mrf.mxu0 }
  0xdf   : > { %v348_v25 = vpop.f32.mrf.mxu1 }
  0xe0   : > { %v298_v27 = vpop.f32.mrf.mxu0  ;;  %s518_s29 = spop %517 }
  0xe1   : > { %v349_v26 = vpop.f32.mrf.mxu1  ;;  %v372_v41 = vstv %s518_s29 }
  0xe2   : > { %v373_v42 = vadd.f32 %v372_v41, %v353_v40 }
  0xe4   : > { %v378_v28 = vld [vmem:[#allocation2] sm:$0xff]  ;;  %374 = vst [vmem:[%s236_s25] sm:$0x1] %v373_v42 }
  0xe5   : > { %v379_v29 = vld [vmem:[#allocation3] sm:$0xff] }
  0xe6   : > { %v380_v30 = vsub.f32 %v378_v28, %v379_v29 }
  0xe8   : > { %v381_v31 = vand.u32 2147483647, %v380_v30 }
  0xea   : > { %v382_v32 = vsel %vm247_vm0, %v381_v31, 0.0 }
  0xeb   : > { %383 = vadd.xlane.f32.xlu0 %v382_v32 }
 0x174   : > { %v384_v43 = vpop.xlane.xlu0 %383 }
 0x175   : > { %v385_v44 = vrot.slane %v384_v43, 4 }
 0x177   : > { %v386_v45 = vadd.f32 %v385_v44, %v384_v43 }
 0x179   : > { %v387_v46 = vrot.slane %v386_v45, 2 }
 0x17b   : > { %v388_v47 = vadd.f32 %v387_v46, %v386_v45 }
 0x17d   : > { %v389_v48 = vrot.slane %v388_v47, 1 }
 0x17f   : > { %v390_v49 = vadd.f32 %v389_v48, %v388_v47 }
 0x181   : > { %519 = vpush %v390_v49 }
 0x1b2   : > { %s520_s30 = spop %519 }
 0x1b3   : > { %s392_s4 = smul.f32 0.00048828125, %s520_s30 }
 0x1b5   : > { %v393_v50 = vstv %s392_s4 }
 0x1b6   : > { %395 = vst [vmem:[%s239_s28] sm:$0x1] %v393_v50 }
 0x1b7 PF: > { %s14_s14 = sadd.s32 1, %s572_s14   ;;  %s648_s12 = smov %s568_s13 }
 0x1b8   : > { %p11_p5 = scmp.ge.s32.totalorder %s14_s14, 4   ;;  %s649_s13 = smov %s651_s15 }
 0x1ba   :  { %13 = sbr.rel (!%p11_p5) target bundleno = 2 (0x2), region = 81 }

// kernel: hdr_loss.13
= control target key start
LH: loop header
LB: loop body
LE: loop exit
PB: predicated region body
PF: predicated region fallthrough
CT: control target
= control target key end

     0   :  { %s1034_s9 = smov 0   ;;  %s1192_s0 = inlined_call_operand.vmem [shape: bf16[2,8,290], index: 0, kind: input, shape index: {}]   ;;  %s1193_s1 = inlined_call_operand.vmem [shape: bf16[9,8,8], index: 1, kind: input, shape index: {}]   ;;  %s1194_s2 = inlined_call_operand.vmem [shape: bf16[2,8,256], index: 2, kind: output, shape index: {}]  }
   0x1 LB: > { %s912_s10 = sadd.s32 4294967295, %s1003_s9   ;;  %p916_p0 = scmp.ge.s32.totalorder %s1003_s9, 1  ;;  %s1003_s9 = sphi %s1034_s9, %s12_s9  }
   0x2   : > { %p112_p1 = scmp.lt.s32.totalorder %s1003_s9, 3 }
   0x4   : > { %p113_p2 = pnand %p916_p0, %p112_p1 }
   0x5   : > { %p134_p3 = scmp.lt.s32.totalorder (!%p113_p2), %s912_s10, 1  ;;  %s1006_s15 = smov (!%p113_p2), 18  }
   0x6   : > { %116 = sbr.rel (%p113_p2) target bundleno = 501 (0x1f5), region = 28  ;;  %s1007_s16 = smov (!%p113_p2), 2  }
   0x7   : > { %s1008_s17 = smov (!%p113_p2), 32   ;;  %s1009_s18 = smov (!%p113_p2), 16  }
   0x8   : > { %s1010_s19 = smov (!%p113_p2), 34   ;;  %s1011_s20 = smov (!%p113_p2), 127  }
   0x9   : > { %s1012_s21 = smov (!%p113_p2), 111   ;;  %s1013_s24 = smov (!%p113_p2), 126  }
   0xa   : > { %s1014_s25 = smov (!%p113_p2), 112   ;;  %s1015_s26 = smov (!%p113_p2), 96  }
   0xb   : > { %v149_v0 = vlaneseq  ;;  %v1005_v1 = vmov 0   ;;  %s1200_s10 = smov (!%p134_p3, %s912_s10), 1  ;;  %vm210_vm6 = vcmask 1043456   ;;  %vm322_vm7 = vcmask 15360   ;;  %v186_v22 = vld [vmem:[%s1193_s1] sm:$0xf] }
   0xc   : > { %249 = vmatprep.mubr.bf16.mxu0 %v1005_v1  ;;  %304 = vmatprep.mubr.bf16.mxu1 %v1005_v1  ;;  %s971_s11 = smul.u32 12, %s1200_s10  ;;  %vm206_vm9 = vcmask 64512   ;;  %vm403_vm10 = vcmask 130048   ;;  %vm203_vm15 = vcmask 1039360   ;;  %s1016_s27 = smov 110  }
   0xd   : > { %v150_v2 = vand.u32 127, %v149_v0  ;;  %v920_v48 = vld [vmem:[%s1193_s1 + $0x4] sm:$0xf]  ;;  %s1017_s30 = smov 95   ;;  %s1018_s3 = smov 94  }
   0xe   : > { %s138_s14 = scalar_lea.vmem %s1192_s0, %s971_s11 }
   0xf   : > { %v151_v3 = vadd.s32 128, %v150_v2  ;;  %v156_v4 = vand.u32 15, %v150_v2  ;;  %v1069_v10 = vld [vmem:[%s138_s14] sm:$0xff]  ;;  %v1075_v12 = vld [vmem:[%s138_s14 + $0x8] sm:$0xf] }
  0x10   : > { %v1073_v11 = vcombine.low %v1069_v10, %v1069_v10  ;;  %v1079_v13 = vcombine.high %v1069_v10, %v1069_v10  ;;  %v1084_v14 = vcombine.low %v1075_v12, %v1075_v12 }
  0x11   : > { %v163_v5 = vand.u32 15, %v151_v3  ;;  %vm178_vm0 = vcmp.ne.s32.totalorder %v156_v4, 15  ;;  %vm1047_vm1 = vcmp.ne.s32.totalorder %v156_v4, 0 }
  0x13   : > { %vm179_vm2 = vcmp.ne.s32.totalorder %v163_v5, 15  ;;  %vm1051_vm3 = vcmp.ne.s32.totalorder %v163_v5, 0 }
  0x14   : > { %vm317_vm4 = vmpackc.low %vm179_vm2, %vm178_vm0  ;;  %vm626_vm2 = vcmask 261120  }
  0x15   : > { %v318_v8 = vsel %vm317_vm4, 65537, %v1005_v1  ;;  %vm184_vm5 = vmpackc.low %vm1051_vm3, %vm1047_vm1  ;;  %vm546_vm1 = vcmask 146432   ;;  %vm769_vm4 = vcmask 277504  }
  0x16   : > { %543 = vrot.lane.b32.xlu1 %v318_v8, %s1006_s15  ;;  %319 = vrot.lane.b32.xlu0 %v318_v8, %s1007_s16  ;;  %v399_v9 = vsel %vm184_vm5, 65537, %v1005_v1  ;;  %v185_v15 = vsel %vm184_vm5, %v1069_v10, 0 }
  0x17   : > { %v927_v16 = vcombine.high %v185_v15, %v185_v15  ;;  %v926_v17 = vcombine.low %v185_v15, %v185_v15 }
  0x19   : > { %928 = vmatprep.subr.msk.bf16.mxu1 %vm210_vm6, %v927_v16  ;;  %v267_v20 = vsel %vm210_vm6, %v926_v17, 0 }
  0x1a   : > { %623 = vrot.lane.b32.xlu1 %v399_v9, %s1008_s17  ;;  %400 = vrot.lane.b32.xlu0 %v399_v9, %s1009_s18 }
  0x1b   : > { %287 = vmatpush1.bf16.msra.mxu1 %v267_v20  ;;  %v930_v20 = vld [vmem:[%s1193_s1 + $0x8] sm:$0xf] }
  0x1e   : > { %766 = vrot.lane.b32.xlu0 %v318_v8, %s1010_s19  ;;  %197 = vrot.lane.b32.xlu1 %v1073_v11, %s1011_s20 }
  0x1f   : > { %929 = vmatmul.mubr.msk.bf16.vlgmr.msra.gmra.mxu1 %vm206_vm9, %v186_v22 }
  0x20   : > { %469 = vmatprep.mubr.bf16.mxu1 %v1005_v1 }
  0x22   : > { %199 = vrot.lane.b32.xlu0 %v1079_v13, %s1011_s20  ;;  %201 = vrot.lane.b32.xlu1 %v1084_v14, %s1011_s20  ;;  %s969_s20 = sshll.u32 %s1200_s10, 3 }
  0x23   : > { %s143_s23 = scalar_lea.vmem %s1194_s2, %s969_s20 }
  0x26   : > { %482 = vrot.lane.b32.xlu0 %v1073_v11, %s1012_s21  ;;  %484 = vrot.lane.b32.xlu1 %v1079_v13, %s1012_s21 }
  0x2a   : > { %486 = vrot.lane.b32.xlu0 %v1084_v14, %s1012_s21 }
  0x88   : > { %v544_v18 = vpop.permute.xlu1 %543  ;;  %v320_v19 = vpop.permute.xlu0 %319 }
  0x89   : > { %v321_v21 = vrot.slane %v320_v19, 4  ;;  %v545_v26 = vrot.slane %v544_v18, 4 }
  0x8b   : > { %vm325_vm8 = vcmp.ne.s16.totalorder %v321_v21, 0  ;;  %v323_v27 = vsel %vm322_vm7, %v321_v21, %v320_v19  ;;  %vm549_vm11 = vcmp.ne.s16.totalorder %v545_v26, 0  ;;  %v547_v49 = vsel %vm546_vm1, %v545_v26, %v544_v18  ;;  %v936_v26 = vld [vmem:[%s1193_s1 + $0xc] sm:$0xf] }
  0x8c   : > { %v624_v23 = vpop.permute.xlu1 %623  ;;  %v401_v24 = vpop.permute.xlu0 %400  ;;  %v327_v25 = vsel %vm325_vm8, %v1075_v12, 0  ;;  %vm324_vm14 = vcmp.ne.s16.totalorder %v323_v27, 0  ;;  %v551_v38 = vsel %vm549_vm11, %v1075_v12, 0  ;;  %vm548_vm3 = vcmp.ne.s16.totalorder %v547_v49, 0 }
  0x8d   : > { %v625_v28 = vrot.slane %v624_v23, 4  ;;  %v402_v29 = vrot.slane %v401_v24, 4  ;;  %v933_v30 = vcombine.low %v327_v25, %v327_v25  ;;  %v326_v39 = vsel %vm324_vm14, %v1069_v10, 0 }
  0x8e   : > { %v948_v42 = vcombine.low %v551_v38, %v551_v38  ;;  %v931_v45 = vcombine.low %v326_v39, %v326_v39  ;;  %v932_v50 = vcombine.high %v326_v39, %v326_v39  ;;  %v550_v55 = vsel %vm548_vm3, %v1069_v10, 0 }
  0x8f   : > { %vm629_vm12 = vcmp.ne.s16.totalorder %v625_v28, 0  ;;  %vm406_vm13 = vcmp.ne.s16.totalorder %v402_v29, 0  ;;  %342 = vrot.lane.b32.xlu0 %v933_v30, %s1013_s24  ;;  %v404_v35 = vsel %vm403_vm10, %v402_v29, %v401_v24  ;;  %v627_v53 = vsel %vm626_vm2, %v625_v28, %v624_v23  ;;  %v942_v30 = vld [vmem:[%s1193_s1 + $0x10] sm:$0xf] }
  0x90   : > { %v631_v31 = vsel %vm629_vm12, %v1075_v12, 0  ;;  %v408_v32 = vsel %vm406_vm13, %v1075_v12, 0  ;;  %v767_v33 = vpop.permute.xlu0 %766  ;;  %v198_v34 = vpop.permute.xlu1 %197  ;;  %vm405_vm0 = vcmp.ne.s16.totalorder %v404_v35, 0  ;;  %vm628_vm5 = vcmp.ne.s16.totalorder %v627_v53, 0  ;;  %v945_v35 = vld [vmem:[%s1193_s1 + $0x14] sm:$0xf] }
  0x91   : > { %v954_v36 = vcombine.low %v631_v31, %v631_v31  ;;  %v939_v37 = vcombine.low %v408_v32, %v408_v32  ;;  %v407_v47 = vsel %vm405_vm0, %v1069_v10, 0  ;;  %v768_v52 = vrot.slane %v767_v33, 4 }
  0x92   : > { %v938_v51 = vcombine.high %v407_v47, %v407_v47  ;;  %v937_v54 = vcombine.low %v407_v47, %v407_v47  ;;  %v947_v57 = vcombine.high %v550_v55, %v550_v55  ;;  %v630_v58 = vsel %vm628_vm5, %v1069_v10, 0 }
  0x93   : > { %423 = vrot.lane.b32.xlu1 %v939_v37, %s1014_s25  ;;  %646 = vrot.lane.b32.xlu0 %v954_v36, %s1015_s26  ;;  %v770_v56 = vsel %vm769_vm4, %v768_v52, %v767_v33  ;;  %v946_v60 = vcombine.low %v550_v55, %v550_v55  ;;  %vm772_vm8 = vcmp.ne.s16.totalorder %v768_v52, 0  ;;  %v952_v61 = vcombine.low %v630_v58, %v630_v58  ;;  %v960_v52 = vld [vmem:[%s1193_s1 + $0x20] sm:$0xf] }
  0x94   : > { %v200_v40 = vpop.permute.xlu0 %199  ;;  %v202_v41 = vpop.permute.xlu1 %201  ;;  %vm771_vm7 = vcmp.ne.s16.totalorder %v770_v56, 0  ;;  %v953_v63 = vcombine.high %v630_v58, %v630_v58  ;;  %v774_v0 = vsel %vm772_vm8, %v1075_v12, 0  ;;  %vm344_vm10 = vcmask 1031168  }
  0x95   : > { %v205_v43 = vsel %vm203_vm15, %v200_v40, %v202_v41  ;;  %v204_v44 = vsel %vm203_vm15, %v198_v34, %v200_v40  ;;  %v773_v59 = vsel %vm771_vm7, %v1069_v10, 0  ;;  %v963_v2 = vcombine.low %v774_v0, %v774_v0 }
  0x96   : > { %924 = vmatprep.subr.msk.bf16.mxu0 %vm210_vm6, %v205_v43  ;;  %v212_v46 = vsel %vm210_vm6, %v204_v44, 0  ;;  %v961_v62 = vcombine.low %v773_v59, %v773_v59  ;;  %v962_v3 = vcombine.high %v773_v59, %v773_v59  ;;  %vm425_vm11 = vcmask 916480  }
  0x97   : > { %566 = vrot.lane.b32.xlu1 %v948_v42, %s1016_s27  ;;  %232 = vmatpush1.bf16.msra.mxu0 %v212_v46  ;;  %vm488_vm12 = vcmask 908288   ;;  %vm568_vm13 = vcmask 900096   ;;  %vm648_vm14 = vcmask 785408   ;;  %vm711_vm15 = vcmask 777216   ;;  %v951_v42 = vld [vmem:[%s1193_s1 + $0x18] sm:$0xf] }
  0x98   : > { %338 = vrot.lane.b32.xlu0 %v931_v45, %s1013_s24  ;;  %v483_v4 = vpop.permute.xlu0 %482  ;;  %v485_v6 = vpop.permute.xlu1 %484  ;;  %vm791_vm0 = vcmask 769024   ;;  %v957_v46 = vld [vmem:[%s1193_s1 + $0x1c] sm:$0xf] }
  0x99   : > { %v489_v18 = vsel %vm488_vm12, %v483_v4, %v485_v6 }
  0x9a   : > { %925 = vmatmul.mubr.msk.bf16.vlgmr.msra.gmra.mxu0 %vm206_vm9, %v920_v48  ;;  %v495_v24 = vsel %vm210_vm6, %v489_v18, 0 }
  0x9b   : > { %340 = vrot.lane.b32.xlu1 %v932_v50, %s1013_s24  ;;  %388 = vmatprep.mubr.bf16.mxu0 %v1005_v1 }
  0x9c   : > { %421 = vrot.lane.b32.xlu0 %v938_v51, %s1014_s25  ;;  %v487_v5 = vpop.permute.xlu0 %486 }
  0x9d   : > { %v490_v19 = vsel %vm488_vm12, %v485_v6, %v487_v5 }
  0x9f   : > { %419 = vrot.lane.b32.xlu1 %v937_v54, %s1014_s25 }
  0xa0   : > { %707 = vrot.lane.b32.xlu0 %v1079_v13, %s1017_s30 }
  0xa3   : > { %705 = vrot.lane.b32.xlu1 %v1073_v11, %s1017_s30 }
  0xa4   : > { %564 = vrot.lane.b32.xlu0 %v947_v57, %s1016_s27 }
  0xa7   : > { %562 = vrot.lane.b32.xlu1 %v946_v60, %s1016_s27 }
  0xa8   : > { %642 = vrot.lane.b32.xlu0 %v952_v61, %s1015_s26 }
  0xab   : > { %644 = vrot.lane.b32.xlu1 %v953_v63, %s1015_s26 }
  0xac   : > { %785 = vrot.lane.b32.xlu0 %v961_v62, %s1018_s3 }
  0xaf   : > { %709 = vrot.lane.b32.xlu1 %v1084_v14, %s1017_s30 }
  0xb0   : > { %789 = vrot.lane.b32.xlu0 %v963_v2, %s1018_s3 }
  0xb3   : > { %787 = vrot.lane.b32.xlu1 %v962_v3, %s1018_s3 }
  0xdf   : > { %v306_v53 = vpop.f32.mrf.mxu1 }
  0xe1   : > { %v308_v54 = vpop.f32.mrf.mxu1 }
 0x101   : > { %v343_v7 = vpop.permute.xlu0 %342 }
 0x105   : > { %v424_v8 = vpop.permute.xlu1 %423  ;;  %v647_v9 = vpop.permute.xlu0 %646 }
 0x109   : > { %v567_v10 = vpop.permute.xlu1 %566 }
 0x10a   : > { %v339_v11 = vpop.permute.xlu0 %338 }
 0x10d   : > { %v341_v12 = vpop.permute.xlu1 %340 }
 0x10e   : > { %v422_v13 = vpop.permute.xlu0 %421  ;;  %v345_v15 = vsel %vm344_vm10, %v339_v11, %v341_v12  ;;  %v346_v16 = vsel %vm344_vm10, %v341_v12, %v343_v7 }
 0x10f   : > { %v427_v14 = vsel %vm425_vm11, %v422_v13, %v424_v8  ;;  %v351_v17 = vsel %vm210_vm6, %v345_v15, 0  ;;  %934 = vmatprep.subr.msk.bf16.mxu0 %vm210_vm6, %v346_v16 }
 0x110   : > { %940 = vmatprep.subr.msk.bf16.mxu1 %vm210_vm6, %v427_v14  ;;  %371 = vmatpush1.bf16.msra.mxu0 %v351_v17 }
 0x111   : > { %943 = vmatprep.subr.msk.bf16.mxu0 %vm210_vm6, %v490_v19  ;;  %v420_v21 = vpop.permute.xlu1 %419 }
 0x112   : > { %v708_v22 = vpop.permute.xlu0 %707  ;;  %v426_v23 = vsel %vm425_vm11, %v420_v21, %v422_v13 }
 0x113   : > { %v432_v25 = vsel %vm210_vm6, %v426_v23, 0  ;;  %935 = vmatmul.mubr.msk.bf16.vlgmr.msra.gmra.mxu0 %vm206_vm9, %v930_v20 }
 0x114   : > { %452 = vmatpush1.bf16.msra.mxu1 %v432_v25  ;;  %515 = vmatpush1.bf16.msra.mxu0 %v495_v24 }
 0x115   : > { %v706_v27 = vpop.permute.xlu1 %705  ;;  %532 = vmatprep.mubr.bf16.mxu0 %v1005_v1 }
 0x116   : > { %v565_v28 = vpop.permute.xlu0 %564  ;;  %v712_v41 = vsel %vm711_vm15, %v706_v27, %v708_v22 }
 0x117   : > { %v570_v29 = vsel %vm568_vm13, %v565_v28, %v567_v10  ;;  %941 = vmatmul.mubr.msk.bf16.vlgmr.msra.gmra.mxu1 %vm206_vm9, %v936_v26  ;;  %v718_v45 = vsel %vm210_vm6, %v712_v41, 0 }
 0x118   : > { %949 = vmatprep.subr.msk.bf16.mxu1 %vm210_vm6, %v570_v29  ;;  %612 = vmatprep.mubr.bf16.mxu1 %v1005_v1 }
 0x119   : > { %v563_v31 = vpop.permute.xlu1 %562 }
 0x11a   : > { %v643_v32 = vpop.permute.xlu0 %642  ;;  %v569_v33 = vsel %vm568_vm13, %v563_v31, %v565_v28 }
 0x11b   : > { %v575_v34 = vsel %vm210_vm6, %v569_v33, 0  ;;  %944 = vmatmul.mubr.msk.bf16.vlgmr.msra.gmra.mxu0 %vm206_vm9, %v942_v30 }
 0x11c   : > { %595 = vmatpush1.bf16.msra.mxu1 %v575_v34  ;;  %692 = vmatprep.mubr.bf16.mxu0 %v1005_v1 }
 0x11d   : > { %v645_v36 = vpop.permute.xlu1 %644 }
 0x11e   : > { %v649_v37 = vsel %vm648_vm14, %v643_v32, %v645_v36  ;;  %v650_v38 = vsel %vm648_vm14, %v645_v36, %v647_v9  ;;  %v786_v39 = vpop.permute.xlu0 %785 }
 0x11f   : > { %v655_v40 = vsel %vm210_vm6, %v649_v37, 0  ;;  %950 = vmatmul.mubr.msk.bf16.vlgmr.msra.gmra.mxu1 %vm206_vm9, %v945_v35  ;;  %955 = vmatprep.subr.msk.bf16.mxu0 %vm210_vm6, %v650_v38 }
 0x120   : > { %675 = vmatpush1.bf16.msra.mxu0 %v655_v40  ;;  %755 = vmatprep.mubr.bf16.mxu1 %v1005_v1 }
 0x121   : > { %v710_v43 = vpop.permute.xlu1 %709 }
 0x122   : > { %v713_v44 = vsel %vm711_vm15, %v708_v22, %v710_v43  ;;  %v790_v47 = vpop.permute.xlu0 %789 }
 0x123   : > { %956 = vmatmul.mubr.msk.bf16.vlgmr.msra.gmra.mxu0 %vm206_vm9, %v951_v42  ;;  %958 = vmatprep.subr.msk.bf16.mxu1 %vm210_vm6, %v713_v44 }
 0x124   : > { %738 = vmatpush1.bf16.msra.mxu1 %v718_v45  ;;  %835 = vmatprep.mubr.bf16.mxu0 %v1005_v1  ;;  %v310_v1 = vpop.f32.mrf.mxu1 }
 0x125   : > { %v788_v48 = vpop.permute.xlu1 %787 }
 0x126   : > { %v792_v49 = vsel %vm791_vm0, %v786_v39, %v788_v48  ;;  %v793_v50 = vsel %vm791_vm0, %v788_v48, %v790_v47  ;;  %v311_v55 = vpop.f32.mrf.mxu1 }
 0x127   : > { %v798_v51 = vsel %vm210_vm6, %v792_v49, 0  ;;  %959 = vmatmul.mubr.msk.bf16.vlgmr.msra.gmra.mxu1 %vm206_vm9, %v957_v46  ;;  %964 = vmatprep.subr.msk.bf16.mxu0 %vm210_vm6, %v793_v50 }
 0x128   : > { %818 = vmatpush1.bf16.msra.mxu0 %v798_v51 }
 0x12b   : > { %965 = vmatmul.mubr.msk.bf16.vlgmr.msra.gmra.mxu0 %vm206_vm9, %v960_v52 }
 0x15a   : > { %v251_v56 = vpop.f32.mrf.mxu0 }
 0x15b   : > { %v307_v57 = vadd.f32 %v306_v53, %v251_v56 }
 0x15c   : > { %v253_v58 = vpop.f32.mrf.mxu0 }
 0x15d   : > { %v309_v59 = vadd.f32 %v308_v54, %v253_v58 }
 0x15e   : > { %v255_v60 = vpop.f32.mrf.mxu0 }
 0x160   : > { %v256_v61 = vpop.f32.mrf.mxu0 }
 0x1d3   : > { %v390_v62 = vpop.f32.mrf.mxu0 }
 0x1d4   : > { %v397_v11 = vadd.f32 %v390_v62, %v307_v57 }
 0x1d5   : > { %v392_v63 = vpop.f32.mrf.mxu0 }
 0x1d6   : > { %v398_v15 = vadd.f32 %v392_v63, %v309_v59 }
 0x1d7   : > { %v394_v0 = vpop.f32.mrf.mxu0  ;;  %v471_v2 = vpop.f32.mrf.mxu1 }
 0x1d8   : > { %v478_v16 = vadd.f32 %v471_v2, %v397_v11 }
 0x1d9   : > { %v395_v3 = vpop.f32.mrf.mxu0  ;;  %v473_v4 = vpop.f32.mrf.mxu1 }
 0x1da   : > { %v479_v18 = vadd.f32 %v473_v4, %v398_v15 }
 0x1db   : > { %v475_v5 = vpop.f32.mrf.mxu1  ;;  %v534_v6 = vpop.f32.mrf.mxu0 }
 0x1dc   : > { %v541_v19 = vadd.f32 %v534_v6, %v478_v16 }
 0x1dd   : > { %v476_v7 = vpop.f32.mrf.mxu1  ;;  %v536_v8 = vpop.f32.mrf.mxu0 }
 0x1de   : > { %v542_v22 = vadd.f32 %v536_v8, %v479_v18 }
 0x1df   : > { %v538_v9 = vpop.f32.mrf.mxu0  ;;  %v614_v10 = vpop.f32.mrf.mxu1 }
 0x1e0   : > { %v621_v23 = vadd.f32 %v614_v10, %v541_v19 }
 0x1e1   : > { %v539_v12 = vpop.f32.mrf.mxu0  ;;  %v616_v13 = vpop.f32.mrf.mxu1 }
 0x1e2   : > { %v622_v26 = vadd.f32 %v616_v13, %v542_v22 }
 0x1e3   : > { %v618_v14 = vpop.f32.mrf.mxu1  ;;  %v694_v17 = vpop.f32.mrf.mxu0 }
 0x1e4   : > { %v701_v27 = vadd.f32 %v694_v17, %v621_v23 }
 0x1e5   : > { %v619_v20 = vpop.f32.mrf.mxu1  ;;  %v696_v21 = vpop.f32.mrf.mxu0 }
 0x1e6   : > { %v702_v30 = vadd.f32 %v696_v21, %v622_v26 }
 0x1e7   : > { %v698_v24 = vpop.f32.mrf.mxu0  ;;  %v757_v25 = vpop.f32.mrf.mxu1 }
 0x1e8   : > { %v764_v31 = vadd.f32 %v757_v25, %v701_v27 }
 0x1e9   : > { %v699_v28 = vpop.f32.mrf.mxu0  ;;  %v759_v29 = vpop.f32.mrf.mxu1 }
 0x1ea   : > { %v765_v34 = vadd.f32 %v759_v29, %v702_v30 }
 0x1eb   : > { %v837_v32 = vpop.f32.mrf.mxu0  ;;  %v761_v33 = vpop.f32.mrf.mxu1 }
 0x1ec   : > { %v844_v35 = vadd.f32 %v837_v32, %v764_v31 }
 0x1ed   : > { %v839_v36 = vpop.f32.mrf.mxu0  ;;  %v762_v37 = vpop.f32.mrf.mxu1 }
 0x1ee   : > { %v845_v38 = vadd.f32 %v839_v36, %v765_v34  ;;  %v846_v40 = vmax.f32 %v844_v35, 0.0 }
 0x1ef   : > { %v841_v39 = vpop.f32.mrf.mxu0 }
 0x1f0   : > { %v847_v41 = vmax.f32 %v845_v38, 0.0 }
 0x1f1   : > { %v842_v42 = vpop.f32.mrf.mxu0 }
 0x1f2   : > { %v970_v43 = vpack.c.bf16 %v847_v41, %v846_v40 }
 0x1f4   : > { %856 = vst [vmem:[%s143_s23] sm:$0xff] %v970_v43 }
 0x1f5 PF: > { %s12_s9 = sadd.s32 1, %s1003_s9  }
 0x1f6   : > { %p9_p4 = scmp.ge.s32.totalorder %s12_s9, 4  }
 0x1f8   :  { %11 = sbr.rel (!%p9_p4) target bundleno = 1 (0x1), region = 66 }

// kernel: hdr_loss.14
= control target key start
LH: loop header
LB: loop body
LE: loop exit
PB: predicated region body
PF: predicated region fallthrough
CT: control target
= control target key end

     0   :  { %s1002_s9 = smov 0   ;;  %s1101_s0 = inlined_call_operand.vmem [shape: bf16[2,8,82], index: 0, kind: input, shape index: {}]   ;;  %s1102_s1 = inlined_call_operand.vmem [shape: bf16[9,16,8], index: 1, kind: input, shape index: {}]   ;;  %s1103_s2 = inlined_call_operand.vmem [shape: bf16[2,16,64], index: 2, kind: output, shape index: {}]  }
   0x1 LB: > { %s802_s10 = sadd.s32 4294967295, %s969_s9   ;;  %p806_p0 = scmp.ge.s32.totalorder %s969_s9, 1  ;;  %s969_s9 = sphi %s1002_s9, %s12_s9  }
   0x2   : > { %p111_p1 = scmp.lt.s32.totalorder %s969_s9, 3 }
   0x4   : > { %p112_p2 = pnand %p806_p0, %p111_p1 }
   0x5   : > { %p132_p3 = scmp.lt.s32.totalorder (!%p112_p2), %s802_s10, 1  ;;  %s972_s15 = smov (!%p112_p2), 2  }
   0x6   : > { %115 = sbr.rel (%p112_p2) target bundleno = 486 (0x1e6), region = 28  ;;  %s973_s16 = smov (!%p112_p2), 10  }
   0x7   : > { %s974_s17 = smov (!%p112_p2), 8   ;;  %s975_s18 = smov (!%p112_p2), 16  }
   0x8   : > { %s978_s21 = smov (!%p112_p2), 18   ;;  %s979_s22 = smov (!%p112_p2), 127  }
   0x9   : > { %s980_s23 = smov (!%p112_p2), 126   ;;  %s981_s24 = smov (!%p112_p2), 120  }
   0xa   : > { %s982_s25 = smov (!%p112_p2), 119   ;;  %s983_s28 = smov (!%p112_p2), 118  }
   0xb   : > { %v145_v0 = vlaneseq  ;;  %s1105_s10 = smov (!%p132_p3, %s802_s10), 1  ;;  %v971_v3 = vmov 0   ;;  %vm184_vm4 = vcmask 1043456   ;;  %v976_v10 = vmov 0.0   ;;  %v955_v11 = vld [vmem:[%s1102_s1] sm:$0xff]   ;;  %v954_v28 = vld [vmem:[%s1102_s1 + $0x8] sm:$0xff]  }
   0xc   : > { %s807_s11 = sshll.u32 %s1105_s10, 2  ;;  %875 = vmatprep.subr.bf16.mxu0 %v976_v10  ;;  %881 = vmatprep.subr.bf16.mxu1 %v976_v10  ;;  %vm977_vm5 = vmmov 0   ;;  %vm180_vm6 = vcmask 64512   ;;  %s984_s29 = smov 112   ;;  %v956_v36 = vld [vmem:[%s1102_s1 + $0x10] sm:$0xff]   ;;  %v957_v41 = vld [vmem:[%s1102_s1 + $0x18] sm:$0xff]  }
   0xd   : > { %v146_v1 = vand.u32 127, %v145_v0  ;;  %s135_s14 = scalar_lea.vmem %s1101_s0, %s807_s11  ;;  %877 = vmatprep.mubr.msk.bf16.mxu0 %vm977_vm5, %v976_v10  ;;  %883 = vmatprep.mubr.msk.bf16.mxu1 %vm977_vm5, %v976_v10  ;;  %s985_s30 = smov 111   ;;  %v958_v45 = vld [vmem:[%s1102_s1 + $0x20] sm:$0xff]   ;;  %v959_v48 = vld [vmem:[%s1102_s1 + $0x28] sm:$0xff]   ;;  %v960_v51 = vld [vmem:[%s1102_s1 + $0x30] sm:$0xff]   ;;  %vm744_vm12 = vcmask 519168  }
   0xe   : > { %v144_v5 = vld [vmem:[%s135_s14] sm:$0xf]  ;;  %s986_s3 = smov 110   ;;  %v961_v53 = vld [vmem:[%s1102_s1 + $0x38] sm:$0xff]   ;;  %s854_s20 = sshll.u32 %s1105_s10, 3 }
   0xf   : > { %v151_v2 = vand.u32 7, %v146_v1  ;;  %v813_v8 = vcombine.low %v144_v5, %v144_v5  ;;  %v962_v54 = vld [vmem:[%s1102_s1 + $0x40] sm:$0xff]  }
  0x11   : > { %vm160_vm0 = vcmp.ne.s32.totalorder %v151_v2, 7  ;;  %vm159_vm1 = vcmp.ne.s32.totalorder %v151_v2, 0 }
  0x12   : > { %vm283_vm2 = vmpackc.low %vm160_vm0, %vm160_vm0 }
  0x13   : > { %v284_v4 = vsel %vm283_vm2, 65537, %v971_v3  ;;  %vm163_vm3 = vmpackc.low %vm159_vm1, %vm159_vm1 }
  0x14   : > { %285 = vrot.lane.b32.xlu0 %v284_v4, %s972_s15  ;;  %v351_v6 = vsel %vm163_vm3, 65537, %v971_v3  ;;  %477 = vrot.lane.b32.xlu1 %v284_v4, %s973_s16  ;;  %v164_v7 = vsel %vm163_vm3, %v144_v5, 0 }
  0x15   : > { %v238_v9 = vsel %vm184_vm4, %v164_v7, 0 }
  0x16   : > { %882 = vmatpush3.bf16.msra.mxu1 %v238_v9 }
  0x17   : > { %893 = vmatprep.subr.bf16.mxu1 %v976_v10 }
  0x18   : > { %352 = vrot.lane.b32.xlu0 %v351_v6, %s974_s17  ;;  %543 = vrot.lane.b32.xlu1 %v351_v6, %s975_s18 }
  0x19   : > { %884 = vmatmul.mubr.msk.bf16.vlgmr.msra.gmra.mxu1 %vm180_vm6, %v955_v11 }
  0x1a   : > { %895 = vmatprep.mubr.msk.bf16.mxu1 %vm977_vm5, %v976_v10 }
  0x1c   : > { %668 = vrot.lane.b32.xlu0 %v284_v4, %s978_s21  ;;  %178 = vrot.lane.b32.xlu1 %v813_v8, %s979_s22 }
  0x86   : > { %v286_v12 = vpop.permute.xlu0 %285  ;;  %v478_v13 = vpop.permute.xlu1 %477 }
  0x87   : > { %vm287_vm7 = vcmp.ne.s16.totalorder %v286_v12, 0  ;;  %vm479_vm8 = vcmp.ne.s16.totalorder %v478_v13, 0 }
  0x88   : > { %v288_v14 = vsel %vm287_vm7, %v144_v5, 0  ;;  %v480_v19 = vsel %vm479_vm8, %v144_v5, 0 }
  0x89   : > { %v820_v15 = vcombine.low %v288_v14, %v288_v14  ;;  %v834_v24 = vcombine.low %v480_v19, %v480_v19 }
  0x8a   : > { %v353_v16 = vpop.permute.xlu0 %352  ;;  %v544_v17 = vpop.permute.xlu1 %543 }
  0x8b   : > { %vm354_vm9 = vcmp.ne.s16.totalorder %v353_v16, 0  ;;  %300 = vrot.lane.b32.xlu0 %v820_v15, %s980_s23  ;;  %vm545_vm10 = vcmp.ne.s16.totalorder %v544_v17, 0  ;;  %s140_s23 = scalar_lea.vmem %s1103_s2, %s854_s20 }
  0x8c   : > { %v355_v18 = vsel %vm354_vm9, %v144_v5, 0  ;;  %v546_v20 = vsel %vm545_vm10, %v144_v5, 0 }
  0x8d   : > { %v825_v21 = vcombine.low %v355_v18, %v355_v18  ;;  %v839_v25 = vcombine.low %v546_v20, %v546_v20 }
  0x8e   : > { %v669_v22 = vpop.permute.xlu0 %668  ;;  %v179_v23 = vpop.permute.xlu1 %178 }
  0x8f   : > { %367 = vrot.lane.b32.xlu1 %v825_v21, %s981_s24  ;;  %426 = vrot.lane.b32.xlu0 %v813_v8, %s982_s25  ;;  %vm670_vm11 = vcmp.ne.s16.totalorder %v669_v22, 0  ;;  %v186_v26 = vsel %vm184_vm4, %v179_v23, 0 }
  0x90   : > { %v671_v27 = vsel %vm670_vm11, %v144_v5, 0  ;;  %876 = vmatpush3.bf16.msra.mxu0 %v186_v26 }
  0x91   : > { %887 = vmatprep.subr.bf16.mxu0 %v976_v10  ;;  %v848_v29 = vcombine.low %v671_v27, %v671_v27 }
  0x93   : > { %492 = vrot.lane.b32.xlu1 %v834_v24, %s983_s28  ;;  %558 = vrot.lane.b32.xlu0 %v839_v25, %s984_s29 }
  0x94   : > { %878 = vmatmul.mubr.msk.bf16.vlgmr.msra.gmra.mxu0 %vm180_vm6, %v954_v28 }
  0x95   : > { %889 = vmatprep.mubr.msk.bf16.mxu0 %vm977_vm5, %v976_v10 }
  0x97   : > { %617 = vrot.lane.b32.xlu1 %v813_v8, %s985_s30  ;;  %683 = vrot.lane.b32.xlu0 %v848_v29, %s986_s3 }
  0xd9   : > { %v1038_v30 = vpop.f32.mrf.mxu1 }
  0xdb   : > { %v885_v31 = vpop.f32.mrf.mxu1 }
  0xdd   : > { %v1040_v32 = vpop.f32.mrf.mxu1 }
  0xdf   : > { %v886_v33 = vpop.f32.mrf.mxu1 }
  0xfd   : > { %v301_v34 = vpop.permute.xlu0 %300 }
  0xfe   : > { %v306_v35 = vsel %vm184_vm4, %v301_v34, 0 }
  0xff   : > { %888 = vmatpush3.bf16.msra.mxu0 %v306_v35 }
 0x100   : > { %899 = vmatprep.subr.bf16.mxu0 %v976_v10 }
 0x101   : > { %v368_v37 = vpop.permute.xlu1 %367  ;;  %v427_v38 = vpop.permute.xlu0 %426 }
 0x102   : > { %v373_v39 = vsel %vm184_vm4, %v368_v37, 0  ;;  %890 = vmatmul.mubr.msk.bf16.vlgmr.msra.gmra.mxu0 %vm180_vm6, %v956_v36  ;;  %v432_v40 = vsel %vm184_vm4, %v427_v38, 0 }
 0x103   : > { %894 = vmatpush3.bf16.msra.mxu1 %v373_v39  ;;  %900 = vmatpush3.bf16.msra.mxu0 %v432_v40 }
 0x104   : > { %901 = vmatprep.mubr.msk.bf16.mxu0 %vm977_vm5, %v976_v10  ;;  %905 = vmatprep.subr.bf16.mxu1 %v976_v10 }
 0x105   : > { %v493_v42 = vpop.permute.xlu1 %492  ;;  %v559_v43 = vpop.permute.xlu0 %558  ;;  %911 = vmatprep.subr.bf16.mxu0 %v976_v10 }
 0x106   : > { %896 = vmatmul.mubr.msk.bf16.vlgmr.msra.gmra.mxu1 %vm180_vm6, %v957_v41  ;;  %v498_v44 = vsel %vm184_vm4, %v493_v42, 0  ;;  %v564_v46 = vsel %vm184_vm4, %v559_v43, 0 }
 0x107   : > { %906 = vmatpush3.bf16.msra.mxu1 %v498_v44  ;;  %907 = vmatprep.mubr.msk.bf16.mxu1 %vm977_vm5, %v976_v10 }
 0x108   : > { %917 = vmatprep.subr.bf16.mxu1 %v976_v10 }
 0x109   : > { %v618_v47 = vpop.permute.xlu1 %617  ;;  %v684_v50 = vpop.permute.xlu0 %683 }
 0x10a   : > { %902 = vmatmul.mubr.msk.bf16.vlgmr.msra.gmra.mxu0 %vm180_vm6, %v958_v45  ;;  %v623_v49 = vsel %vm184_vm4, %v618_v47, 0  ;;  %v689_v52 = vsel %vm184_vm4, %v684_v50, 0 }
 0x10b   : > { %912 = vmatpush3.bf16.msra.mxu0 %v564_v46  ;;  %913 = vmatprep.mubr.msk.bf16.mxu0 %vm977_vm5, %v976_v10 }
 0x10c   : > { %923 = vmatprep.subr.bf16.mxu0 %v976_v10 }
 0x10e   : > { %908 = vmatmul.mubr.msk.bf16.vlgmr.msra.gmra.mxu1 %vm180_vm6, %v959_v48 }
 0x10f   : > { %918 = vmatpush3.bf16.msra.mxu1 %v623_v49  ;;  %919 = vmatprep.mubr.msk.bf16.mxu1 %vm977_vm5, %v976_v10 }
 0x112   : > { %914 = vmatmul.mubr.msk.bf16.vlgmr.msra.gmra.mxu0 %vm180_vm6, %v960_v51 }
 0x113   : > { %924 = vmatpush3.bf16.msra.mxu0 %v689_v52  ;;  %925 = vmatprep.mubr.msk.bf16.mxu0 %vm977_vm5, %v976_v10 }
 0x116   : > { %920 = vmatmul.mubr.msk.bf16.vlgmr.msra.gmra.mxu1 %vm180_vm6, %v961_v53 }
 0x11a   : > { %926 = vmatmul.mubr.msk.bf16.vlgmr.msra.gmra.mxu0 %vm180_vm6, %v962_v54 }
 0x154   : > { %v222_v55 = vpop.f32.mrf.mxu0 }
 0x155   : > { %v275_v5 = vadd.f32 %v1038_v30, %v222_v55 }
 0x156   : > { %v879_v56 = vpop.f32.mrf.mxu0 }
 0x158   : > { %v225_v57 = vpop.f32.mrf.mxu0 }
 0x159   : > { %v278_v11 = vadd.f32 %v1040_v32, %v225_v57 }
 0x15a   : > { %v880_v58 = vpop.f32.mrf.mxu0 }
 0x1c2   : > { %v342_v59 = vpop.f32.mrf.mxu0 }
 0x1c3   : > { %v349_v8 = vadd.f32 %v342_v59, %v275_v5 }
 0x1c4   : > { %v891_v60 = vpop.f32.mrf.mxu0 }
 0x1c6   : > { %v345_v61 = vpop.f32.mrf.mxu0  ;;  %v409_v62 = vpop.f32.mrf.mxu1 }
 0x1c7   : > { %v416_v12 = vadd.f32 %v409_v62, %v349_v8  ;;  %v350_v15 = vadd.f32 %v345_v61, %v278_v11 }
 0x1c8   : > { %v892_v63 = vpop.f32.mrf.mxu0  ;;  %v897_v0 = vpop.f32.mrf.mxu1 }
 0x1ca   : > { %v412_v1 = vpop.f32.mrf.mxu1  ;;  %v468_v2 = vpop.f32.mrf.mxu0 }
 0x1cb   : > { %v475_v16 = vadd.f32 %v468_v2, %v416_v12  ;;  %v417_v19 = vadd.f32 %v412_v1, %v350_v15 }
 0x1cc   : > { %v898_v3 = vpop.f32.mrf.mxu1  ;;  %v903_v4 = vpop.f32.mrf.mxu0 }
 0x1ce   : > { %v471_v6 = vpop.f32.mrf.mxu0  ;;  %v534_v7 = vpop.f32.mrf.mxu1 }
 0x1cf   : > { %v541_v20 = vadd.f32 %v534_v7, %v475_v16  ;;  %v476_v23 = vadd.f32 %v471_v6, %v417_v19 }
 0x1d0   : > { %v904_v9 = vpop.f32.mrf.mxu0  ;;  %v909_v10 = vpop.f32.mrf.mxu1 }
 0x1d2   : > { %v537_v13 = vpop.f32.mrf.mxu1  ;;  %v600_v14 = vpop.f32.mrf.mxu0 }
 0x1d3   : > { %v607_v24 = vadd.f32 %v600_v14, %v541_v20  ;;  %v542_v27 = vadd.f32 %v537_v13, %v476_v23 }
 0x1d4   : > { %v910_v17 = vpop.f32.mrf.mxu1  ;;  %v915_v18 = vpop.f32.mrf.mxu0 }
 0x1d6   : > { %v603_v21 = vpop.f32.mrf.mxu0  ;;  %v659_v22 = vpop.f32.mrf.mxu1 }
 0x1d7   : > { %v666_v28 = vadd.f32 %v659_v22, %v607_v24  ;;  %v608_v31 = vadd.f32 %v603_v21, %v542_v27 }
 0x1d8   : > { %v916_v25 = vpop.f32.mrf.mxu0  ;;  %v921_v26 = vpop.f32.mrf.mxu1 }
 0x1da   : > { %v662_v29 = vpop.f32.mrf.mxu1  ;;  %v725_v30 = vpop.f32.mrf.mxu0 }
 0x1db   : > { %v732_v32 = vadd.f32 %v725_v30, %v666_v28  ;;  %v667_v35 = vadd.f32 %v662_v29, %v608_v31 }
 0x1dc   : > { %v927_v33 = vpop.f32.mrf.mxu0  ;;  %v922_v34 = vpop.f32.mrf.mxu1 }
 0x1dd   : > { %v734_v36 = vmax.f32 %v732_v32, 0.0 }
 0x1de   : > { %v728_v37 = vpop.f32.mrf.mxu0 }
 0x1df   : > { %v855_v38 = vpack.c.bf16 %v734_v36, %v734_v36  ;;  %v733_v39 = vadd.f32 %v728_v37, %v667_v35 }
 0x1e0   : > { %v928_v40 = vpop.f32.mrf.mxu0 }
 0x1e1   : > { %745 = vst.msk [vmem:[%s140_s23] sm:$0xf] %vm744_vm12, %v855_v38  ;;  %v735_v41 = vmax.f32 %v733_v39, 0.0 }
 0x1e3   : > { %v856_v42 = vpack.c.bf16 %v735_v41, %v735_v41 }
 0x1e5   : > { %746 = vst.msk [vmem:[%s140_s23 + $0x4] sm:$0xf] %vm744_vm12, %v856_v42 }
 0x1e6 PF: > { %s12_s9 = sadd.s32 1, %s969_s9  }
 0x1e7   : > { %p9_p4 = scmp.ge.s32.totalorder %s12_s9, 4  }
 0x1e9   :  { %11 = sbr.rel (!%p9_p4) target bundleno = 1 (0x1), region = 66 }

// kernel: hdr_loss.20
= control target key start
LH: loop header
LB: loop body
LE: loop exit
PB: predicated region body
PF: predicated region fallthrough
CT: control target
= control target key end

     0   :  { %s626_s12 = smov 0   ;;  %s628_s13 = smov 0   ;;  %s696_s0 = inlined_call_operand.vmem [shape: bf16[2,16,64], index: 0, kind: input, shape index: {}]   ;;  %s697_s1 = inlined_call_operand.vmem [shape: bf16[2,16,64], index: 1, kind: input, shape index: {}]   ;;  %s698_s2 = inlined_call_operand.vmem [shape: f32[2,1,128], index: 2, kind: output, shape index: {0}]   ;;  %s699_s3 = inlined_call_operand.vmem [shape: f32[2,1,128], index: 3, kind: output, shape index: {1}]  }
   0x1   :  { %s630_s14 = smov 0  }
   0x2 LB: > { %s26_s15 = sadd.s32 1, %s598_s13  ;;  %p517_p0 = scmp.ge.s32.totalorder %s602_s14, 1  ;;  %s602_s14 = sphi %s630_s14, %s14_s14   ;;  %s598_s13 = sphi %s628_s13, %s701_s13   ;;  %s594_s12 = sphi %s626_s12, %s700_s12  }
   0x3   : > { %p28_p1 = scmp.ge.s32.totalorder %s26_s15, 2  ;;  %p172_p2 = scmp.lt.s32.totalorder %s602_s14, 3 }
   0x5   : > { %s703_s15 = smov (%p28_p1, %s26_s15), 0  ;;  %p173_p3 = pnand %p517_p0, %p172_p2 }
   0x6   : > { %p208_p4 = scmp.lt.s32.totalorder (!%p173_p3), %s594_s12, 1 }
   0x7   : > { %176 = sbr.rel (%p173_p3) target bundleno = 443 (0x1bb), region = 28 }
   0xc   : > { %vm239_vm0 = vcmask 130048   ;;  %v604_v0 = vmov 0.0   ;;  %s705_s12 = smov (!%p208_p4, %s594_s12), 1  ;;  %vm605_vm1 = vmmov 0   ;;  %vm253_vm2 = vcmask 523264  }
   0xd   : > { %534 = vmatprep.subr.bf16.mxu0 %v604_v0  ;;  %540 = vmatprep.subr.bf16.mxu1 %v604_v0  ;;  %240 = vst.msk [vmem:[#allocation2] sm:$0xff] %vm239_vm0, %v604_v0  ;;  %241 = vst.msk [vmem:[#allocation2 + $0x8] sm:$0xff] %vm239_vm0, %v604_v0  ;;  %s528_s16 = sshll.u32 %s705_s12, 3  ;;  %s226_s25 = scalar_lea.vmem %s698_s2, %s705_s12 }
   0xe   : > { %242 = vst.msk [vmem:[#allocation3] sm:$0xff] %vm239_vm0, %v604_v0  ;;  %243 = vst.msk [vmem:[#allocation3 + $0x8] sm:$0xff] %vm239_vm0, %v604_v0  ;;  %536 = vmatprep.mubr.msk.bf16.mxu0 %vm605_vm1, %v604_v0  ;;  %542 = vmatprep.mubr.msk.bf16.mxu1 %vm605_vm1, %v604_v0  ;;  %s215_s19 = scalar_lea.vmem %s696_s0, %s528_s16  ;;  %s223_s22 = scalar_lea.vmem %s697_s1, %s528_s16 }
   0xf   : > { %v231_v1 = vld [vmem:[%s215_s19] sm:$0xff]   ;;  %s229_s28 = scalar_lea.vmem %s699_s3, %s705_s12  ;;  %244 = vst [vmem:[%s226_s25] sm:$0x1] %v604_v0 }
  0x10   : > { %v233_v2 = vld [vmem:[%s223_s22] sm:$0xff]   ;;  %v255_v3 = vsel %vm253_vm2, %v231_v1, 0  ;;  %v359_v5 = vunpack.c.l.bf16 %v231_v1  ;;  %v360_v6 = vunpack.c.h.bf16 %v231_v1  ;;  %245 = vst [vmem:[%s229_s28] sm:$0x1] %v604_v0 }
  0x11   : > { %v311_v4 = vsel %vm253_vm2, %v233_v2, 0  ;;  %535 = vmatpush3.bf16.xpose.msra.mxu0 %v255_v3  ;;  %v361_v7 = vunpack.c.l.bf16 %v233_v2  ;;  %v362_v8 = vunpack.c.h.bf16 %v233_v2 }
  0x12   : > { %541 = vmatpush3.bf16.xpose.msra.mxu1 %v311_v4 }
  0x13   : > { %v363_v9 = vsub.f32 %v359_v5, %v361_v7  ;;  %v364_v10 = vsub.f32 %v360_v6, %v362_v8 }
  0x14   : > { %v246_v16 = vld [vmem:[#allocation2] sm:$0xff]  ;;  %v247_v24 = vld [vmem:[#allocation2 + $0x8] sm:$0xff] }
  0x15   : > { %v365_v11 = vand.u32 2147483647, %v363_v9  ;;  %v366_v12 = vand.u32 2147483647, %v364_v10  ;;  %v303_v17 = vld [vmem:[#allocation3] sm:$0xff]  ;;  %v304_v25 = vld [vmem:[#allocation3 + $0x8] sm:$0xff] }
  0x16   : > { %v358_v50 = vld [vmem:[%s226_s25] sm:$0x1] }
  0x17   : > { %v367_v13 = vsel %vm253_vm2, %v365_v11, 0.0  ;;  %v368_v14 = vsel %vm253_vm2, %v366_v12, 0.0 }
  0x18   : > { %537 = vmatmul.mubr.msk.bf16.vlgmr.msra.gmra.mxu0 %vm253_vm2, %v231_v1  ;;  %v369_v15 = vadd.f32 %v368_v14, %v367_v13 }
  0x19   : > { %543 = vmatmul.mubr.msk.bf16.vlgmr.msra.gmra.mxu1 %vm253_vm2, %v233_v2 }
  0x1a   : > { %370 = vadd.xlane.f32.xlu0 %v369_v15 }
  0xa3   : > { %v371_v43 = vpop.xlane.xlu0 %370 }
  0xa4   : > { %v372_v44 = vrot.slane %v371_v43, 4 }
  0xa6   : > { %v373_v45 = vadd.f32 %v372_v44, %v371_v43 }
  0xa8   : > { %v374_v46 = vrot.slane %v373_v45, 2 }
  0xaa   : > { %v375_v47 = vadd.f32 %v374_v46, %v373_v45 }
  0xac   : > { %v376_v48 = vrot.slane %v375_v47, 1 }
  0xae   : > { %v377_v49 = vadd.f32 %v376_v48, %v375_v47 }
  0xb0   : > { %546 = vpush %v377_v49 }
  0xd8   : > { %v291_v18 = vpop.f32.mrf.mxu0 }
  0xd9   : > { %v347_v19 = vpop.f32.mrf.mxu1  ;;  %v298_v20 = vadd.f32 %v291_v18, %v246_v16 }
  0xda   : > { %v354_v21 = vadd.f32 %v347_v19, %v303_v17  ;;  %v538_v22 = vpop.f32.mrf.mxu0 }
  0xdb   : > { %v544_v23 = vpop.f32.mrf.mxu1  ;;  %301 = vst.msk [vmem:[#allocation2] sm:$0xff] %vm239_vm0, %v298_v20 }
  0xdc   : > { %356 = vst.msk [vmem:[#allocation3] sm:$0xff] %vm239_vm0, %v354_v21  ;;  %v294_v26 = vpop.f32.mrf.mxu0 }
  0xdd   : > { %v350_v27 = vpop.f32.mrf.mxu1  ;;  %v299_v28 = vadd.f32 %v294_v26, %v247_v24 }
  0xde   : > { %v355_v29 = vadd.f32 %v350_v27, %v304_v25  ;;  %v539_v30 = vpop.f32.mrf.mxu0 }
  0xdf   : > { %v545_v31 = vpop.f32.mrf.mxu1  ;;  %302 = vst.msk [vmem:[#allocation2 + $0x8] sm:$0xff] %vm239_vm0, %v299_v28 }
  0xe0   : > { %357 = vst.msk [vmem:[#allocation3 + $0x8] sm:$0xff] %vm239_vm0, %v355_v29 }
  0xe1   : > { %s547_s29 = spop %546 }
  0xe2   : > { %v385_v32 = vld [vmem:[#allocation2] sm:$0xff]  ;;  %v379_v51 = vstv %s547_s29 }
  0xe3   : > { %v387_v33 = vld [vmem:[#allocation3] sm:$0xff]  ;;  %v380_v52 = vadd.f32 %v379_v51, %v358_v50 }
  0xe4   : > { %v389_v34 = vsub.f32 %v385_v32, %v387_v33 }
  0xe5   : > { %381 = vst [vmem:[%s226_s25] sm:$0x1] %v380_v52 }
  0xe6   : > { %v386_v35 = vld [vmem:[#allocation2 + $0x8] sm:$0xff]  ;;  %v391_v38 = vand.u32 2147483647, %v389_v34 }
  0xe7   : > { %v388_v36 = vld [vmem:[#allocation3 + $0x8] sm:$0xff] }
  0xe8   : > { %v390_v37 = vsub.f32 %v386_v35, %v388_v36  ;;  %v393_v40 = vsel %vm239_vm0, %v391_v38, 0.0 }
  0xea   : > { %v392_v39 = vand.u32 2147483647, %v390_v37 }
  0xec   : > { %v394_v41 = vsel %vm239_vm0, %v392_v39, 0.0 }
  0xed   : > { %v395_v42 = vadd.f32 %v394_v41, %v393_v40 }
  0xef   : > { %396 = vadd.xlane.f32.xlu0 %v395_v42 }
 0x178   : > { %v397_v53 = vpop.xlane.xlu0 %396 }
 0x179   : > { %v398_v54 = vrot.slane %v397_v53, 4 }
 0x17b   : > { %v399_v55 = vadd.f32 %v398_v54, %v397_v53 }
 0x17d   : > { %v400_v56 = vrot.slane %v399_v55, 2 }
 0x17f   : > { %v401_v57 = vadd.f32 %v400_v56, %v399_v55 }
 0x181   : > { %v402_v58 = vrot.slane %v401_v57, 1 }
 0x183   : > { %v403_v59 = vadd.f32 %v402_v58, %v401_v57 }
 0x185   : > { %548 = vpush %v403_v59 }
 0x1b6   : > { %s549_s30 = spop %548 }
 0x1b7   : > { %s405_s4 = smul.f32 0.0009765625, %s549_s30 }
 0x1b9   : > { %v406_v60 = vstv %s405_s4 }
 0x1ba   : > { %408 = vst [vmem:[%s229_s28] sm:$0x1] %v406_v60 }
 0x1bb PF: > { %s14_s14 = sadd.s32 1, %s602_s14   ;;  %s700_s12 = smov %s598_s13 }
 0x1bc   : > { %p11_p5 = scmp.ge.s32.totalorder %s14_s14, 4   ;;  %s701_s13 = smov %s703_s15 }
 0x1be   :  { %13 = sbr.rel (!%p11_p5) target bundleno = 2 (0x2), region = 81 }

// kernel: hdr_loss.21
= control target key start
LH: loop header
LB: loop body
LE: loop exit
PB: predicated region body
PF: predicated region fallthrough
CT: control target
= control target key end

     0   :  { %s720_s12 = smov 0   ;;  %s722_s13 = smov 0   ;;  %s810_s0 = inlined_call_operand.vmem [shape: bf16[2,32,16], index: 0, kind: input, shape index: {}]   ;;  %s811_s1 = inlined_call_operand.vmem [shape: bf16[2,32,16], index: 1, kind: input, shape index: {}]   ;;  %s812_s2 = inlined_call_operand.vmem [shape: f32[2,1,128], index: 2, kind: output, shape index: {0}]   ;;  %s813_s3 = inlined_call_operand.vmem [shape: f32[2,1,128], index: 3, kind: output, shape index: {1}]  }
   0x1   :  { %s724_s14 = smov 0  }
   0x2 LB: > { %s26_s15 = sadd.s32 1, %s693_s13  ;;  %p593_p0 = scmp.ge.s32.totalorder %s697_s14, 1  ;;  %s697_s14 = sphi %s724_s14, %s14_s14   ;;  %s693_s13 = sphi %s722_s13, %s815_s13   ;;  %s689_s12 = sphi %s720_s12, %s814_s12  }
   0x3   : > { %p28_p1 = scmp.ge.s32.totalorder %s26_s15, 2  ;;  %p172_p2 = scmp.lt.s32.totalorder %s697_s14, 3 }
   0x5   : > { %s817_s15 = smov (%p28_p1, %s26_s15), 0  ;;  %p173_p3 = pnand %p593_p0, %p172_p2 }
   0x6   : > { %p208_p4 = scmp.lt.s32.totalorder (!%p173_p3), %s689_s12, 1 }
   0x7   : > { %176 = sbr.rel (%p173_p3) target bundleno = 457 (0x1c9), region = 28 }
   0xc   : > { %vm243_vm0 = vcmask 261120   ;;  %v699_v0 = vmov 0.0   ;;  %s819_s12 = smov (!%p208_p4, %s689_s12), 1  ;;  %vm268_vm1 = vcmask 130048  }
   0xd   : > { %246 = vst.msk [vmem:[#allocation2 + $0x10] sm:$0xff] %vm243_vm0, %v699_v0  ;;  %244 = vst.msk [vmem:[#allocation2] sm:$0xff] %vm243_vm0, %v699_v0  ;;  %s608_s16 = sshll.u32 %s819_s12, 4  ;;  %s226_s25 = scalar_lea.vmem %s812_s2, %s819_s12 }
   0xe   : > { %245 = vst.msk [vmem:[#allocation2 + $0x8] sm:$0xff] %vm243_vm0, %v699_v0  ;;  %247 = vst.msk [vmem:[#allocation2 + $0x18] sm:$0xff] %vm243_vm0, %v699_v0  ;;  %s215_s19 = scalar_lea.vmem %s810_s0, %s608_s16  ;;  %s223_s22 = scalar_lea.vmem %s811_s1, %s608_s16 }
   0xf   : > { %248 = vst.msk [vmem:[#allocation3] sm:$0xff] %vm243_vm0, %v699_v0  ;;  %249 = vst.msk [vmem:[#allocation3 + $0x8] sm:$0xff] %vm243_vm0, %v699_v0  ;;  %v233_v1 = vld [vmem:[%s215_s19 + $0x8] sm:$0xff]   ;;  %v231_v3 = vld [vmem:[%s215_s19] sm:$0xff]   ;;  %s229_s28 = scalar_lea.vmem %s813_s3, %s819_s12 }
  0x10   : > { %250 = vst.msk [vmem:[#allocation3 + $0x10] sm:$0xff] %vm243_vm0, %v699_v0  ;;  %251 = vst.msk [vmem:[#allocation3 + $0x18] sm:$0xff] %vm243_vm0, %v699_v0  ;;  %v237_v2 = vld [vmem:[%s223_s22 + $0x8] sm:$0xff]   ;;  %v235_v4 = vld [vmem:[%s223_s22] sm:$0xff]   ;;  %634 = vmatprep.subr.msk.bf16.mxu0 %vm268_vm1, %v233_v1  ;;  %v273_v5 = vsel %vm268_vm1, %v233_v1, 0  ;;  %622 = vmatprep.mubr.msk.bf16.mxu0 %vm268_vm1, %v231_v3  ;;  %v270_v7 = vsel %vm268_vm1, %v231_v3, 0  ;;  %v413_v9 = vunpack.c.l.bf16 %v233_v1  ;;  %v411_v11 = vunpack.c.l.bf16 %v231_v3 }
  0x11   : > { %636 = vmatprep.subr.msk.bf16.mxu1 %vm268_vm1, %v237_v2  ;;  %v351_v6 = vsel %vm268_vm1, %v237_v2, 0  ;;  %619 = vmatpush3.bf16.xpose.msra.mxu0 %v273_v5  ;;  %v348_v8 = vsel %vm268_vm1, %v235_v4, 0  ;;  %v417_v10 = vunpack.c.l.bf16 %v237_v2  ;;  %v412_v12 = vunpack.c.h.bf16 %v231_v3  ;;  %252 = vst [vmem:[%s226_s25] sm:$0x1] %v699_v0  ;;  %253 = vst [vmem:[%s229_s28] sm:$0x1] %v699_v0 }
  0x12   : > { %627 = vmatpush3.bf16.xpose.msra.mxu1 %v351_v6  ;;  %635 = vmatprep.subr.msk.bf16.mxu0 %vm268_vm1, %v231_v3  ;;  %v415_v13 = vunpack.c.l.bf16 %v235_v4  ;;  %v416_v14 = vunpack.c.h.bf16 %v235_v4  ;;  %v414_v17 = vunpack.c.h.bf16 %v233_v1  ;;  %v418_v18 = vunpack.c.h.bf16 %v237_v2 }
  0x13   : > { %637 = vmatprep.subr.msk.bf16.mxu1 %vm268_vm1, %v235_v4  ;;  %630 = vmatprep.mubr.msk.bf16.mxu1 %vm268_vm1, %v235_v4  ;;  %v421_v19 = vsub.f32 %v413_v9, %v417_v10 }
  0x14   : > { %v419_v15 = vsub.f32 %v411_v11, %v415_v13  ;;  %v420_v16 = vsub.f32 %v412_v12, %v416_v14  ;;  %v422_v22 = vsub.f32 %v414_v17, %v418_v18  ;;  %v256_v32 = vld [vmem:[#allocation2 + $0x10] sm:$0xff]  ;;  %v254_v36 = vld [vmem:[#allocation2] sm:$0xff] }
  0x15   : > { %v425_v23 = vand.u32 2147483647, %v421_v19  ;;  %v257_v42 = vld [vmem:[#allocation2 + $0x18] sm:$0xff]  ;;  %v255_v48 = vld [vmem:[#allocation2 + $0x8] sm:$0xff] }
  0x16   : > { %v423_v20 = vand.u32 2147483647, %v419_v15  ;;  %v424_v21 = vand.u32 2147483647, %v420_v16  ;;  %v426_v26 = vand.u32 2147483647, %v422_v22 }
  0x17   : > { %v430_v28 = vsel %vm268_vm1, %v425_v23, 0.0  ;;  %v335_v33 = vld [vmem:[#allocation3 + $0x10] sm:$0xff]  ;;  %v333_v37 = vld [vmem:[#allocation3] sm:$0xff]  ;;  %v336_v43 = vld [vmem:[#allocation3 + $0x18] sm:$0xff] }
  0x18   : > { %v427_v24 = vsel %vm268_vm1, %v423_v20, 0.0  ;;  %v428_v25 = vsel %vm268_vm1, %v424_v21, 0.0  ;;  %v432_v30 = vsel %vm268_vm1, %v426_v26, 0.0  ;;  %v334_v49 = vld [vmem:[#allocation3 + $0x8] sm:$0xff]  ;;  %v410_v23 = vld [vmem:[%s226_s25] sm:$0x1] }
  0x19   : > { %621 = vmatpush3.bf16.xpose.msra.mxu0 %v270_v7  ;;  %v429_v27 = vadd.f32 %v428_v25, %v427_v24 }
  0x1a   : > { %629 = vmatpush3.bf16.xpose.msra.mxu1 %v348_v8 }
  0x1b   : > { %v431_v29 = vadd.f32 %v430_v28, %v429_v27 }
  0x1d   : > { %v433_v31 = vadd.f32 %v432_v30, %v431_v29 }
  0x1f   : > { %434 = vadd.xlane.f32.xlu0 %v433_v31 }
  0x20   : > { %623 = vmatmul.mubr.msk.bf16.vlgmr.msra.gmra.mxu0 %vm268_vm1, %v233_v1 }
  0x21   : > { %631 = vmatmul.mubr.msk.bf16.vlgmr.msra.gmra.mxu1 %vm268_vm1, %v237_v2 }
  0xa8   : > { %v435_v16 = vpop.xlane.xlu0 %434 }
  0xa9   : > { %v436_v17 = vrot.slane %v435_v16, 4 }
  0xab   : > { %v437_v18 = vadd.f32 %v436_v17, %v435_v16 }
  0xad   : > { %v438_v19 = vrot.slane %v437_v18, 2 }
  0xaf   : > { %v439_v20 = vadd.f32 %v438_v19, %v437_v18 }
  0xb1   : > { %v440_v21 = vrot.slane %v439_v20, 1 }
  0xb3   : > { %v441_v22 = vadd.f32 %v440_v21, %v439_v20 }
  0xb5   : > { %638 = vpush %v441_v22 }
  0xe0   : > { %v624_v34 = vpop.f32.mrf.mxu0 }
  0xe1   : > { %v632_v35 = vpop.f32.mrf.mxu1  ;;  %v326_v38 = vadd.f32 %v624_v34, %v256_v32 }
  0xe2   : > { %v404_v39 = vadd.f32 %v632_v35, %v335_v33  ;;  %v309_v40 = vpop.f32.mrf.mxu0 }
  0xe3   : > { %v387_v41 = vpop.f32.mrf.mxu1  ;;  %331 = vst.msk [vmem:[#allocation2 + $0x10] sm:$0xff] %vm243_vm0, %v326_v38  ;;  %v324_v44 = vadd.f32 %v309_v40, %v254_v36 }
  0xe4   : > { %408 = vst.msk [vmem:[#allocation3 + $0x10] sm:$0xff] %vm243_vm0, %v404_v39  ;;  %v402_v45 = vadd.f32 %v387_v41, %v333_v37  ;;  %v625_v46 = vpop.f32.mrf.mxu0 }
  0xe5   : > { %v633_v47 = vpop.f32.mrf.mxu1  ;;  %329 = vst.msk [vmem:[#allocation2] sm:$0xff] %vm243_vm0, %v324_v44  ;;  %v327_v50 = vadd.f32 %v625_v46, %v257_v42 }
  0xe6   : > { %406 = vst.msk [vmem:[#allocation3] sm:$0xff] %vm243_vm0, %v402_v45  ;;  %v405_v51 = vadd.f32 %v633_v47, %v336_v43  ;;  %v312_v52 = vpop.f32.mrf.mxu0  ;;  %s639_s29 = spop %638 }
  0xe7   : > { %v390_v53 = vpop.f32.mrf.mxu1  ;;  %332 = vst.msk [vmem:[#allocation2 + $0x18] sm:$0xff] %vm243_vm0, %v327_v50  ;;  %v325_v54 = vadd.f32 %v312_v52, %v255_v48  ;;  %v443_v24 = vstv %s639_s29 }
  0xe8   : > { %409 = vst.msk [vmem:[#allocation3 + $0x18] sm:$0xff] %vm243_vm0, %v405_v51  ;;  %v403_v55 = vadd.f32 %v390_v53, %v334_v49  ;;  %v444_v25 = vadd.f32 %v443_v24, %v410_v23 }
  0xe9   : > { %330 = vst.msk [vmem:[#allocation2 + $0x8] sm:$0xff] %vm243_vm0, %v325_v54 }
  0xea   : > { %407 = vst.msk [vmem:[#allocation3 + $0x8] sm:$0xff] %vm243_vm0, %v403_v55  ;;  %v451_v56 = vld [vmem:[#allocation2 + $0x10] sm:$0xff]  ;;  %445 = vst [vmem:[%s226_s25] sm:$0x1] %v444_v25 }
  0xeb   : > { %v455_v59 = vld [vmem:[#allocation3 + $0x10] sm:$0xff] }
  0xec   : > { %v449_v57 = vld [vmem:[#allocation2] sm:$0xff]  ;;  %v459_v63 = vsub.f32 %v451_v56, %v455_v59 }
  0xed   : > { %v453_v58 = vld [vmem:[#allocation3] sm:$0xff] }
  0xee   : > { %v457_v60 = vsub.f32 %v449_v57, %v453_v58  ;;  %v452_v61 = vld [vmem:[#allocation2 + $0x18] sm:$0xff]  ;;  %v463_v7 = vand.u32 2147483647, %v459_v63 }
  0xef   : > { %v456_v62 = vld [vmem:[#allocation3 + $0x18] sm:$0xff] }
  0xf0   : > { %v450_v1 = vld [vmem:[#allocation2 + $0x8] sm:$0xff]  ;;  %v460_v4 = vsub.f32 %v452_v61, %v456_v62  ;;  %v461_v5 = vand.u32 2147483647, %v457_v60  ;;  %v468_v12 = vsel %vm243_vm0, %v463_v7, 0.0 }
  0xf1   : > { %v454_v2 = vld [vmem:[#allocation3 + $0x8] sm:$0xff] }
  0xf2   : > { %v458_v3 = vsub.f32 %v450_v1, %v454_v2  ;;  %v464_v8 = vand.u32 2147483647, %v460_v4  ;;  %v465_v9 = vsel %vm243_vm0, %v461_v5, 0.0 }
  0xf4   : > { %v462_v6 = vand.u32 2147483647, %v458_v3  ;;  %v470_v14 = vsel %vm243_vm0, %v464_v8, 0.0 }
  0xf6   : > { %v466_v10 = vsel %vm243_vm0, %v462_v6, 0.0 }
  0xf7   : > { %v467_v11 = vadd.f32 %v466_v10, %v465_v9 }
  0xf9   : > { %v469_v13 = vadd.f32 %v468_v12, %v467_v11 }
  0xfb   : > { %v471_v15 = vadd.f32 %v470_v14, %v469_v13 }
  0xfd   : > { %472 = vadd.xlane.f32.xlu0 %v471_v15 }
 0x186   : > { %v473_v26 = vpop.xlane.xlu0 %472 }
 0x187   : > { %v474_v27 = vrot.slane %v473_v26, 4 }
 0x189   : > { %v475_v28 = vadd.f32 %v474_v27, %v473_v26 }
 0x18b   : > { %v476_v29 = vrot.slane %v475_v28, 2 }
 0x18d   : > { %v477_v30 = vadd.f32 %v476_v29, %v475_v28 }
 0x18f   : > { %v478_v31 = vrot.slane %v477_v30, 1 }
 0x191   : > { %v479_v32 = vadd.f32 %v478_v31, %v477_v30 }
 0x193   : > { %640 = vpush %v479_v32 }
 0x1c4   : > { %s641_s30 = spop %640 }
 0x1c5   : > { %s481_s4 = smul.f32 0.001953125, %s641_s30 }
 0x1c7   : > { %v482_v33 = vstv %s481_s4 }
 0x1c8   : > { %484 = vst [vmem:[%s229_s28] sm:$0x1] %v482_v33 }
 0x1c9 PF: > { %s14_s14 = sadd.s32 1, %s697_s14   ;;  %s814_s12 = smov %s693_s13 }
 0x1ca   : > { %p11_p5 = scmp.ge.s32.totalorder %s14_s14, 4   ;;  %s815_s13 = smov %s817_s15 }
 0x1cc   :  { %13 = sbr.rel (!%p11_p5) target bundleno = 2 (0x2), region = 81 }

// kernel: hdr_loss.15
= control target key start
LH: loop header
LB: loop body
LE: loop exit
PB: predicated region body
PF: predicated region fallthrough
CT: control target
= control target key end

     0   :  { %s1253_s9 = smov 0   ;;  %s1360_s0 = inlined_call_operand.vmem [shape: bf16[2,16,26], index: 0, kind: input, shape index: {}]   ;;  %s1361_s1 = inlined_call_operand.vmem [shape: bf16[9,32,16], index: 1, kind: input, shape index: {}]   ;;  %s1362_s2 = inlined_call_operand.vmem [shape: bf16[2,32,16], index: 2, kind: output, shape index: {}]  }
   0x1 LB: > { %s998_s10 = sadd.s32 4294967295, %s1222_s9   ;;  %p1002_p0 = scmp.ge.s32.totalorder %s1222_s9, 1  ;;  %s1222_s9 = sphi %s1253_s9, %s12_s9  }
   0x2   : > { %p112_p1 = scmp.lt.s32.totalorder %s1222_s9, 3 }
   0x4   : > { %p113_p2 = pnand %p1002_p0, %p112_p1 }
   0x5   : > { %p134_p3 = scmp.lt.s32.totalorder (!%p113_p2), %s998_s10, 1  ;;  %s1225_s15 = smov (!%p113_p2), 2  }
   0x6   : > { %116 = sbr.rel (%p113_p2) target bundleno = 488 (0x1e8), region = 28  ;;  %s1226_s16 = smov (!%p113_p2), 6  }
   0x7   : > { %s1227_s21 = smov (!%p113_p2), 4   ;;  %s1228_s22 = smov (!%p113_p2), 8  }
   0x8   : > { %s1229_s25 = smov (!%p113_p2), 10   ;;  %s1230_s26 = smov (!%p113_p2), 127  }
   0x9   : > { %s1231_s29 = smov (!%p113_p2), 126   ;;  %s1232_s30 = smov (!%p113_p2), 124  }
   0xa   : > { %s1233_s3 = smov (!%p113_p2), 123   ;;  %s1234_s8 = smov (!%p113_p2), 122  }
   0xb   : > { %v149_v0 = vlaneseq  ;;  %s1366_s10 = smov (!%p134_p3, %s998_s10), 1  ;;  %v1224_v3 = vmov 0   ;;  %v1198_v11 = vld [vmem:[%s1361_s1 + $0x10] sm:$0xff]   ;;  %vm197_vm4 = vcmask 130048   ;;  %v1199_v12 = vld [vmem:[%s1361_s1] sm:$0xff]   ;;  %v1201_v15 = vld [vmem:[%s1361_s1 + $0x8] sm:$0xff]  }
   0xc   : > { %s1088_s11 = sshll.u32 %s1366_s10, 3  ;;  %1123 = vmatprep.mubr.msk.bf16.mxu0 %vm197_vm4, %v1198_v11  ;;  %1129 = vmatprep.mubr.msk.bf16.mxu1 %vm197_vm4, %v1199_v12  ;;  %v1204_v16 = vld [vmem:[%s1361_s1 + $0x30] sm:$0xff]   ;;  %v1200_v37 = vld [vmem:[%s1361_s1 + $0x18] sm:$0xff]   ;;  %v1202_v38 = vld [vmem:[%s1361_s1 + $0x20] sm:$0xff]   ;;  %s1236_s12 = smov 119   ;;  %vm938_vm10 = vcmask 125952  }
   0xd   : > { %v150_v1 = vand.u32 127, %v149_v0  ;;  %s138_s14 = scalar_lea.vmem %s1360_s0, %s1088_s11  ;;  %s1235_s11 = smov 120   ;;  %v1203_v41 = vld [vmem:[%s1361_s1 + $0x28] sm:$0xff]   ;;  %v1206_v42 = vld [vmem:[%s1361_s1 + $0x40] sm:$0xff]   ;;  %v1205_v45 = vld [vmem:[%s1361_s1 + $0x38] sm:$0xff]  }
   0xe   : > { %v147_v6 = vld [vmem:[%s138_s14] sm:$0xf]  ;;  %v148_v7 = vld [vmem:[%s138_s14 + $0x4] sm:$0xf]  ;;  %s1237_s13 = smov 118   ;;  %v1208_v46 = vld [vmem:[%s1361_s1 + $0x50] sm:$0xff]  }
   0xf   : > { %v155_v2 = vand.u32 3, %v150_v1  ;;  %v1013_v13 = vcombine.low %v147_v6, %v148_v7  ;;  %v1207_v49 = vld [vmem:[%s1361_s1 + $0x48] sm:$0xff]   ;;  %v1210_v50 = vld [vmem:[%s1361_s1 + $0x60] sm:$0xff]   ;;  %v1209_v53 = vld [vmem:[%s1361_s1 + $0x58] sm:$0xff]  }
  0x10   : > { %v1212_v54 = vld [vmem:[%s1361_s1 + $0x70] sm:$0xff]   ;;  %v1211_v55 = vld [vmem:[%s1361_s1 + $0x68] sm:$0xff]   ;;  %v1214_v56 = vld [vmem:[%s1361_s1 + $0x80] sm:$0xff]  }
  0x11   : > { %vm164_vm0 = vcmp.ne.s32.totalorder %v155_v2, 3  ;;  %vm163_vm1 = vcmp.ne.s32.totalorder %v155_v2, 0  ;;  %v1213_v57 = vld [vmem:[%s1361_s1 + $0x78] sm:$0xff]   ;;  %v1215_v58 = vld [vmem:[%s1361_s1 + $0x88] sm:$0xff]  }
  0x12   : > { %vm326_vm2 = vmpackc.low %vm164_vm0, %vm164_vm0 }
  0x13   : > { %v327_v4 = vsel %vm326_vm2, 65537, %v1224_v3  ;;  %vm1267_vm3 = vmpackc.low %vm163_vm1, %vm163_vm1 }
  0x14   : > { %328 = vrot.lane.b32.xlu0 %v327_v4, %s1225_s15  ;;  %v415_v8 = vsel %vm1267_vm3, 65537, %v1224_v3  ;;  %580 = vrot.lane.b32.xlu1 %v327_v4, %s1226_s16  ;;  %v168_v9 = vsel %vm1267_vm3, %v147_v6, 0  ;;  %v169_v10 = vsel %vm1267_vm3, %v148_v7, 0 }
  0x15   : > { %v1018_v14 = vcombine.low %v168_v9, %v169_v10 }
  0x17   : > { %1127 = vmatprep.subr.bf16.mxu1 %v1018_v14 }
  0x18   : > { %416 = vrot.lane.b32.xlu0 %v415_v8, %s1227_s21  ;;  %667 = vrot.lane.b32.xlu1 %v415_v8, %s1228_s22 }
  0x19   : > { %1128 = vmatpush3.bf16.msra.mxu1 %v1018_v14 }
  0x1c   : > { %831 = vrot.lane.b32.xlu0 %v327_v4, %s1229_s25  ;;  %194 = vrot.lane.b32.xlu1 %v1013_v13, %s1230_s26 }
  0x1d   : > { %1130 = vmatmul.mubr.msk.bf16.vlgmr.msra.gmra.mxu1 %vm197_vm4, %v1201_v15 }
  0x1e   : > { %1141 = vmatprep.mubr.msk.bf16.mxu1 %vm197_vm4, %v1204_v16 }
  0x86   : > { %v329_v17 = vpop.permute.xlu0 %328  ;;  %v581_v18 = vpop.permute.xlu1 %580 }
  0x87   : > { %vm330_vm5 = vcmp.ne.s16.totalorder %v329_v17, 0  ;;  %vm582_vm6 = vcmp.ne.s16.totalorder %v581_v18, 0 }
  0x88   : > { %v331_v19 = vsel %vm330_vm5, %v147_v6, 0  ;;  %v332_v20 = vsel %vm330_vm5, %v148_v7, 0  ;;  %v583_v24 = vsel %vm582_vm6, %v147_v6, 0  ;;  %v584_v25 = vsel %vm582_vm6, %v148_v7, 0 }
  0x89   : > { %v1027_v21 = vcombine.low %v331_v19, %v332_v20  ;;  %v1053_v33 = vcombine.low %v583_v24, %v584_v25 }
  0x8a   : > { %v417_v22 = vpop.permute.xlu0 %416  ;;  %v668_v23 = vpop.permute.xlu1 %667 }
  0x8b   : > { %vm418_vm7 = vcmp.ne.s16.totalorder %v417_v22, 0  ;;  %353 = vrot.lane.b32.xlu0 %v1027_v21, %s1231_s29  ;;  %vm669_vm8 = vcmp.ne.s16.totalorder %v668_v23, 0 }
  0x8c   : > { %v419_v26 = vsel %vm418_vm7, %v147_v6, 0  ;;  %v420_v27 = vsel %vm418_vm7, %v148_v7, 0  ;;  %v670_v28 = vsel %vm669_vm8, %v147_v6, 0  ;;  %v671_v29 = vsel %vm669_vm8, %v148_v7, 0 }
  0x8d   : > { %v1036_v30 = vcombine.low %v419_v26, %v420_v27  ;;  %v1062_v34 = vcombine.low %v670_v28, %v671_v29 }
  0x8e   : > { %v832_v31 = vpop.permute.xlu0 %831  ;;  %v195_v32 = vpop.permute.xlu1 %194 }
  0x8f   : > { %441 = vrot.lane.b32.xlu1 %v1036_v30, %s1232_s30  ;;  %518 = vrot.lane.b32.xlu0 %v1013_v13, %s1233_s3  ;;  %vm833_vm9 = vcmp.ne.s16.totalorder %v832_v31, 0 }
  0x90   : > { %v834_v35 = vsel %vm833_vm9, %v147_v6, 0  ;;  %v835_v36 = vsel %vm833_vm9, %v148_v7, 0  ;;  %1121 = vmatprep.subr.bf16.mxu0 %v195_v32 }
  0x91   : > { %1122 = vmatpush3.bf16.msra.mxu0 %v195_v32  ;;  %v1079_v39 = vcombine.low %v834_v35, %v835_v36 }
  0x93   : > { %605 = vrot.lane.b32.xlu1 %v1053_v33, %s1234_s8  ;;  %692 = vrot.lane.b32.xlu0 %v1062_v34, %s1235_s11 }
  0x94   : > { %1124 = vmatmul.mubr.msk.bf16.vlgmr.msra.gmra.mxu0 %vm197_vm4, %v1200_v37 }
  0x95   : > { %1135 = vmatprep.mubr.msk.bf16.mxu0 %vm197_vm4, %v1202_v38 }
  0x97   : > { %769 = vrot.lane.b32.xlu1 %v1013_v13, %s1236_s12  ;;  %856 = vrot.lane.b32.xlu0 %v1079_v39, %s1237_s13  ;;  %s1089_s12 = sshll.u32 %s1366_s10, 4 }
  0x98   : > { %s143_s15 = scalar_lea.vmem %s1362_s2, %s1089_s12 }
  0xdd   : > { %v1131_v60 = vpop.f32.mrf.mxu1 }
  0xdf   : > { %v309_v62 = vpop.f32.mrf.mxu1 }
  0xe1   : > { %v1132_v0 = vpop.f32.mrf.mxu1 }
  0xe3   : > { %v312_v3 = vpop.f32.mrf.mxu1 }
  0xfd   : > { %v354_v40 = vpop.permute.xlu0 %353 }
  0xfe   : > { %1133 = vmatprep.subr.bf16.mxu0 %v354_v40 }
  0xff   : > { %1134 = vmatpush3.bf16.msra.mxu0 %v354_v40 }
 0x101   : > { %v442_v43 = vpop.permute.xlu1 %441  ;;  %v519_v44 = vpop.permute.xlu0 %518 }
 0x102   : > { %1136 = vmatmul.mubr.msk.bf16.vlgmr.msra.gmra.mxu0 %vm197_vm4, %v1203_v41  ;;  %1139 = vmatprep.subr.bf16.mxu1 %v442_v43 }
 0x103   : > { %1140 = vmatpush3.bf16.msra.mxu1 %v442_v43  ;;  %1145 = vmatprep.subr.bf16.mxu0 %v519_v44 }
 0x104   : > { %1146 = vmatpush3.bf16.msra.mxu0 %v519_v44  ;;  %1147 = vmatprep.mubr.msk.bf16.mxu0 %vm197_vm4, %v1206_v42 }
 0x105   : > { %v606_v47 = vpop.permute.xlu1 %605  ;;  %v693_v48 = vpop.permute.xlu0 %692 }
 0x106   : > { %1142 = vmatmul.mubr.msk.bf16.vlgmr.msra.gmra.mxu1 %vm197_vm4, %v1205_v45  ;;  %1151 = vmatprep.subr.bf16.mxu1 %v606_v47 }
 0x107   : > { %1152 = vmatpush3.bf16.msra.mxu1 %v606_v47  ;;  %1153 = vmatprep.mubr.msk.bf16.mxu1 %vm197_vm4, %v1208_v46 }
 0x108   : > { %1157 = vmatprep.subr.bf16.mxu0 %v693_v48 }
 0x109   : > { %v770_v51 = vpop.permute.xlu1 %769  ;;  %v857_v52 = vpop.permute.xlu0 %856 }
 0x10a   : > { %1148 = vmatmul.mubr.msk.bf16.vlgmr.msra.gmra.mxu0 %vm197_vm4, %v1207_v49  ;;  %1163 = vmatprep.subr.bf16.mxu1 %v770_v51 }
 0x10b   : > { %1158 = vmatpush3.bf16.msra.mxu0 %v693_v48  ;;  %1159 = vmatprep.mubr.msk.bf16.mxu0 %vm197_vm4, %v1210_v50 }
 0x10c   : > { %1169 = vmatprep.subr.bf16.mxu0 %v857_v52 }
 0x10e   : > { %1154 = vmatmul.mubr.msk.bf16.vlgmr.msra.gmra.mxu1 %vm197_vm4, %v1209_v53 }
 0x10f   : > { %1164 = vmatpush3.bf16.msra.mxu1 %v770_v51  ;;  %1165 = vmatprep.mubr.msk.bf16.mxu1 %vm197_vm4, %v1212_v54 }
 0x112   : > { %1160 = vmatmul.mubr.msk.bf16.vlgmr.msra.gmra.mxu0 %vm197_vm4, %v1211_v55 }
 0x113   : > { %1170 = vmatpush3.bf16.msra.mxu0 %v857_v52  ;;  %1171 = vmatprep.mubr.msk.bf16.mxu0 %vm197_vm4, %v1214_v56 }
 0x116   : > { %1166 = vmatmul.mubr.msk.bf16.vlgmr.msra.gmra.mxu1 %vm197_vm4, %v1213_v57 }
 0x11a   : > { %1172 = vmatmul.mubr.msk.bf16.vlgmr.msra.gmra.mxu0 %vm197_vm4, %v1215_v58 }
 0x154   : > { %v1125_v59 = vpop.f32.mrf.mxu0 }
 0x155   : > { %v318_v13 = vadd.f32 %v1131_v60, %v1125_v59 }
 0x156   : > { %v238_v61 = vpop.f32.mrf.mxu0 }
 0x157   : > { %v310_v16 = vadd.f32 %v309_v62, %v238_v61 }
 0x158   : > { %v1126_v63 = vpop.f32.mrf.mxu0 }
 0x159   : > { %v321_v20 = vadd.f32 %v1132_v0, %v1126_v63 }
 0x15a   : > { %v241_v1 = vpop.f32.mrf.mxu0 }
 0x15b   : > { %v313_v25 = vadd.f32 %v312_v3, %v241_v1 }
 0x1c2   : > { %v1137_v2 = vpop.f32.mrf.mxu0 }
 0x1c3   : > { %v413_v17 = vadd.f32 %v1137_v2, %v318_v13 }
 0x1c4   : > { %v396_v4 = vpop.f32.mrf.mxu0 }
 0x1c5   : > { %v411_v21 = vadd.f32 %v396_v4, %v310_v16 }
 0x1c6   : > { %v1138_v5 = vpop.f32.mrf.mxu0  ;;  %v1143_v6 = vpop.f32.mrf.mxu1 }
 0x1c7   : > { %v501_v22 = vadd.f32 %v1143_v6, %v413_v17  ;;  %v414_v26 = vadd.f32 %v1138_v5, %v321_v20 }
 0x1c8   : > { %v399_v7 = vpop.f32.mrf.mxu0  ;;  %v484_v8 = vpop.f32.mrf.mxu1 }
 0x1c9   : > { %v499_v27 = vadd.f32 %v484_v8, %v411_v21  ;;  %v412_v31 = vadd.f32 %v399_v7, %v313_v25 }
 0x1ca   : > { %v1144_v9 = vpop.f32.mrf.mxu1  ;;  %v1149_v10 = vpop.f32.mrf.mxu0 }
 0x1cb   : > { %v578_v28 = vadd.f32 %v1149_v10, %v501_v22  ;;  %v502_v32 = vadd.f32 %v1144_v9, %v414_v26 }
 0x1cc   : > { %v487_v11 = vpop.f32.mrf.mxu1  ;;  %v561_v12 = vpop.f32.mrf.mxu0 }
 0x1cd   : > { %v576_v33 = vadd.f32 %v561_v12, %v499_v27  ;;  %v500_v37 = vadd.f32 %v487_v11, %v412_v31 }
 0x1ce   : > { %v1150_v14 = vpop.f32.mrf.mxu0  ;;  %v1155_v15 = vpop.f32.mrf.mxu1 }
 0x1cf   : > { %v665_v34 = vadd.f32 %v1155_v15, %v578_v28  ;;  %v579_v38 = vadd.f32 %v1150_v14, %v502_v32 }
 0x1d0   : > { %v564_v18 = vpop.f32.mrf.mxu0  ;;  %v648_v19 = vpop.f32.mrf.mxu1 }
 0x1d1   : > { %v663_v39 = vadd.f32 %v648_v19, %v576_v33  ;;  %v577_v43 = vadd.f32 %v564_v18, %v500_v37 }
 0x1d2   : > { %v1156_v23 = vpop.f32.mrf.mxu1  ;;  %v1161_v24 = vpop.f32.mrf.mxu0 }
 0x1d3   : > { %v752_v40 = vadd.f32 %v1161_v24, %v665_v34  ;;  %v666_v44 = vadd.f32 %v1156_v23, %v579_v38 }
 0x1d4   : > { %v651_v29 = vpop.f32.mrf.mxu1  ;;  %v735_v30 = vpop.f32.mrf.mxu0 }
 0x1d5   : > { %v750_v45 = vadd.f32 %v735_v30, %v663_v39  ;;  %v664_v49 = vadd.f32 %v651_v29, %v577_v43 }
 0x1d6   : > { %v1162_v35 = vpop.f32.mrf.mxu0  ;;  %v1167_v36 = vpop.f32.mrf.mxu1 }
 0x1d7   : > { %v829_v46 = vadd.f32 %v1167_v36, %v752_v40  ;;  %v753_v50 = vadd.f32 %v1162_v35, %v666_v44 }
 0x1d8   : > { %v738_v41 = vpop.f32.mrf.mxu0  ;;  %v812_v42 = vpop.f32.mrf.mxu1 }
 0x1d9   : > { %v827_v51 = vadd.f32 %v812_v42, %v750_v45  ;;  %v751_v55 = vadd.f32 %v738_v41, %v664_v49 }
 0x1da   : > { %v1168_v47 = vpop.f32.mrf.mxu1  ;;  %v1173_v48 = vpop.f32.mrf.mxu0 }
 0x1db   : > { %v916_v52 = vadd.f32 %v1173_v48, %v829_v46  ;;  %v830_v56 = vadd.f32 %v1168_v47, %v753_v50 }
 0x1dc   : > { %v815_v53 = vpop.f32.mrf.mxu1  ;;  %v899_v54 = vpop.f32.mrf.mxu0 }
 0x1dd   : > { %v920_v57 = vmax.f32 %v916_v52, 0.0  ;;  %v914_v58 = vadd.f32 %v899_v54, %v827_v51  ;;  %v828_v61 = vadd.f32 %v815_v53, %v751_v55 }
 0x1de   : > { %v1174_v59 = vpop.f32.mrf.mxu0 }
 0x1df   : > { %v1092_v60 = vpack.c.bf16 %v920_v57, %v920_v57  ;;  %v918_v62 = vmax.f32 %v914_v58, 0.0  ;;  %v917_v63 = vadd.f32 %v1174_v59, %v830_v56 }
 0x1e0   : > { %v902_v0 = vpop.f32.mrf.mxu0 }
 0x1e1   : > { %941 = vst.msk [vmem:[%s143_s15 + $0x8] sm:$0xf] %vm938_vm10, %v1092_v60  ;;  %v1090_v1 = vpack.c.bf16 %v918_v62, %v918_v62  ;;  %v921_v2 = vmax.f32 %v917_v63, 0.0  ;;  %v915_v3 = vadd.f32 %v902_v0, %v828_v61 }
 0x1e3   : > { %939 = vst.msk [vmem:[%s143_s15] sm:$0xf] %vm938_vm10, %v1090_v1  ;;  %v1093_v4 = vpack.c.bf16 %v921_v2, %v921_v2  ;;  %v919_v5 = vmax.f32 %v915_v3, 0.0 }
 0x1e5   : > { %942 = vst.msk [vmem:[%s143_s15 + $0xc] sm:$0xf] %vm938_vm10, %v1093_v4  ;;  %v1091_v6 = vpack.c.bf16 %v919_v5, %v919_v5 }
 0x1e7   : > { %940 = vst.msk [vmem:[%s143_s15 + $0x4] sm:$0xf] %vm938_vm10, %v1091_v6 }
 0x1e8 PF: > { %s12_s9 = sadd.s32 1, %s1222_s9  }
 0x1e9   : > { %p9_p4 = scmp.ge.s32.totalorder %s12_s9, 4  }
 0x1eb   :  { %11 = sbr.rel (!%p9_p4) target bundleno = 1 (0x1), region = 66 }

</bundles_post_ra>
